<compile_context>
chip_gen: v6e
topology: v6e:2x2x1
jax: 0.10.0
libtpu: 0.0.40
codegen_flags: <defaults>
</compile_context>

<pallas_src>
import jax
import jax.numpy as jnp
from jax.experimental import pallas as pl
from jax.experimental.pallas import tpu as pltpu

PRIMITIVES = [
    "none", "max_pool_3x3", "avg_pool_3x3", "skip_connect",
    "sep_conv_3x3", "sep_conv_5x5", "dil_conv_3x3", "dil_conv_5x5",
]
BN_EPS = 1e-5
NEG_BIG = -1e30   # additive "border" value for max-pool invalid taps

_VMEM = pl.BlockSpec(memory_space=pltpu.MemorySpace.VMEM)
_SMEM = pl.BlockSpec(memory_space=pltpu.MemorySpace.SMEM)


# ------------------------- in-kernel math helpers ---------------------------

def _bn(y, g, b):
    """Training-mode BatchNorm on channel-major (C, M): stats over the lane axis."""
    inv_m = 1.0 / y.shape[1]
    mean = jnp.sum(y, axis=1, keepdims=True) * inv_m
    ex2 = jnp.sum(y * y, axis=1, keepdims=True) * inv_m
    var = jnp.maximum(ex2 - mean * mean, 0.0)
    return (y - mean) * jax.lax.rsqrt(var + BN_EPS) * g + b


def _relu_pw_bn(x, wt, g, b):
    """ReLU -> 1x1 conv (channel matmul) -> BN.  (Cin, M) -> (Cout, M)."""
    y = jnp.dot(wt, jnp.maximum(x, 0.0), preferred_element_type=jnp.float32)
    return _bn(y, g, b)


def _sum_taps(x, wm_ref, off, shifts):
    """sum_t roll(x, shift_t) * wm[off+t]  (depthwise-conv / avg-pool taps)."""
    acc = jnp.zeros_like(x)
    for t, sh in enumerate(shifts):
        xr = x if sh == 0 else pltpu.roll(x, sh, axis=1)   # XLU lane rotate
        acc = acc + xr * wm_ref[off + t]
    return acc


def _max_taps(x, wm_ref, off, shifts):
    """max_t (roll(x, shift_t) + addmask[off+t])  (max-pool, -1e30 border)."""
    acc = None
    for t, sh in enumerate(shifts):
        xr = x if sh == 0 else pltpu.roll(x, sh, axis=1)
        v = xr + wm_ref[off + t]
        acc = v if acc is None else jnp.maximum(acc, v)
    return acc


def _relu_dw_pw_bn(x, wm_ref, off, shifts, wt, g, b):
    """ReLU -> depthwise kxk (roll + masked weights) -> pointwise 1x1 -> BN."""
    acc = _sum_taps(jnp.maximum(x, 0.0), wm_ref, off, shifts)
    y = jnp.dot(wt, acc, preferred_element_type=jnp.float32)
    return _bn(y, g, b)


# ----------------------------- fused cell kernel ----------------------------

def _build_cell_kernel(plan, steps, multiplier, C):
    """plan: static per-edge dicts (prim, wm offset, roll shifts, pw/aff idx)."""

    def kernel(s0_ref, s1_ref, w0_ref, w1_ref, pw_ref, wm_ref, aff_ref,
               sc_ref, out_ref):

        def aff(a):
            return aff_ref[a, 0], aff_ref[a, 1]            # (C, 1) each

        # preprocess0 / preprocess1: ReLU -> 1x1 conv -> BN
        g0, b0 = aff(0)
        g1, b1 = aff(1)
        states = [_relu_pw_bn(s0_ref[...], w0_ref[...], g0, b0),
                  _relu_pw_bn(s1_ref[...], w1_ref[...], g1, b1)]

        e = 0
        for i in range(steps):
            s_new = jnp.zeros_like(states[0])
            for j in range(2 + i):
                spec = plan[i][j]
                prim = spec["prim"]
                h = states[j]
                if prim == "none":
                    # chosen op outputs zeros -> only the GDAS offset remains
                    s_new = s_new + sc_ref[2 * e + 1]
                elif prim == "skip_connect":
                    s_new = s_new + h * sc_ref[2 * e] + sc_ref[2 * e + 1]
                elif prim == "max_pool_3x3":
                    g, b = aff(spec["aff"])
                    y = _max_taps(h, wm_ref, spec["wm"], spec["shifts"])
                    s_new = s_new + _bn(y, g, b)
                elif prim == "avg_pool_3x3":
                    g, b = aff(spec["aff"])
                    y = _sum_taps(h, wm_ref, spec["wm"], spec["shifts"])
                    s_new = s_new + _bn(y, g, b)
                elif prim.startswith("dil_conv"):
                    g, b = aff(spec["aff"])
                    s_new = s_new + _relu_dw_pw_bn(
                        h, wm_ref, spec["wm"], spec["shifts"],
                        pw_ref[spec["pw"]], g, b)
                else:                                      # sep_conv: two stages
                    ga, ba = aff(spec["aff"])
                    gb, bb = aff(spec["aff"] + 1)
                    nt = len(spec["shifts"])
                    t = _relu_dw_pw_bn(h, wm_ref, spec["wm"], spec["shifts"],
                                       pw_ref[spec["pw"]], ga, ba)
                    s_new = s_new + _relu_dw_pw_bn(
                        t, wm_ref, spec["wm"] + nt, spec["shifts"],
                        pw_ref[spec["pw"] + 1], gb, bb)
                e += 1
            states.append(s_new)

        # torch.cat(states[-multiplier:], dim=1): stack along sublanes (rows).
        for m, st in enumerate(states[-multiplier:]):
            out_ref[m * C:(m + 1) * C] = st

    return kernel


# ----------------------------- host-side helpers ----------------------------

def _tap_tables(N, H, W, k, d):
    """Static lane-roll shifts + f32 validity masks for a kxk window, dilation d.

    Shifts are plain Python ints (pltpu.roll needs static amounts); masks zero
    out taps that fall outside the HxW image (also covers cross-row / cross-
    batch wraparound of the circular roll)."""
    M = N * H * W
    p = d * (k - 1) // 2
    idx = jnp.arange(M, dtype=jnp.int32)
    hh = (idx // W) % H
    ww = idx % W
    shifts, masks = [], []
    for kh in range(k):
        for kw in range(k):
            dh, dw = kh * d - p, kw * d - p
            shifts.append(int((-(dh * W + dw)) % M))
            m = ((hh + dh >= 0) & (hh + dh < H) &
                 (ww + dw >= 0) & (ww + dw < W))
            masks.append(m.astype(jnp.float32))
    return shifts, jnp.stack(masks)                        # (k*k, M)


def _conv_init(key, shape):
    return 0.1 * jax.random.normal(key, shape, jnp.float32)


def make_op_params(key, prim, C):
    ones = jnp.ones((1, C), jnp.float32)
    zeros = jnp.zeros((1, C), jnp.float32)
    if prim in ("none", "skip_connect"):
        return {}
    if "pool" in prim:
        return {"gamma": ones, "beta": zeros}
    k = 3 if "3x3" in prim else 5
    if prim.startswith("dil_conv"):
        k1, k2 = jax.random.split(key)
        return {"wdw": _conv_init(k1, (k * k, C)), "wpw": _conv_init(k2, (C, C)),
                "gamma": ones, "beta": zeros}
    k1, k2, k3, k4 = jax.random.split(key, 4)
    return {"wdw1": _conv_init(k1, (k * k, C)), "wpw1": _conv_init(k2, (C, C)),
            "gamma1": ones, "beta1": zeros,
            "wdw2": _conv_init(k3, (k * k, C)), "wpw2": _conv_init(k4, (C, C)),
            "gamma2": ones, "beta2": zeros}


# --------------------------------- the cell ---------------------------------

class NormalCell:
    # TODO(synk): FactorizedReduce preprocess0 (reduction_prev=True path) not
    # implemented; this covers reduction_prev=False (ReLUConvBN on both inputs).
    def __init__(self, steps, multiplier, C_prev_prev, C_prev, C,
                 reduction_prev, key):
        assert not reduction_prev
        self._steps = steps
        self._multiplier = multiplier
        self._C = C
        k0, k1, k2 = jax.random.split(key, 3)
        self.pre0 = {"w": _conv_init(k0, (C_prev_prev, C)),
                     "gamma": jnp.ones((1, C), jnp.float32),
                     "beta": jnp.zeros((1, C), jnp.float32)}
        self.pre1 = {"w": _conv_init(k1, (C_prev, C)),
                     "gamma": jnp.ones((1, C), jnp.float32),
                     "beta": jnp.zeros((1, C), jnp.float32)}
        self._ops = []
        edge = 0
        for i in range(steps):
            row = []
            for _ in range(2 + i):
                ekey = jax.random.fold_in(k2, edge)
                row.append({prim: make_op_params(jax.random.fold_in(ekey, pidx), prim, C)
                            for pidx, prim in enumerate(PRIMITIVES)})
                edge += 1
            self._ops.append(row)

    def __call__(self, s0_nchw, s1_nchw, hardwts, indices):
        steps, mult, C = self._steps, self._multiplier, self._C
        N, _, H, W = s1_nchw.shape
        M = N * H * W                       # lane axis (128 here -> one vreg row)
        f32 = jnp.float32

        # NCHW (PyTorch) -> channel-major (C, N*H*W)
        s0m = jnp.transpose(s0_nchw.astype(f32), (1, 0, 2, 3)).reshape(-1, M)
        s1m = jnp.transpose(s1_nchw.astype(f32), (1, 0, 2, 3)).reshape(-1, M)

        tap_cache = {}

        def taps(k, d):
            if (k, d) not in tap_cache:
                tap_cache[(k, d)] = _tap_tables(N, H, W, k, d)
            return tap_cache[(k, d)]

        def aff_entry(g, b):
            return jnp.stack([g.reshape(C, 1), b.reshape(C, 1)])      # (2, C, 1)

        # Host-side packing into a handful of DMA-friendly slabs.  Architecture
        # (indices) is static Python; GDAS scale/offset (traced hardwts) is
        # folded into each edge's final BN affine (off the kernel hot path).
        wm_blocks, pw_list, aff_list, sc, plan = [], [], [], [], []
        aff_list.append(aff_entry(self.pre0["gamma"], self.pre0["beta"]))
        aff_list.append(aff_entry(self.pre1["gamma"], self.pre1["beta"]))
        wm_off = 0
        for i in range(steps):
            row = []
            for j in range(2 + i):
                idx = int(indices[i][j])
                prim = PRIMITIVES[idx]
                wts = hardwts[i][j]
                scale = wts[idx]
                offset = jnp.sum(wts) - scale          # sum of non-chosen hardwts
                sc.extend([scale, offset])
                p = self._ops[i][j][prim]
                spec = {"prim": prim}
                if prim in ("none", "skip_connect"):
                    pass                               # handled via SMEM scalars
                elif prim == "max_pool_3x3":
                    shifts, masks = taps(3, 1)
                    addm = jnp.where(masks > 0, 0.0, NEG_BIG)
                    wm_blocks.append(jnp.broadcast_to(addm[:, None, :], (9, C, M)))
                    spec.update(wm=wm_off, shifts=shifts, aff=len(aff_list))
                    wm_off += 9
                    aff_list.append(aff_entry(p["gamma"] * scale,
                                              p["beta"] * scale + offset))
                elif prim == "avg_pool_3x3":
                    shifts, masks = taps(3, 1)
                    inv_cnt = 1.0 / jnp.sum(masks, axis=0)   # count_include_pad=False
                    wm_blocks.append(jnp.broadcast_to(
                        (masks * inv_cnt)[:, None, :], (9, C, M)))
                    spec.update(wm=wm_off, shifts=shifts, aff=len(aff_list))
                    wm_off += 9
                    aff_list.append(aff_entry(p["gamma"] * scale,
                                              p["beta"] * scale + offset))
                elif prim.startswith("dil_conv"):
                    k = 3 if "3x3" in prim else 5
                    shifts, masks = taps(k, 2)
                    wm_blocks.append(p["wdw"][:, :, None] * masks[:, None, :])
                    spec.update(wm=wm_off, shifts=shifts,
                                aff=len(aff_list), pw=len(pw_list))
                    wm_off += k * k
                    pw_list.append(p["wpw"].T)
                    aff_list.append(aff_entry(p["gamma"] * scale,
                                              p["beta"] * scale + offset))
                else:                                  # sep_conv_3x3 / sep_conv_5x5
                    k = 3 if "3x3" in prim else 5
                    shifts, masks = taps(k, 1)
                    wm_blocks.append(p["wdw1"][:, :, None] * masks[:, None, :])
                    wm_blocks.append(p["wdw2"][:, :, None] * masks[:, None, :])
                    spec.update(wm=wm_off, shifts=shifts,
                                aff=len(aff_list), pw=len(pw_list))
                    wm_off += 2 * k * k
                    pw_list += [p["wpw1"].T, p["wpw2"].T]
                    aff_list.append(aff_entry(p["gamma1"], p["beta1"]))
                    aff_list.append(aff_entry(p["gamma2"] * scale,
                                              p["beta2"] * scale + offset))
                row.append(spec)
            plan.append(row)

        WM = (jnp.concatenate(wm_blocks, axis=0).astype(f32)
              if wm_blocks else jnp.zeros((1, C, M), f32))
        PW = (jnp.stack(pw_list).astype(f32)
              if pw_list else jnp.zeros((1, C, C), f32))
        AFF = jnp.stack(aff_list).astype(f32)          # (n_aff, 2, C, 1)
        SC = jnp.stack(sc).astype(f32)                 # SMEM (2*num_edges,)

        kernel = _build_cell_kernel(plan, steps, mult, C)
        out = pl.pallas_call(
            kernel,
            out_shape=jax.ShapeDtypeStruct((mult * C, M), f32),   # lane-dense store
            in_specs=[_VMEM] * 7 + [_SMEM],
            out_specs=_VMEM,
            compiler_params=pltpu.CompilerParams(
                vmem_limit_bytes=32 * 1024 * 1024),
        )(s0m, s1m, self.pre0["w"].T, self.pre1["w"].T, PW, WM, AFF, SC)

        # (mult*C, N*H*W) -> torch.cat(states[-mult:], dim=1) order in NCHW.
        return jnp.transpose(out.reshape(mult * C, N, H, W), (1, 0, 2, 3))


# ----------------------------------- demo -----------------------------------

if __name__ == "__main__":
    key = jax.random.PRNGKey(0)
    kx0, kx1, kw, kp = jax.random.split(key, 4)

    steps, multiplier = 3, 2
    N, H, W = 2, 8, 8
    C_prev_prev, C_prev, C = 8, 8, 8

    s0 = jax.random.normal(kx0, (N, C_prev_prev, H, W), jnp.float32)  # NCHW
    s1 = jax.random.normal(kx1, (N, C_prev, H, W), jnp.float32)       # NCHW

    num_edges = sum(2 + i for i in range(steps))
    logits = jax.random.normal(kw, (num_edges, len(PRIMITIVES)), jnp.float32)
    flat_w = jax.nn.softmax(logits, axis=-1)
    hardwts, off = [], 0
    for i in range(steps):
        hardwts.append([flat_w[off + j] for j in range(2 + i)])
        off += 2 + i
    # deterministic architecture exercising every primitive at least once
    indices = [[4, 6], [3, 1, 2], [0, 5, 7, 4]]

    cell = NormalCell(steps, multiplier, C_prev_prev, C_prev, C,
                      reduction_prev=False, key=kp)
    out = cell(s0, s1, hardwts, indices)
    jax.block_until_ready(out)
    assert out.shape == (N, multiplier * C, H, W)
    print("KERNEL_OK")
</pallas_src>

<mosaic_0001>
module attributes {stable_mosaic.version = 11 : i64} {
  func.func @kernel(%arg0: memref<8x128xf32, #tpu.memory_space<vmem>>, %arg1: memref<8x128xf32, #tpu.memory_space<vmem>>, %arg2: memref<8x8xf32, #tpu.memory_space<vmem>>, %arg3: memref<8x8xf32, #tpu.memory_space<vmem>>, %arg4: memref<8x8x8xf32, #tpu.memory_space<vmem>>, %arg5: memref<138x8x128xf32, #tpu.memory_space<vmem>>, %arg6: memref<12x2x8x1xf32, #tpu.memory_space<vmem>>, %arg7: memref<18xf32, #tpu.memory_space<smem>>, %arg8: memref<16x128xf32, #tpu.memory_space<vmem>>) attributes {dimension_semantics = [], scalar_prefetch = 0 : i64, scratch_operands = 0 : i64, tpu.core_type = #tpu.core_type<tc>} {
    %c0 = arith.constant 0 : index
    %c0_0 = arith.constant 0 : index
    %c0_1 = arith.constant 0 : index
    %c0_2 = arith.constant 0 : index
    %0 = vector.load %arg6[%c0, %c0_0, %c0_1, %c0_2] : memref<12x2x8x1xf32, #tpu.memory_space<vmem>>, vector<1x1x8x1xf32>
    %1 = vector.shape_cast %0 : vector<1x1x8x1xf32> to vector<8x1xf32>
    %c0_3 = arith.constant 0 : index
    %c1 = arith.constant 1 : index
    %c0_4 = arith.constant 0 : index
    %c0_5 = arith.constant 0 : index
    %2 = vector.load %arg6[%c0_3, %c1, %c0_4, %c0_5] : memref<12x2x8x1xf32, #tpu.memory_space<vmem>>, vector<1x1x8x1xf32>
    %3 = vector.shape_cast %2 : vector<1x1x8x1xf32> to vector<8x1xf32>
    %c1_6 = arith.constant 1 : index
    %c0_7 = arith.constant 0 : index
    %c0_8 = arith.constant 0 : index
    %c0_9 = arith.constant 0 : index
    %4 = vector.load %arg6[%c1_6, %c0_7, %c0_8, %c0_9] : memref<12x2x8x1xf32, #tpu.memory_space<vmem>>, vector<1x1x8x1xf32>
    %5 = vector.shape_cast %4 : vector<1x1x8x1xf32> to vector<8x1xf32>
    %c1_10 = arith.constant 1 : index
    %c1_11 = arith.constant 1 : index
    %c0_12 = arith.constant 0 : index
    %c0_13 = arith.constant 0 : index
    %6 = vector.load %arg6[%c1_10, %c1_11, %c0_12, %c0_13] : memref<12x2x8x1xf32, #tpu.memory_space<vmem>>, vector<1x1x8x1xf32>
    %7 = vector.shape_cast %6 : vector<1x1x8x1xf32> to vector<8x1xf32>
    %c0_14 = arith.constant 0 : index
    %c0_15 = arith.constant 0 : index
    %8 = vector.load %arg0[%c0_14, %c0_15] : memref<8x128xf32, #tpu.memory_space<vmem>>, vector<8x128xf32>
    %c0_16 = arith.constant 0 : index
    %c0_17 = arith.constant 0 : index
    %9 = vector.load %arg2[%c0_16, %c0_17] : memref<8x8xf32, #tpu.memory_space<vmem>>, vector<8x8xf32>
    %cst = arith.constant 0.000000e+00 : f32
    %10 = vector.broadcast %cst : f32 to vector<8x128xf32>
    %11 = arith.maximumf %8, %10 : vector<8x128xf32>
    %cst_18 = arith.constant dense<0.000000e+00> : vector<8x128xf32>
    %12 = tpu.matmul %9, %11, %cst_18 {dimension_numbers = #tpu.dot_dimension_numbers<[1], [0], [0], [1], [0, 0, 1, 1], [], []>} : vector<8x8xf32>, vector<8x128xf32>, vector<8x128xf32> -> vector<8x128xf32>
    %cst_19 = arith.constant dense<0.000000e+00> : vector<8xf32>
    %13 = vector.multi_reduction <add>, %12, %cst_19 [1] : vector<8x128xf32> to vector<8xf32>
    %14 = vector.shape_cast %13 : vector<8xf32> to vector<8x1xf32>
    %cst_20 = arith.constant 7.812500e-03 : f32
    %15 = vector.broadcast %cst_20 : f32 to vector<8x1xf32>
    %16 = arith.mulf %14, %15 : vector<8x1xf32>
    %17 = arith.mulf %12, %12 : vector<8x128xf32>
    %cst_21 = arith.constant dense<0.000000e+00> : vector<8xf32>
    %18 = vector.multi_reduction <add>, %17, %cst_21 [1] : vector<8x128xf32> to vector<8xf32>
    %19 = vector.shape_cast %18 : vector<8xf32> to vector<8x1xf32>
    %cst_22 = arith.constant 7.812500e-03 : f32
    %20 = vector.broadcast %cst_22 : f32 to vector<8x1xf32>
    %21 = arith.mulf %19, %20 : vector<8x1xf32>
    %22 = arith.mulf %16, %16 : vector<8x1xf32>
    %23 = arith.subf %21, %22 : vector<8x1xf32>
    %cst_23 = arith.constant 0.000000e+00 : f32
    %24 = vector.broadcast %cst_23 : f32 to vector<8x1xf32>
    %25 = arith.maximumf %23, %24 : vector<8x1xf32>
    %26 = vector.broadcast %16 : vector<8x1xf32> to vector<8x128xf32>
    %27 = arith.subf %12, %26 : vector<8x128xf32>
    %cst_24 = arith.constant 9.99999974E-6 : f32
    %28 = vector.broadcast %cst_24 : f32 to vector<8x1xf32>
    %29 = arith.addf %25, %28 : vector<8x1xf32>
    %30 = math.rsqrt %29 : vector<8x1xf32>
    %31 = vector.broadcast %30 : vector<8x1xf32> to vector<8x128xf32>
    %32 = arith.mulf %27, %31 : vector<8x128xf32>
    %33 = vector.broadcast %1 : vector<8x1xf32> to vector<8x128xf32>
    %34 = arith.mulf %32, %33 : vector<8x128xf32>
    %35 = vector.broadcast %3 : vector<8x1xf32> to vector<8x128xf32>
    %36 = arith.addf %34, %35 : vector<8x128xf32>
    %c0_25 = arith.constant 0 : index
    %c0_26 = arith.constant 0 : index
    %37 = vector.load %arg1[%c0_25, %c0_26] : memref<8x128xf32, #tpu.memory_space<vmem>>, vector<8x128xf32>
    %c0_27 = arith.constant 0 : index
    %c0_28 = arith.constant 0 : index
    %38 = vector.load %arg3[%c0_27, %c0_28] : memref<8x8xf32, #tpu.memory_space<vmem>>, vector<8x8xf32>
    %cst_29 = arith.constant 0.000000e+00 : f32
    %39 = vector.broadcast %cst_29 : f32 to vector<8x128xf32>
    %40 = arith.maximumf %37, %39 : vector<8x128xf32>
    %cst_30 = arith.constant dense<0.000000e+00> : vector<8x128xf32>
    %41 = tpu.matmul %38, %40, %cst_30 {dimension_numbers = #tpu.dot_dimension_numbers<[1], [0], [0], [1], [0, 0, 1, 1], [], []>} : vector<8x8xf32>, vector<8x128xf32>, vector<8x128xf32> -> vector<8x128xf32>
    %cst_31 = arith.constant dense<0.000000e+00> : vector<8xf32>
    %42 = vector.multi_reduction <add>, %41, %cst_31 [1] : vector<8x128xf32> to vector<8xf32>
    %43 = vector.shape_cast %42 : vector<8xf32> to vector<8x1xf32>
    %cst_32 = arith.constant 7.812500e-03 : f32
    %44 = vector.broadcast %cst_32 : f32 to vector<8x1xf32>
    %45 = arith.mulf %43, %44 : vector<8x1xf32>
    %46 = arith.mulf %41, %41 : vector<8x128xf32>
    %cst_33 = arith.constant dense<0.000000e+00> : vector<8xf32>
    %47 = vector.multi_reduction <add>, %46, %cst_33 [1] : vector<8x128xf32> to vector<8xf32>
    %48 = vector.shape_cast %47 : vector<8xf32> to vector<8x1xf32>
    %cst_34 = arith.constant 7.812500e-03 : f32
    %49 = vector.broadcast %cst_34 : f32 to vector<8x1xf32>
    %50 = arith.mulf %48, %49 : vector<8x1xf32>
    %51 = arith.mulf %45, %45 : vector<8x1xf32>
    %52 = arith.subf %50, %51 : vector<8x1xf32>
    %cst_35 = arith.constant 0.000000e+00 : f32
    %53 = vector.broadcast %cst_35 : f32 to vector<8x1xf32>
    %54 = arith.maximumf %52, %53 : vector<8x1xf32>
    %55 = vector.broadcast %45 : vector<8x1xf32> to vector<8x128xf32>
    %56 = arith.subf %41, %55 : vector<8x128xf32>
    %cst_36 = arith.constant 9.99999974E-6 : f32
    %57 = vector.broadcast %cst_36 : f32 to vector<8x1xf32>
    %58 = arith.addf %54, %57 : vector<8x1xf32>
    %59 = math.rsqrt %58 : vector<8x1xf32>
    %60 = vector.broadcast %59 : vector<8x1xf32> to vector<8x128xf32>
    %61 = arith.mulf %56, %60 : vector<8x128xf32>
    %62 = vector.broadcast %5 : vector<8x1xf32> to vector<8x128xf32>
    %63 = arith.mulf %61, %62 : vector<8x128xf32>
    %64 = vector.broadcast %7 : vector<8x1xf32> to vector<8x128xf32>
    %65 = arith.addf %63, %64 : vector<8x128xf32>
    %cst_37 = arith.constant 0.000000e+00 : f32
    %66 = vector.broadcast %cst_37 : f32 to vector<8x128xf32>
    %c2 = arith.constant 2 : index
    %c0_38 = arith.constant 0 : index
    %c0_39 = arith.constant 0 : index
    %c0_40 = arith.constant 0 : index
    %67 = vector.load %arg6[%c2, %c0_38, %c0_39, %c0_40] : memref<12x2x8x1xf32, #tpu.memory_space<vmem>>, vector<1x1x8x1xf32>
    %68 = vector.shape_cast %67 : vector<1x1x8x1xf32> to vector<8x1xf32>
    %c2_41 = arith.constant 2 : index
    %c1_42 = arith.constant 1 : index
    %c0_43 = arith.constant 0 : index
    %c0_44 = arith.constant 0 : index
    %69 = vector.load %arg6[%c2_41, %c1_42, %c0_43, %c0_44] : memref<12x2x8x1xf32, #tpu.memory_space<vmem>>, vector<1x1x8x1xf32>
    %70 = vector.shape_cast %69 : vector<1x1x8x1xf32> to vector<8x1xf32>
    %c3 = arith.constant 3 : index
    %c0_45 = arith.constant 0 : index
    %c0_46 = arith.constant 0 : index
    %c0_47 = arith.constant 0 : index
    %71 = vector.load %arg6[%c3, %c0_45, %c0_46, %c0_47] : memref<12x2x8x1xf32, #tpu.memory_space<vmem>>, vector<1x1x8x1xf32>
    %72 = vector.shape_cast %71 : vector<1x1x8x1xf32> to vector<8x1xf32>
    %c3_48 = arith.constant 3 : index
    %c1_49 = arith.constant 1 : index
    %c0_50 = arith.constant 0 : index
    %c0_51 = arith.constant 0 : index
    %73 = vector.load %arg6[%c3_48, %c1_49, %c0_50, %c0_51] : memref<12x2x8x1xf32, #tpu.memory_space<vmem>>, vector<1x1x8x1xf32>
    %74 = vector.shape_cast %73 : vector<1x1x8x1xf32> to vector<8x1xf32>
    %c0_52 = arith.constant 0 : index
    %c0_53 = arith.constant 0 : index
    %c0_54 = arith.constant 0 : index
    %75 = vector.load %arg4[%c0_52, %c0_53, %c0_54] : memref<8x8x8xf32, #tpu.memory_space<vmem>>, vector<1x8x8xf32>
    %76 = vector.shape_cast %75 : vector<1x8x8xf32> to vector<8x8xf32>
    %cst_55 = arith.constant 0.000000e+00 : f32
    %77 = vector.broadcast %cst_55 : f32 to vector<8x128xf32>
    %78 = arith.maximumf %36, %77 : vector<8x128xf32>
    %cst_56 = arith.constant 0.000000e+00 : f32
    %79 = vector.broadcast %cst_56 : f32 to vector<8x128xf32>
    %c9_i32 = arith.constant 9 : i32
    %80 = tpu.dynamic_rotate %78 by %c9_i32 dim 1 : vector<8x128xf32>, i32 -> vector<8x128xf32>
    %c0_57 = arith.constant 0 : index
    %c0_58 = arith.constant 0 : index
    %c0_59 = arith.constant 0 : index
    %81 = vector.load %arg5[%c0_57, %c0_58, %c0_59] : memref<138x8x128xf32, #tpu.memory_space<vmem>>, vector<1x8x128xf32>
    %82 = vector.shape_cast %81 : vector<1x8x128xf32> to vector<8x128xf32>
    %83 = arith.mulf %80, %82 : vector<8x128xf32>
    %84 = arith.addf %79, %83 : vector<8x128xf32>
    %c8_i32 = arith.constant 8 : i32
    %85 = tpu.dynamic_rotate %78 by %c8_i32 dim 1 : vector<8x128xf32>, i32 -> vector<8x128xf32>
    %c1_60 = arith.constant 1 : index
    %c0_61 = arith.constant 0 : index
    %c0_62 = arith.constant 0 : index
    %86 = vector.load %arg5[%c1_60, %c0_61, %c0_62] : memref<138x8x128xf32, #tpu.memory_space<vmem>>, vector<1x8x128xf32>
    %87 = vector.shape_cast %86 : vector<1x8x128xf32> to vector<8x128xf32>
    %88 = arith.mulf %85, %87 : vector<8x128xf32>
    %89 = arith.addf %84, %88 : vector<8x128xf32>
    %c7_i32 = arith.constant 7 : i32
    %90 = tpu.dynamic_rotate %78 by %c7_i32 dim 1 : vector<8x128xf32>, i32 -> vector<8x128xf32>
    %c2_63 = arith.constant 2 : index
    %c0_64 = arith.constant 0 : index
    %c0_65 = arith.constant 0 : index
    %91 = vector.load %arg5[%c2_63, %c0_64, %c0_65] : memref<138x8x128xf32, #tpu.memory_space<vmem>>, vector<1x8x128xf32>
    %92 = vector.shape_cast %91 : vector<1x8x128xf32> to vector<8x128xf32>
    %93 = arith.mulf %90, %92 : vector<8x128xf32>
    %94 = arith.addf %89, %93 : vector<8x128xf32>
    %c1_i32 = arith.constant 1 : i32
    %95 = tpu.dynamic_rotate %78 by %c1_i32 dim 1 : vector<8x128xf32>, i32 -> vector<8x128xf32>
    %c3_66 = arith.constant 3 : index
    %c0_67 = arith.constant 0 : index
    %c0_68 = arith.constant 0 : index
    %96 = vector.load %arg5[%c3_66, %c0_67, %c0_68] : memref<138x8x128xf32, #tpu.memory_space<vmem>>, vector<1x8x128xf32>
    %97 = vector.shape_cast %96 : vector<1x8x128xf32> to vector<8x128xf32>
    %98 = arith.mulf %95, %97 : vector<8x128xf32>
    %99 = arith.addf %94, %98 : vector<8x128xf32>
    %c4 = arith.constant 4 : index
    %c0_69 = arith.constant 0 : index
    %c0_70 = arith.constant 0 : index
    %100 = vector.load %arg5[%c4, %c0_69, %c0_70] : memref<138x8x128xf32, #tpu.memory_space<vmem>>, vector<1x8x128xf32>
    %101 = vector.shape_cast %100 : vector<1x8x128xf32> to vector<8x128xf32>
    %102 = arith.mulf %78, %101 : vector<8x128xf32>
    %103 = arith.addf %99, %102 : vector<8x128xf32>
    %c127_i32 = arith.constant 127 : i32
    %104 = tpu.dynamic_rotate %78 by %c127_i32 dim 1 : vector<8x128xf32>, i32 -> vector<8x128xf32>
    %c5 = arith.constant 5 : index
    %c0_71 = arith.constant 0 : index
    %c0_72 = arith.constant 0 : index
    %105 = vector.load %arg5[%c5, %c0_71, %c0_72] : memref<138x8x128xf32, #tpu.memory_space<vmem>>, vector<1x8x128xf32>
    %106 = vector.shape_cast %105 : vector<1x8x128xf32> to vector<8x128xf32>
    %107 = arith.mulf %104, %106 : vector<8x128xf32>
    %108 = arith.addf %103, %107 : vector<8x128xf32>
    %c121_i32 = arith.constant 121 : i32
    %109 = tpu.dynamic_rotate %78 by %c121_i32 dim 1 : vector<8x128xf32>, i32 -> vector<8x128xf32>
    %c6 = arith.constant 6 : index
    %c0_73 = arith.constant 0 : index
    %c0_74 = arith.constant 0 : index
    %110 = vector.load %arg5[%c6, %c0_73, %c0_74] : memref<138x8x128xf32, #tpu.memory_space<vmem>>, vector<1x8x128xf32>
    %111 = vector.shape_cast %110 : vector<1x8x128xf32> to vector<8x128xf32>
    %112 = arith.mulf %109, %111 : vector<8x128xf32>
    %113 = arith.addf %108, %112 : vector<8x128xf32>
    %c120_i32 = arith.constant 120 : i32
    %114 = tpu.dynamic_rotate %78 by %c120_i32 dim 1 : vector<8x128xf32>, i32 -> vector<8x128xf32>
    %c7 = arith.constant 7 : index
    %c0_75 = arith.constant 0 : index
    %c0_76 = arith.constant 0 : index
    %115 = vector.load %arg5[%c7, %c0_75, %c0_76] : memref<138x8x128xf32, #tpu.memory_space<vmem>>, vector<1x8x128xf32>
    %116 = vector.shape_cast %115 : vector<1x8x128xf32> to vector<8x128xf32>
    %117 = arith.mulf %114, %116 : vector<8x128xf32>
    %118 = arith.addf %113, %117 : vector<8x128xf32>
    %c119_i32 = arith.constant 119 : i32
    %119 = tpu.dynamic_rotate %78 by %c119_i32 dim 1 : vector<8x128xf32>, i32 -> vector<8x128xf32>
    %c8 = arith.constant 8 : index
    %c0_77 = arith.constant 0 : index
    %c0_78 = arith.constant 0 : index
    %120 = vector.load %arg5[%c8, %c0_77, %c0_78] : memref<138x8x128xf32, #tpu.memory_space<vmem>>, vector<1x8x128xf32>
    %121 = vector.shape_cast %120 : vector<1x8x128xf32> to vector<8x128xf32>
    %122 = arith.mulf %119, %121 : vector<8x128xf32>
    %123 = arith.addf %118, %122 : vector<8x128xf32>
    %cst_79 = arith.constant dense<0.000000e+00> : vector<8x128xf32>
    %124 = tpu.matmul %76, %123, %cst_79 {dimension_numbers = #tpu.dot_dimension_numbers<[1], [0], [0], [1], [0, 0, 1, 1], [], []>} : vector<8x8xf32>, vector<8x128xf32>, vector<8x128xf32> -> vector<8x128xf32>
    %cst_80 = arith.constant dense<0.000000e+00> : vector<8xf32>
    %125 = vector.multi_reduction <add>, %124, %cst_80 [1] : vector<8x128xf32> to vector<8xf32>
    %126 = vector.shape_cast %125 : vector<8xf32> to vector<8x1xf32>
    %cst_81 = arith.constant 7.812500e-03 : f32
    %127 = vector.broadcast %cst_81 : f32 to vector<8x1xf32>
    %128 = arith.mulf %126, %127 : vector<8x1xf32>
    %129 = arith.mulf %124, %124 : vector<8x128xf32>
    %cst_82 = arith.constant dense<0.000000e+00> : vector<8xf32>
    %130 = vector.multi_reduction <add>, %129, %cst_82 [1] : vector<8x128xf32> to vector<8xf32>
    %131 = vector.shape_cast %130 : vector<8xf32> to vector<8x1xf32>
    %cst_83 = arith.constant 7.812500e-03 : f32
    %132 = vector.broadcast %cst_83 : f32 to vector<8x1xf32>
    %133 = arith.mulf %131, %132 : vector<8x1xf32>
    %134 = arith.mulf %128, %128 : vector<8x1xf32>
    %135 = arith.subf %133, %134 : vector<8x1xf32>
    %cst_84 = arith.constant 0.000000e+00 : f32
    %136 = vector.broadcast %cst_84 : f32 to vector<8x1xf32>
    %137 = arith.maximumf %135, %136 : vector<8x1xf32>
    %138 = vector.broadcast %128 : vector<8x1xf32> to vector<8x128xf32>
    %139 = arith.subf %124, %138 : vector<8x128xf32>
    %cst_85 = arith.constant 9.99999974E-6 : f32
    %140 = vector.broadcast %cst_85 : f32 to vector<8x1xf32>
    %141 = arith.addf %137, %140 : vector<8x1xf32>
    %142 = math.rsqrt %141 : vector<8x1xf32>
    %143 = vector.broadcast %142 : vector<8x1xf32> to vector<8x128xf32>
    %144 = arith.mulf %139, %143 : vector<8x128xf32>
    %145 = vector.broadcast %68 : vector<8x1xf32> to vector<8x128xf32>
    %146 = arith.mulf %144, %145 : vector<8x128xf32>
    %147 = vector.broadcast %70 : vector<8x1xf32> to vector<8x128xf32>
    %148 = arith.addf %146, %147 : vector<8x128xf32>
    %c1_86 = arith.constant 1 : index
    %c0_87 = arith.constant 0 : index
    %c0_88 = arith.constant 0 : index
    %149 = vector.load %arg4[%c1_86, %c0_87, %c0_88] : memref<8x8x8xf32, #tpu.memory_space<vmem>>, vector<1x8x8xf32>
    %150 = vector.shape_cast %149 : vector<1x8x8xf32> to vector<8x8xf32>
    %cst_89 = arith.constant 0.000000e+00 : f32
    %151 = vector.broadcast %cst_89 : f32 to vector<8x128xf32>
    %152 = arith.maximumf %148, %151 : vector<8x128xf32>
    %cst_90 = arith.constant 0.000000e+00 : f32
    %153 = vector.broadcast %cst_90 : f32 to vector<8x128xf32>
    %c9_i32_91 = arith.constant 9 : i32
    %154 = tpu.dynamic_rotate %152 by %c9_i32_91 dim 1 : vector<8x128xf32>, i32 -> vector<8x128xf32>
    %c9 = arith.constant 9 : index
    %c0_92 = arith.constant 0 : index
    %c0_93 = arith.constant 0 : index
    %155 = vector.load %arg5[%c9, %c0_92, %c0_93] : memref<138x8x128xf32, #tpu.memory_space<vmem>>, vector<1x8x128xf32>
    %156 = vector.shape_cast %155 : vector<1x8x128xf32> to vector<8x128xf32>
    %157 = arith.mulf %154, %156 : vector<8x128xf32>
    %158 = arith.addf %153, %157 : vector<8x128xf32>
    %c8_i32_94 = arith.constant 8 : i32
    %159 = tpu.dynamic_rotate %152 by %c8_i32_94 dim 1 : vector<8x128xf32>, i32 -> vector<8x128xf32>
    %c10 = arith.constant 10 : index
    %c0_95 = arith.constant 0 : index
    %c0_96 = arith.constant 0 : index
    %160 = vector.load %arg5[%c10, %c0_95, %c0_96] : memref<138x8x128xf32, #tpu.memory_space<vmem>>, vector<1x8x128xf32>
    %161 = vector.shape_cast %160 : vector<1x8x128xf32> to vector<8x128xf32>
    %162 = arith.mulf %159, %161 : vector<8x128xf32>
    %163 = arith.addf %158, %162 : vector<8x128xf32>
    %c7_i32_97 = arith.constant 7 : i32
    %164 = tpu.dynamic_rotate %152 by %c7_i32_97 dim 1 : vector<8x128xf32>, i32 -> vector<8x128xf32>
    %c11 = arith.constant 11 : index
    %c0_98 = arith.constant 0 : index
    %c0_99 = arith.constant 0 : index
    %165 = vector.load %arg5[%c11, %c0_98, %c0_99] : memref<138x8x128xf32, #tpu.memory_space<vmem>>, vector<1x8x128xf32>
    %166 = vector.shape_cast %165 : vector<1x8x128xf32> to vector<8x128xf32>
    %167 = arith.mulf %164, %166 : vector<8x128xf32>
    %168 = arith.addf %163, %167 : vector<8x128xf32>
    %c1_i32_100 = arith.constant 1 : i32
    %169 = tpu.dynamic_rotate %152 by %c1_i32_100 dim 1 : vector<8x128xf32>, i32 -> vector<8x128xf32>
    %c12 = arith.constant 12 : index
    %c0_101 = arith.constant 0 : index
    %c0_102 = arith.constant 0 : index
    %170 = vector.load %arg5[%c12, %c0_101, %c0_102] : memref<138x8x128xf32, #tpu.memory_space<vmem>>, vector<1x8x128xf32>
    %171 = vector.shape_cast %170 : vector<1x8x128xf32> to vector<8x128xf32>
    %172 = arith.mulf %169, %171 : vector<8x128xf32>
    %173 = arith.addf %168, %172 : vector<8x128xf32>
    %c13 = arith.constant 13 : index
    %c0_103 = arith.constant 0 : index
    %c0_104 = arith.constant 0 : index
    %174 = vector.load %arg5[%c13, %c0_103, %c0_104] : memref<138x8x128xf32, #tpu.memory_space<vmem>>, vector<1x8x128xf32>
    %175 = vector.shape_cast %174 : vector<1x8x128xf32> to vector<8x128xf32>
    %176 = arith.mulf %152, %175 : vector<8x128xf32>
    %177 = arith.addf %173, %176 : vector<8x128xf32>
    %c127_i32_105 = arith.constant 127 : i32
    %178 = tpu.dynamic_rotate %152 by %c127_i32_105 dim 1 : vector<8x128xf32>, i32 -> vector<8x128xf32>
    %c14 = arith.constant 14 : index
    %c0_106 = arith.constant 0 : index
    %c0_107 = arith.constant 0 : index
    %179 = vector.load %arg5[%c14, %c0_106, %c0_107] : memref<138x8x128xf32, #tpu.memory_space<vmem>>, vector<1x8x128xf32>
    %180 = vector.shape_cast %179 : vector<1x8x128xf32> to vector<8x128xf32>
    %181 = arith.mulf %178, %180 : vector<8x128xf32>
    %182 = arith.addf %177, %181 : vector<8x128xf32>
    %c121_i32_108 = arith.constant 121 : i32
    %183 = tpu.dynamic_rotate %152 by %c121_i32_108 dim 1 : vector<8x128xf32>, i32 -> vector<8x128xf32>
    %c15 = arith.constant 15 : index
    %c0_109 = arith.constant 0 : index
    %c0_110 = arith.constant 0 : index
    %184 = vector.load %arg5[%c15, %c0_109, %c0_110] : memref<138x8x128xf32, #tpu.memory_space<vmem>>, vector<1x8x128xf32>
    %185 = vector.shape_cast %184 : vector<1x8x128xf32> to vector<8x128xf32>
    %186 = arith.mulf %183, %185 : vector<8x128xf32>
    %187 = arith.addf %182, %186 : vector<8x128xf32>
    %c120_i32_111 = arith.constant 120 : i32
    %188 = tpu.dynamic_rotate %152 by %c120_i32_111 dim 1 : vector<8x128xf32>, i32 -> vector<8x128xf32>
    %c16 = arith.constant 16 : index
    %c0_112 = arith.constant 0 : index
    %c0_113 = arith.constant 0 : index
    %189 = vector.load %arg5[%c16, %c0_112, %c0_113] : memref<138x8x128xf32, #tpu.memory_space<vmem>>, vector<1x8x128xf32>
    %190 = vector.shape_cast %189 : vector<1x8x128xf32> to vector<8x128xf32>
    %191 = arith.mulf %188, %190 : vector<8x128xf32>
    %192 = arith.addf %187, %191 : vector<8x128xf32>
    %c119_i32_114 = arith.constant 119 : i32
    %193 = tpu.dynamic_rotate %152 by %c119_i32_114 dim 1 : vector<8x128xf32>, i32 -> vector<8x128xf32>
    %c17 = arith.constant 17 : index
    %c0_115 = arith.constant 0 : index
    %c0_116 = arith.constant 0 : index
    %194 = vector.load %arg5[%c17, %c0_115, %c0_116] : memref<138x8x128xf32, #tpu.memory_space<vmem>>, vector<1x8x128xf32>
    %195 = vector.shape_cast %194 : vector<1x8x128xf32> to vector<8x128xf32>
    %196 = arith.mulf %193, %195 : vector<8x128xf32>
    %197 = arith.addf %192, %196 : vector<8x128xf32>
    %cst_117 = arith.constant dense<0.000000e+00> : vector<8x128xf32>
    %198 = tpu.matmul %150, %197, %cst_117 {dimension_numbers = #tpu.dot_dimension_numbers<[1], [0], [0], [1], [0, 0, 1, 1], [], []>} : vector<8x8xf32>, vector<8x128xf32>, vector<8x128xf32> -> vector<8x128xf32>
    %cst_118 = arith.constant dense<0.000000e+00> : vector<8xf32>
    %199 = vector.multi_reduction <add>, %198, %cst_118 [1] : vector<8x128xf32> to vector<8xf32>
    %200 = vector.shape_cast %199 : vector<8xf32> to vector<8x1xf32>
    %cst_119 = arith.constant 7.812500e-03 : f32
    %201 = vector.broadcast %cst_119 : f32 to vector<8x1xf32>
    %202 = arith.mulf %200, %201 : vector<8x1xf32>
    %203 = arith.mulf %198, %198 : vector<8x128xf32>
    %cst_120 = arith.constant dense<0.000000e+00> : vector<8xf32>
    %204 = vector.multi_reduction <add>, %203, %cst_120 [1] : vector<8x128xf32> to vector<8xf32>
    %205 = vector.shape_cast %204 : vector<8xf32> to vector<8x1xf32>
    %cst_121 = arith.constant 7.812500e-03 : f32
    %206 = vector.broadcast %cst_121 : f32 to vector<8x1xf32>
    %207 = arith.mulf %205, %206 : vector<8x1xf32>
    %208 = arith.mulf %202, %202 : vector<8x1xf32>
    %209 = arith.subf %207, %208 : vector<8x1xf32>
    %cst_122 = arith.constant 0.000000e+00 : f32
    %210 = vector.broadcast %cst_122 : f32 to vector<8x1xf32>
    %211 = arith.maximumf %209, %210 : vector<8x1xf32>
    %212 = vector.broadcast %202 : vector<8x1xf32> to vector<8x128xf32>
    %213 = arith.subf %198, %212 : vector<8x128xf32>
    %cst_123 = arith.constant 9.99999974E-6 : f32
    %214 = vector.broadcast %cst_123 : f32 to vector<8x1xf32>
    %215 = arith.addf %211, %214 : vector<8x1xf32>
    %216 = math.rsqrt %215 : vector<8x1xf32>
    %217 = vector.broadcast %216 : vector<8x1xf32> to vector<8x128xf32>
    %218 = arith.mulf %213, %217 : vector<8x128xf32>
    %219 = vector.broadcast %72 : vector<8x1xf32> to vector<8x128xf32>
    %220 = arith.mulf %218, %219 : vector<8x128xf32>
    %221 = vector.broadcast %74 : vector<8x1xf32> to vector<8x128xf32>
    %222 = arith.addf %220, %221 : vector<8x128xf32>
    %223 = arith.addf %66, %222 : vector<8x128xf32>
    %c4_124 = arith.constant 4 : index
    %c0_125 = arith.constant 0 : index
    %c0_126 = arith.constant 0 : index
    %c0_127 = arith.constant 0 : index
    %224 = vector.load %arg6[%c4_124, %c0_125, %c0_126, %c0_127] : memref<12x2x8x1xf32, #tpu.memory_space<vmem>>, vector<1x1x8x1xf32>
    %225 = vector.shape_cast %224 : vector<1x1x8x1xf32> to vector<8x1xf32>
    %c4_128 = arith.constant 4 : index
    %c1_129 = arith.constant 1 : index
    %c0_130 = arith.constant 0 : index
    %c0_131 = arith.constant 0 : index
    %226 = vector.load %arg6[%c4_128, %c1_129, %c0_130, %c0_131] : memref<12x2x8x1xf32, #tpu.memory_space<vmem>>, vector<1x1x8x1xf32>
    %227 = vector.shape_cast %226 : vector<1x1x8x1xf32> to vector<8x1xf32>
    %c2_132 = arith.constant 2 : index
    %c0_133 = arith.constant 0 : index
    %c0_134 = arith.constant 0 : index
    %228 = vector.load %arg4[%c2_132, %c0_133, %c0_134] : memref<8x8x8xf32, #tpu.memory_space<vmem>>, vector<1x8x8xf32>
    %229 = vector.shape_cast %228 : vector<1x8x8xf32> to vector<8x8xf32>
    %cst_135 = arith.constant 0.000000e+00 : f32
    %230 = vector.broadcast %cst_135 : f32 to vector<8x128xf32>
    %231 = arith.maximumf %65, %230 : vector<8x128xf32>
    %cst_136 = arith.constant 0.000000e+00 : f32
    %232 = vector.broadcast %cst_136 : f32 to vector<8x128xf32>
    %c18_i32 = arith.constant 18 : i32
    %233 = tpu.dynamic_rotate %231 by %c18_i32 dim 1 : vector<8x128xf32>, i32 -> vector<8x128xf32>
    %c18 = arith.constant 18 : index
    %c0_137 = arith.constant 0 : index
    %c0_138 = arith.constant 0 : index
    %234 = vector.load %arg5[%c18, %c0_137, %c0_138] : memref<138x8x128xf32, #tpu.memory_space<vmem>>, vector<1x8x128xf32>
    %235 = vector.shape_cast %234 : vector<1x8x128xf32> to vector<8x128xf32>
    %236 = arith.mulf %233, %235 : vector<8x128xf32>
    %237 = arith.addf %232, %236 : vector<8x128xf32>
    %c16_i32 = arith.constant 16 : i32
    %238 = tpu.dynamic_rotate %231 by %c16_i32 dim 1 : vector<8x128xf32>, i32 -> vector<8x128xf32>
    %c19 = arith.constant 19 : index
    %c0_139 = arith.constant 0 : index
    %c0_140 = arith.constant 0 : index
    %239 = vector.load %arg5[%c19, %c0_139, %c0_140] : memref<138x8x128xf32, #tpu.memory_space<vmem>>, vector<1x8x128xf32>
    %240 = vector.shape_cast %239 : vector<1x8x128xf32> to vector<8x128xf32>
    %241 = arith.mulf %238, %240 : vector<8x128xf32>
    %242 = arith.addf %237, %241 : vector<8x128xf32>
    %c14_i32 = arith.constant 14 : i32
    %243 = tpu.dynamic_rotate %231 by %c14_i32 dim 1 : vector<8x128xf32>, i32 -> vector<8x128xf32>
    %c20 = arith.constant 20 : index
    %c0_141 = arith.constant 0 : index
    %c0_142 = arith.constant 0 : index
    %244 = vector.load %arg5[%c20, %c0_141, %c0_142] : memref<138x8x128xf32, #tpu.memory_space<vmem>>, vector<1x8x128xf32>
    %245 = vector.shape_cast %244 : vector<1x8x128xf32> to vector<8x128xf32>
    %246 = arith.mulf %243, %245 : vector<8x128xf32>
    %247 = arith.addf %242, %246 : vector<8x128xf32>
    %c2_i32 = arith.constant 2 : i32
    %248 = tpu.dynamic_rotate %231 by %c2_i32 dim 1 : vector<8x128xf32>, i32 -> vector<8x128xf32>
    %c21 = arith.constant 21 : index
    %c0_143 = arith.constant 0 : index
    %c0_144 = arith.constant 0 : index
    %249 = vector.load %arg5[%c21, %c0_143, %c0_144] : memref<138x8x128xf32, #tpu.memory_space<vmem>>, vector<1x8x128xf32>
    %250 = vector.shape_cast %249 : vector<1x8x128xf32> to vector<8x128xf32>
    %251 = arith.mulf %248, %250 : vector<8x128xf32>
    %252 = arith.addf %247, %251 : vector<8x128xf32>
    %c22 = arith.constant 22 : index
    %c0_145 = arith.constant 0 : index
    %c0_146 = arith.constant 0 : index
    %253 = vector.load %arg5[%c22, %c0_145, %c0_146] : memref<138x8x128xf32, #tpu.memory_space<vmem>>, vector<1x8x128xf32>
    %254 = vector.shape_cast %253 : vector<1x8x128xf32> to vector<8x128xf32>
    %255 = arith.mulf %231, %254 : vector<8x128xf32>
    %256 = arith.addf %252, %255 : vector<8x128xf32>
    %c126_i32 = arith.constant 126 : i32
    %257 = tpu.dynamic_rotate %231 by %c126_i32 dim 1 : vector<8x128xf32>, i32 -> vector<8x128xf32>
    %c23 = arith.constant 23 : index
    %c0_147 = arith.constant 0 : index
    %c0_148 = arith.constant 0 : index
    %258 = vector.load %arg5[%c23, %c0_147, %c0_148] : memref<138x8x128xf32, #tpu.memory_space<vmem>>, vector<1x8x128xf32>
    %259 = vector.shape_cast %258 : vector<1x8x128xf32> to vector<8x128xf32>
    %260 = arith.mulf %257, %259 : vector<8x128xf32>
    %261 = arith.addf %256, %260 : vector<8x128xf32>
    %c114_i32 = arith.constant 114 : i32
    %262 = tpu.dynamic_rotate %231 by %c114_i32 dim 1 : vector<8x128xf32>, i32 -> vector<8x128xf32>
    %c24 = arith.constant 24 : index
    %c0_149 = arith.constant 0 : index
    %c0_150 = arith.constant 0 : index
    %263 = vector.load %arg5[%c24, %c0_149, %c0_150] : memref<138x8x128xf32, #tpu.memory_space<vmem>>, vector<1x8x128xf32>
    %264 = vector.shape_cast %263 : vector<1x8x128xf32> to vector<8x128xf32>
    %265 = arith.mulf %262, %264 : vector<8x128xf32>
    %266 = arith.addf %261, %265 : vector<8x128xf32>
    %c112_i32 = arith.constant 112 : i32
    %267 = tpu.dynamic_rotate %231 by %c112_i32 dim 1 : vector<8x128xf32>, i32 -> vector<8x128xf32>
    %c25 = arith.constant 25 : index
    %c0_151 = arith.constant 0 : index
    %c0_152 = arith.constant 0 : index
    %268 = vector.load %arg5[%c25, %c0_151, %c0_152] : memref<138x8x128xf32, #tpu.memory_space<vmem>>, vector<1x8x128xf32>
    %269 = vector.shape_cast %268 : vector<1x8x128xf32> to vector<8x128xf32>
    %270 = arith.mulf %267, %269 : vector<8x128xf32>
    %271 = arith.addf %266, %270 : vector<8x128xf32>
    %c110_i32 = arith.constant 110 : i32
    %272 = tpu.dynamic_rotate %231 by %c110_i32 dim 1 : vector<8x128xf32>, i32 -> vector<8x128xf32>
    %c26 = arith.constant 26 : index
    %c0_153 = arith.constant 0 : index
    %c0_154 = arith.constant 0 : index
    %273 = vector.load %arg5[%c26, %c0_153, %c0_154] : memref<138x8x128xf32, #tpu.memory_space<vmem>>, vector<1x8x128xf32>
    %274 = vector.shape_cast %273 : vector<1x8x128xf32> to vector<8x128xf32>
    %275 = arith.mulf %272, %274 : vector<8x128xf32>
    %276 = arith.addf %271, %275 : vector<8x128xf32>
    %cst_155 = arith.constant dense<0.000000e+00> : vector<8x128xf32>
    %277 = tpu.matmul %229, %276, %cst_155 {dimension_numbers = #tpu.dot_dimension_numbers<[1], [0], [0], [1], [0, 0, 1, 1], [], []>} : vector<8x8xf32>, vector<8x128xf32>, vector<8x128xf32> -> vector<8x128xf32>
    %cst_156 = arith.constant dense<0.000000e+00> : vector<8xf32>
    %278 = vector.multi_reduction <add>, %277, %cst_156 [1] : vector<8x128xf32> to vector<8xf32>
    %279 = vector.shape_cast %278 : vector<8xf32> to vector<8x1xf32>
    %cst_157 = arith.constant 7.812500e-03 : f32
    %280 = vector.broadcast %cst_157 : f32 to vector<8x1xf32>
    %281 = arith.mulf %279, %280 : vector<8x1xf32>
    %282 = arith.mulf %277, %277 : vector<8x128xf32>
    %cst_158 = arith.constant dense<0.000000e+00> : vector<8xf32>
    %283 = vector.multi_reduction <add>, %282, %cst_158 [1] : vector<8x128xf32> to vector<8xf32>
    %284 = vector.shape_cast %283 : vector<8xf32> to vector<8x1xf32>
    %cst_159 = arith.constant 7.812500e-03 : f32
    %285 = vector.broadcast %cst_159 : f32 to vector<8x1xf32>
    %286 = arith.mulf %284, %285 : vector<8x1xf32>
    %287 = arith.mulf %281, %281 : vector<8x1xf32>
    %288 = arith.subf %286, %287 : vector<8x1xf32>
    %cst_160 = arith.constant 0.000000e+00 : f32
    %289 = vector.broadcast %cst_160 : f32 to vector<8x1xf32>
    %290 = arith.maximumf %288, %289 : vector<8x1xf32>
    %291 = vector.broadcast %281 : vector<8x1xf32> to vector<8x128xf32>
    %292 = arith.subf %277, %291 : vector<8x128xf32>
    %cst_161 = arith.constant 9.99999974E-6 : f32
    %293 = vector.broadcast %cst_161 : f32 to vector<8x1xf32>
    %294 = arith.addf %290, %293 : vector<8x1xf32>
    %295 = math.rsqrt %294 : vector<8x1xf32>
    %296 = vector.broadcast %295 : vector<8x1xf32> to vector<8x128xf32>
    %297 = arith.mulf %292, %296 : vector<8x128xf32>
    %298 = vector.broadcast %225 : vector<8x1xf32> to vector<8x128xf32>
    %299 = arith.mulf %297, %298 : vector<8x128xf32>
    %300 = vector.broadcast %227 : vector<8x1xf32> to vector<8x128xf32>
    %301 = arith.addf %299, %300 : vector<8x128xf32>
    %302 = arith.addf %223, %301 : vector<8x128xf32>
    %cst_162 = arith.constant 0.000000e+00 : f32
    %303 = vector.broadcast %cst_162 : f32 to vector<8x128xf32>
    %c4_163 = arith.constant 4 : index
    %304 = memref.load %arg7[%c4_163] : memref<18xf32, #tpu.memory_space<smem>>
    %305 = vector.broadcast %304 : f32 to vector<8x128xf32>
    %306 = arith.mulf %36, %305 : vector<8x128xf32>
    %307 = arith.addf %303, %306 : vector<8x128xf32>
    %c5_164 = arith.constant 5 : index
    %308 = memref.load %arg7[%c5_164] : memref<18xf32, #tpu.memory_space<smem>>
    %309 = vector.broadcast %308 : f32 to vector<8x128xf32>
    %310 = arith.addf %307, %309 : vector<8x128xf32>
    %c5_165 = arith.constant 5 : index
    %c0_166 = arith.constant 0 : index
    %c0_167 = arith.constant 0 : index
    %c0_168 = arith.constant 0 : index
    %311 = vector.load %arg6[%c5_165, %c0_166, %c0_167, %c0_168] : memref<12x2x8x1xf32, #tpu.memory_space<vmem>>, vector<1x1x8x1xf32>
    %312 = vector.shape_cast %311 : vector<1x1x8x1xf32> to vector<8x1xf32>
    %c5_169 = arith.constant 5 : index
    %c1_170 = arith.constant 1 : index
    %c0_171 = arith.constant 0 : index
    %c0_172 = arith.constant 0 : index
    %313 = vector.load %arg6[%c5_169, %c1_170, %c0_171, %c0_172] : memref<12x2x8x1xf32, #tpu.memory_space<vmem>>, vector<1x1x8x1xf32>
    %314 = vector.shape_cast %313 : vector<1x1x8x1xf32> to vector<8x1xf32>
    %c9_i32_173 = arith.constant 9 : i32
    %315 = tpu.dynamic_rotate %65 by %c9_i32_173 dim 1 : vector<8x128xf32>, i32 -> vector<8x128xf32>
    %c27 = arith.constant 27 : index
    %c0_174 = arith.constant 0 : index
    %c0_175 = arith.constant 0 : index
    %316 = vector.load %arg5[%c27, %c0_174, %c0_175] : memref<138x8x128xf32, #tpu.memory_space<vmem>>, vector<1x8x128xf32>
    %317 = vector.shape_cast %316 : vector<1x8x128xf32> to vector<8x128xf32>
    %318 = arith.addf %315, %317 : vector<8x128xf32>
    %c8_i32_176 = arith.constant 8 : i32
    %319 = tpu.dynamic_rotate %65 by %c8_i32_176 dim 1 : vector<8x128xf32>, i32 -> vector<8x128xf32>
    %c28 = arith.constant 28 : index
    %c0_177 = arith.constant 0 : index
    %c0_178 = arith.constant 0 : index
    %320 = vector.load %arg5[%c28, %c0_177, %c0_178] : memref<138x8x128xf32, #tpu.memory_space<vmem>>, vector<1x8x128xf32>
    %321 = vector.shape_cast %320 : vector<1x8x128xf32> to vector<8x128xf32>
    %322 = arith.addf %319, %321 : vector<8x128xf32>
    %323 = arith.maximumf %318, %322 : vector<8x128xf32>
    %c7_i32_179 = arith.constant 7 : i32
    %324 = tpu.dynamic_rotate %65 by %c7_i32_179 dim 1 : vector<8x128xf32>, i32 -> vector<8x128xf32>
    %c29 = arith.constant 29 : index
    %c0_180 = arith.constant 0 : index
    %c0_181 = arith.constant 0 : index
    %325 = vector.load %arg5[%c29, %c0_180, %c0_181] : memref<138x8x128xf32, #tpu.memory_space<vmem>>, vector<1x8x128xf32>
    %326 = vector.shape_cast %325 : vector<1x8x128xf32> to vector<8x128xf32>
    %327 = arith.addf %324, %326 : vector<8x128xf32>
    %328 = arith.maximumf %323, %327 : vector<8x128xf32>
    %c1_i32_182 = arith.constant 1 : i32
    %329 = tpu.dynamic_rotate %65 by %c1_i32_182 dim 1 : vector<8x128xf32>, i32 -> vector<8x128xf32>
    %c30 = arith.constant 30 : index
    %c0_183 = arith.constant 0 : index
    %c0_184 = arith.constant 0 : index
    %330 = vector.load %arg5[%c30, %c0_183, %c0_184] : memref<138x8x128xf32, #tpu.memory_space<vmem>>, vector<1x8x128xf32>
    %331 = vector.shape_cast %330 : vector<1x8x128xf32> to vector<8x128xf32>
    %332 = arith.addf %329, %331 : vector<8x128xf32>
    %333 = arith.maximumf %328, %332 : vector<8x128xf32>
    %c31 = arith.constant 31 : index
    %c0_185 = arith.constant 0 : index
    %c0_186 = arith.constant 0 : index
    %334 = vector.load %arg5[%c31, %c0_185, %c0_186] : memref<138x8x128xf32, #tpu.memory_space<vmem>>, vector<1x8x128xf32>
    %335 = vector.shape_cast %334 : vector<1x8x128xf32> to vector<8x128xf32>
    %336 = arith.addf %65, %335 : vector<8x128xf32>
    %337 = arith.maximumf %333, %336 : vector<8x128xf32>
    %c127_i32_187 = arith.constant 127 : i32
    %338 = tpu.dynamic_rotate %65 by %c127_i32_187 dim 1 : vector<8x128xf32>, i32 -> vector<8x128xf32>
    %c32 = arith.constant 32 : index
    %c0_188 = arith.constant 0 : index
    %c0_189 = arith.constant 0 : index
    %339 = vector.load %arg5[%c32, %c0_188, %c0_189] : memref<138x8x128xf32, #tpu.memory_space<vmem>>, vector<1x8x128xf32>
    %340 = vector.shape_cast %339 : vector<1x8x128xf32> to vector<8x128xf32>
    %341 = arith.addf %338, %340 : vector<8x128xf32>
    %342 = arith.maximumf %337, %341 : vector<8x128xf32>
    %c121_i32_190 = arith.constant 121 : i32
    %343 = tpu.dynamic_rotate %65 by %c121_i32_190 dim 1 : vector<8x128xf32>, i32 -> vector<8x128xf32>
    %c33 = arith.constant 33 : index
    %c0_191 = arith.constant 0 : index
    %c0_192 = arith.constant 0 : index
    %344 = vector.load %arg5[%c33, %c0_191, %c0_192] : memref<138x8x128xf32, #tpu.memory_space<vmem>>, vector<1x8x128xf32>
    %345 = vector.shape_cast %344 : vector<1x8x128xf32> to vector<8x128xf32>
    %346 = arith.addf %343, %345 : vector<8x128xf32>
    %347 = arith.maximumf %342, %346 : vector<8x128xf32>
    %c120_i32_193 = arith.constant 120 : i32
    %348 = tpu.dynamic_rotate %65 by %c120_i32_193 dim 1 : vector<8x128xf32>, i32 -> vector<8x128xf32>
    %c34 = arith.constant 34 : index
    %c0_194 = arith.constant 0 : index
    %c0_195 = arith.constant 0 : index
    %349 = vector.load %arg5[%c34, %c0_194, %c0_195] : memref<138x8x128xf32, #tpu.memory_space<vmem>>, vector<1x8x128xf32>
    %350 = vector.shape_cast %349 : vector<1x8x128xf32> to vector<8x128xf32>
    %351 = arith.addf %348, %350 : vector<8x128xf32>
    %352 = arith.maximumf %347, %351 : vector<8x128xf32>
    %c119_i32_196 = arith.constant 119 : i32
    %353 = tpu.dynamic_rotate %65 by %c119_i32_196 dim 1 : vector<8x128xf32>, i32 -> vector<8x128xf32>
    %c35 = arith.constant 35 : index
    %c0_197 = arith.constant 0 : index
    %c0_198 = arith.constant 0 : index
    %354 = vector.load %arg5[%c35, %c0_197, %c0_198] : memref<138x8x128xf32, #tpu.memory_space<vmem>>, vector<1x8x128xf32>
    %355 = vector.shape_cast %354 : vector<1x8x128xf32> to vector<8x128xf32>
    %356 = arith.addf %353, %355 : vector<8x128xf32>
    %357 = arith.maximumf %352, %356 : vector<8x128xf32>
    %cst_199 = arith.constant dense<0.000000e+00> : vector<8xf32>
    %358 = vector.multi_reduction <add>, %357, %cst_199 [1] : vector<8x128xf32> to vector<8xf32>
    %359 = vector.shape_cast %358 : vector<8xf32> to vector<8x1xf32>
    %cst_200 = arith.constant 7.812500e-03 : f32
    %360 = vector.broadcast %cst_200 : f32 to vector<8x1xf32>
    %361 = arith.mulf %359, %360 : vector<8x1xf32>
    %362 = arith.mulf %357, %357 : vector<8x128xf32>
    %cst_201 = arith.constant dense<0.000000e+00> : vector<8xf32>
    %363 = vector.multi_reduction <add>, %362, %cst_201 [1] : vector<8x128xf32> to vector<8xf32>
    %364 = vector.shape_cast %363 : vector<8xf32> to vector<8x1xf32>
    %cst_202 = arith.constant 7.812500e-03 : f32
    %365 = vector.broadcast %cst_202 : f32 to vector<8x1xf32>
    %366 = arith.mulf %364, %365 : vector<8x1xf32>
    %367 = arith.mulf %361, %361 : vector<8x1xf32>
    %368 = arith.subf %366, %367 : vector<8x1xf32>
    %cst_203 = arith.constant 0.000000e+00 : f32
    %369 = vector.broadcast %cst_203 : f32 to vector<8x1xf32>
    %370 = arith.maximumf %368, %369 : vector<8x1xf32>
    %371 = vector.broadcast %361 : vector<8x1xf32> to vector<8x128xf32>
    %372 = arith.subf %357, %371 : vector<8x128xf32>
    %cst_204 = arith.constant 9.99999974E-6 : f32
    %373 = vector.broadcast %cst_204 : f32 to vector<8x1xf32>
    %374 = arith.addf %370, %373 : vector<8x1xf32>
    %375 = math.rsqrt %374 : vector<8x1xf32>
    %376 = vector.broadcast %375 : vector<8x1xf32> to vector<8x128xf32>
    %377 = arith.mulf %372, %376 : vector<8x128xf32>
    %378 = vector.broadcast %312 : vector<8x1xf32> to vector<8x128xf32>
    %379 = arith.mulf %377, %378 : vector<8x128xf32>
    %380 = vector.broadcast %314 : vector<8x1xf32> to vector<8x128xf32>
    %381 = arith.addf %379, %380 : vector<8x128xf32>
    %382 = arith.addf %310, %381 : vector<8x128xf32>
    %c6_205 = arith.constant 6 : index
    %c0_206 = arith.constant 0 : index
    %c0_207 = arith.constant 0 : index
    %c0_208 = arith.constant 0 : index
    %383 = vector.load %arg6[%c6_205, %c0_206, %c0_207, %c0_208] : memref<12x2x8x1xf32, #tpu.memory_space<vmem>>, vector<1x1x8x1xf32>
    %384 = vector.shape_cast %383 : vector<1x1x8x1xf32> to vector<8x1xf32>
    %c6_209 = arith.constant 6 : index
    %c1_210 = arith.constant 1 : index
    %c0_211 = arith.constant 0 : index
    %c0_212 = arith.constant 0 : index
    %385 = vector.load %arg6[%c6_209, %c1_210, %c0_211, %c0_212] : memref<12x2x8x1xf32, #tpu.memory_space<vmem>>, vector<1x1x8x1xf32>
    %386 = vector.shape_cast %385 : vector<1x1x8x1xf32> to vector<8x1xf32>
    %cst_213 = arith.constant 0.000000e+00 : f32
    %387 = vector.broadcast %cst_213 : f32 to vector<8x128xf32>
    %c9_i32_214 = arith.constant 9 : i32
    %388 = tpu.dynamic_rotate %302 by %c9_i32_214 dim 1 : vector<8x128xf32>, i32 -> vector<8x128xf32>
    %c36 = arith.constant 36 : index
    %c0_215 = arith.constant 0 : index
    %c0_216 = arith.constant 0 : index
    %389 = vector.load %arg5[%c36, %c0_215, %c0_216] : memref<138x8x128xf32, #tpu.memory_space<vmem>>, vector<1x8x128xf32>
    %390 = vector.shape_cast %389 : vector<1x8x128xf32> to vector<8x128xf32>
    %391 = arith.mulf %388, %390 : vector<8x128xf32>
    %392 = arith.addf %387, %391 : vector<8x128xf32>
    %c8_i32_217 = arith.constant 8 : i32
    %393 = tpu.dynamic_rotate %302 by %c8_i32_217 dim 1 : vector<8x128xf32>, i32 -> vector<8x128xf32>
    %c37 = arith.constant 37 : index
    %c0_218 = arith.constant 0 : index
    %c0_219 = arith.constant 0 : index
    %394 = vector.load %arg5[%c37, %c0_218, %c0_219] : memref<138x8x128xf32, #tpu.memory_space<vmem>>, vector<1x8x128xf32>
    %395 = vector.shape_cast %394 : vector<1x8x128xf32> to vector<8x128xf32>
    %396 = arith.mulf %393, %395 : vector<8x128xf32>
    %397 = arith.addf %392, %396 : vector<8x128xf32>
    %c7_i32_220 = arith.constant 7 : i32
    %398 = tpu.dynamic_rotate %302 by %c7_i32_220 dim 1 : vector<8x128xf32>, i32 -> vector<8x128xf32>
    %c38 = arith.constant 38 : index
    %c0_221 = arith.constant 0 : index
    %c0_222 = arith.constant 0 : index
    %399 = vector.load %arg5[%c38, %c0_221, %c0_222] : memref<138x8x128xf32, #tpu.memory_space<vmem>>, vector<1x8x128xf32>
    %400 = vector.shape_cast %399 : vector<1x8x128xf32> to vector<8x128xf32>
    %401 = arith.mulf %398, %400 : vector<8x128xf32>
    %402 = arith.addf %397, %401 : vector<8x128xf32>
    %c1_i32_223 = arith.constant 1 : i32
    %403 = tpu.dynamic_rotate %302 by %c1_i32_223 dim 1 : vector<8x128xf32>, i32 -> vector<8x128xf32>
    %c39 = arith.constant 39 : index
    %c0_224 = arith.constant 0 : index
    %c0_225 = arith.constant 0 : index
    %404 = vector.load %arg5[%c39, %c0_224, %c0_225] : memref<138x8x128xf32, #tpu.memory_space<vmem>>, vector<1x8x128xf32>
    %405 = vector.shape_cast %404 : vector<1x8x128xf32> to vector<8x128xf32>
    %406 = arith.mulf %403, %405 : vector<8x128xf32>
    %407 = arith.addf %402, %406 : vector<8x128xf32>
    %c40 = arith.constant 40 : index
    %c0_226 = arith.constant 0 : index
    %c0_227 = arith.constant 0 : index
    %408 = vector.load %arg5[%c40, %c0_226, %c0_227] : memref<138x8x128xf32, #tpu.memory_space<vmem>>, vector<1x8x128xf32>
    %409 = vector.shape_cast %408 : vector<1x8x128xf32> to vector<8x128xf32>
    %410 = arith.mulf %302, %409 : vector<8x128xf32>
    %411 = arith.addf %407, %410 : vector<8x128xf32>
    %c127_i32_228 = arith.constant 127 : i32
    %412 = tpu.dynamic_rotate %302 by %c127_i32_228 dim 1 : vector<8x128xf32>, i32 -> vector<8x128xf32>
    %c41 = arith.constant 41 : index
    %c0_229 = arith.constant 0 : index
    %c0_230 = arith.constant 0 : index
    %413 = vector.load %arg5[%c41, %c0_229, %c0_230] : memref<138x8x128xf32, #tpu.memory_space<vmem>>, vector<1x8x128xf32>
    %414 = vector.shape_cast %413 : vector<1x8x128xf32> to vector<8x128xf32>
    %415 = arith.mulf %412, %414 : vector<8x128xf32>
    %416 = arith.addf %411, %415 : vector<8x128xf32>
    %c121_i32_231 = arith.constant 121 : i32
    %417 = tpu.dynamic_rotate %302 by %c121_i32_231 dim 1 : vector<8x128xf32>, i32 -> vector<8x128xf32>
    %c42 = arith.constant 42 : index
    %c0_232 = arith.constant 0 : index
    %c0_233 = arith.constant 0 : index
    %418 = vector.load %arg5[%c42, %c0_232, %c0_233] : memref<138x8x128xf32, #tpu.memory_space<vmem>>, vector<1x8x128xf32>
    %419 = vector.shape_cast %418 : vector<1x8x128xf32> to vector<8x128xf32>
    %420 = arith.mulf %417, %419 : vector<8x128xf32>
    %421 = arith.addf %416, %420 : vector<8x128xf32>
    %c120_i32_234 = arith.constant 120 : i32
    %422 = tpu.dynamic_rotate %302 by %c120_i32_234 dim 1 : vector<8x128xf32>, i32 -> vector<8x128xf32>
    %c43 = arith.constant 43 : index
    %c0_235 = arith.constant 0 : index
    %c0_236 = arith.constant 0 : index
    %423 = vector.load %arg5[%c43, %c0_235, %c0_236] : memref<138x8x128xf32, #tpu.memory_space<vmem>>, vector<1x8x128xf32>
    %424 = vector.shape_cast %423 : vector<1x8x128xf32> to vector<8x128xf32>
    %425 = arith.mulf %422, %424 : vector<8x128xf32>
    %426 = arith.addf %421, %425 : vector<8x128xf32>
    %c119_i32_237 = arith.constant 119 : i32
    %427 = tpu.dynamic_rotate %302 by %c119_i32_237 dim 1 : vector<8x128xf32>, i32 -> vector<8x128xf32>
    %c44 = arith.constant 44 : index
    %c0_238 = arith.constant 0 : index
    %c0_239 = arith.constant 0 : index
    %428 = vector.load %arg5[%c44, %c0_238, %c0_239] : memref<138x8x128xf32, #tpu.memory_space<vmem>>, vector<1x8x128xf32>
    %429 = vector.shape_cast %428 : vector<1x8x128xf32> to vector<8x128xf32>
    %430 = arith.mulf %427, %429 : vector<8x128xf32>
    %431 = arith.addf %426, %430 : vector<8x128xf32>
    %cst_240 = arith.constant dense<0.000000e+00> : vector<8xf32>
    %432 = vector.multi_reduction <add>, %431, %cst_240 [1] : vector<8x128xf32> to vector<8xf32>
    %433 = vector.shape_cast %432 : vector<8xf32> to vector<8x1xf32>
    %cst_241 = arith.constant 7.812500e-03 : f32
    %434 = vector.broadcast %cst_241 : f32 to vector<8x1xf32>
    %435 = arith.mulf %433, %434 : vector<8x1xf32>
    %436 = arith.mulf %431, %431 : vector<8x128xf32>
    %cst_242 = arith.constant dense<0.000000e+00> : vector<8xf32>
    %437 = vector.multi_reduction <add>, %436, %cst_242 [1] : vector<8x128xf32> to vector<8xf32>
    %438 = vector.shape_cast %437 : vector<8xf32> to vector<8x1xf32>
    %cst_243 = arith.constant 7.812500e-03 : f32
    %439 = vector.broadcast %cst_243 : f32 to vector<8x1xf32>
    %440 = arith.mulf %438, %439 : vector<8x1xf32>
    %441 = arith.mulf %435, %435 : vector<8x1xf32>
    %442 = arith.subf %440, %441 : vector<8x1xf32>
    %cst_244 = arith.constant 0.000000e+00 : f32
    %443 = vector.broadcast %cst_244 : f32 to vector<8x1xf32>
    %444 = arith.maximumf %442, %443 : vector<8x1xf32>
    %445 = vector.broadcast %435 : vector<8x1xf32> to vector<8x128xf32>
    %446 = arith.subf %431, %445 : vector<8x128xf32>
    %cst_245 = arith.constant 9.99999974E-6 : f32
    %447 = vector.broadcast %cst_245 : f32 to vector<8x1xf32>
    %448 = arith.addf %444, %447 : vector<8x1xf32>
    %449 = math.rsqrt %448 : vector<8x1xf32>
    %450 = vector.broadcast %449 : vector<8x1xf32> to vector<8x128xf32>
    %451 = arith.mulf %446, %450 : vector<8x128xf32>
    %452 = vector.broadcast %384 : vector<8x1xf32> to vector<8x128xf32>
    %453 = arith.mulf %451, %452 : vector<8x128xf32>
    %454 = vector.broadcast %386 : vector<8x1xf32> to vector<8x128xf32>
    %455 = arith.addf %453, %454 : vector<8x128xf32>
    %456 = arith.addf %382, %455 : vector<8x128xf32>
    %cst_246 = arith.constant 0.000000e+00 : f32
    %457 = vector.broadcast %cst_246 : f32 to vector<8x128xf32>
    %c11_247 = arith.constant 11 : index
    %458 = memref.load %arg7[%c11_247] : memref<18xf32, #tpu.memory_space<smem>>
    %459 = vector.broadcast %458 : f32 to vector<8x128xf32>
    %460 = arith.addf %457, %459 : vector<8x128xf32>
    %c7_248 = arith.constant 7 : index
    %c0_249 = arith.constant 0 : index
    %c0_250 = arith.constant 0 : index
    %c0_251 = arith.constant 0 : index
    %461 = vector.load %arg6[%c7_248, %c0_249, %c0_250, %c0_251] : memref<12x2x8x1xf32, #tpu.memory_space<vmem>>, vector<1x1x8x1xf32>
    %462 = vector.shape_cast %461 : vector<1x1x8x1xf32> to vector<8x1xf32>
    %c7_252 = arith.constant 7 : index
    %c1_253 = arith.constant 1 : index
    %c0_254 = arith.constant 0 : index
    %c0_255 = arith.constant 0 : index
    %463 = vector.load %arg6[%c7_252, %c1_253, %c0_254, %c0_255] : memref<12x2x8x1xf32, #tpu.memory_space<vmem>>, vector<1x1x8x1xf32>
    %464 = vector.shape_cast %463 : vector<1x1x8x1xf32> to vector<8x1xf32>
    %c8_256 = arith.constant 8 : index
    %c0_257 = arith.constant 0 : index
    %c0_258 = arith.constant 0 : index
    %c0_259 = arith.constant 0 : index
    %465 = vector.load %arg6[%c8_256, %c0_257, %c0_258, %c0_259] : memref<12x2x8x1xf32, #tpu.memory_space<vmem>>, vector<1x1x8x1xf32>
    %466 = vector.shape_cast %465 : vector<1x1x8x1xf32> to vector<8x1xf32>
    %c8_260 = arith.constant 8 : index
    %c1_261 = arith.constant 1 : index
    %c0_262 = arith.constant 0 : index
    %c0_263 = arith.constant 0 : index
    %467 = vector.load %arg6[%c8_260, %c1_261, %c0_262, %c0_263] : memref<12x2x8x1xf32, #tpu.memory_space<vmem>>, vector<1x1x8x1xf32>
    %468 = vector.shape_cast %467 : vector<1x1x8x1xf32> to vector<8x1xf32>
    %c3_264 = arith.constant 3 : index
    %c0_265 = arith.constant 0 : index
    %c0_266 = arith.constant 0 : index
    %469 = vector.load %arg4[%c3_264, %c0_265, %c0_266] : memref<8x8x8xf32, #tpu.memory_space<vmem>>, vector<1x8x8xf32>
    %470 = vector.shape_cast %469 : vector<1x8x8xf32> to vector<8x8xf32>
    %cst_267 = arith.constant 0.000000e+00 : f32
    %471 = vector.broadcast %cst_267 : f32 to vector<8x128xf32>
    %472 = arith.maximumf %65, %471 : vector<8x128xf32>
    %cst_268 = arith.constant 0.000000e+00 : f32
    %473 = vector.broadcast %cst_268 : f32 to vector<8x128xf32>
    %c18_i32_269 = arith.constant 18 : i32
    %474 = tpu.dynamic_rotate %472 by %c18_i32_269 dim 1 : vector<8x128xf32>, i32 -> vector<8x128xf32>
    %c45 = arith.constant 45 : index
    %c0_270 = arith.constant 0 : index
    %c0_271 = arith.constant 0 : index
    %475 = vector.load %arg5[%c45, %c0_270, %c0_271] : memref<138x8x128xf32, #tpu.memory_space<vmem>>, vector<1x8x128xf32>
    %476 = vector.shape_cast %475 : vector<1x8x128xf32> to vector<8x128xf32>
    %477 = arith.mulf %474, %476 : vector<8x128xf32>
    %478 = arith.addf %473, %477 : vector<8x128xf32>
    %c17_i32 = arith.constant 17 : i32
    %479 = tpu.dynamic_rotate %472 by %c17_i32 dim 1 : vector<8x128xf32>, i32 -> vector<8x128xf32>
    %c46 = arith.constant 46 : index
    %c0_272 = arith.constant 0 : index
    %c0_273 = arith.constant 0 : index
    %480 = vector.load %arg5[%c46, %c0_272, %c0_273] : memref<138x8x128xf32, #tpu.memory_space<vmem>>, vector<1x8x128xf32>
    %481 = vector.shape_cast %480 : vector<1x8x128xf32> to vector<8x128xf32>
    %482 = arith.mulf %479, %481 : vector<8x128xf32>
    %483 = arith.addf %478, %482 : vector<8x128xf32>
    %c16_i32_274 = arith.constant 16 : i32
    %484 = tpu.dynamic_rotate %472 by %c16_i32_274 dim 1 : vector<8x128xf32>, i32 -> vector<8x128xf32>
    %c47 = arith.constant 47 : index
    %c0_275 = arith.constant 0 : index
    %c0_276 = arith.constant 0 : index
    %485 = vector.load %arg5[%c47, %c0_275, %c0_276] : memref<138x8x128xf32, #tpu.memory_space<vmem>>, vector<1x8x128xf32>
    %486 = vector.shape_cast %485 : vector<1x8x128xf32> to vector<8x128xf32>
    %487 = arith.mulf %484, %486 : vector<8x128xf32>
    %488 = arith.addf %483, %487 : vector<8x128xf32>
    %c15_i32 = arith.constant 15 : i32
    %489 = tpu.dynamic_rotate %472 by %c15_i32 dim 1 : vector<8x128xf32>, i32 -> vector<8x128xf32>
    %c48 = arith.constant 48 : index
    %c0_277 = arith.constant 0 : index
    %c0_278 = arith.constant 0 : index
    %490 = vector.load %arg5[%c48, %c0_277, %c0_278] : memref<138x8x128xf32, #tpu.memory_space<vmem>>, vector<1x8x128xf32>
    %491 = vector.shape_cast %490 : vector<1x8x128xf32> to vector<8x128xf32>
    %492 = arith.mulf %489, %491 : vector<8x128xf32>
    %493 = arith.addf %488, %492 : vector<8x128xf32>
    %c14_i32_279 = arith.constant 14 : i32
    %494 = tpu.dynamic_rotate %472 by %c14_i32_279 dim 1 : vector<8x128xf32>, i32 -> vector<8x128xf32>
    %c49 = arith.constant 49 : index
    %c0_280 = arith.constant 0 : index
    %c0_281 = arith.constant 0 : index
    %495 = vector.load %arg5[%c49, %c0_280, %c0_281] : memref<138x8x128xf32, #tpu.memory_space<vmem>>, vector<1x8x128xf32>
    %496 = vector.shape_cast %495 : vector<1x8x128xf32> to vector<8x128xf32>
    %497 = arith.mulf %494, %496 : vector<8x128xf32>
    %498 = arith.addf %493, %497 : vector<8x128xf32>
    %c10_i32 = arith.constant 10 : i32
    %499 = tpu.dynamic_rotate %472 by %c10_i32 dim 1 : vector<8x128xf32>, i32 -> vector<8x128xf32>
    %c50 = arith.constant 50 : index
    %c0_282 = arith.constant 0 : index
    %c0_283 = arith.constant 0 : index
    %500 = vector.load %arg5[%c50, %c0_282, %c0_283] : memref<138x8x128xf32, #tpu.memory_space<vmem>>, vector<1x8x128xf32>
    %501 = vector.shape_cast %500 : vector<1x8x128xf32> to vector<8x128xf32>
    %502 = arith.mulf %499, %501 : vector<8x128xf32>
    %503 = arith.addf %498, %502 : vector<8x128xf32>
    %c9_i32_284 = arith.constant 9 : i32
    %504 = tpu.dynamic_rotate %472 by %c9_i32_284 dim 1 : vector<8x128xf32>, i32 -> vector<8x128xf32>
    %c51 = arith.constant 51 : index
    %c0_285 = arith.constant 0 : index
    %c0_286 = arith.constant 0 : index
    %505 = vector.load %arg5[%c51, %c0_285, %c0_286] : memref<138x8x128xf32, #tpu.memory_space<vmem>>, vector<1x8x128xf32>
    %506 = vector.shape_cast %505 : vector<1x8x128xf32> to vector<8x128xf32>
    %507 = arith.mulf %504, %506 : vector<8x128xf32>
    %508 = arith.addf %503, %507 : vector<8x128xf32>
    %c8_i32_287 = arith.constant 8 : i32
    %509 = tpu.dynamic_rotate %472 by %c8_i32_287 dim 1 : vector<8x128xf32>, i32 -> vector<8x128xf32>
    %c52 = arith.constant 52 : index
    %c0_288 = arith.constant 0 : index
    %c0_289 = arith.constant 0 : index
    %510 = vector.load %arg5[%c52, %c0_288, %c0_289] : memref<138x8x128xf32, #tpu.memory_space<vmem>>, vector<1x8x128xf32>
    %511 = vector.shape_cast %510 : vector<1x8x128xf32> to vector<8x128xf32>
    %512 = arith.mulf %509, %511 : vector<8x128xf32>
    %513 = arith.addf %508, %512 : vector<8x128xf32>
    %c7_i32_290 = arith.constant 7 : i32
    %514 = tpu.dynamic_rotate %472 by %c7_i32_290 dim 1 : vector<8x128xf32>, i32 -> vector<8x128xf32>
    %c53 = arith.constant 53 : index
    %c0_291 = arith.constant 0 : index
    %c0_292 = arith.constant 0 : index
    %515 = vector.load %arg5[%c53, %c0_291, %c0_292] : memref<138x8x128xf32, #tpu.memory_space<vmem>>, vector<1x8x128xf32>
    %516 = vector.shape_cast %515 : vector<1x8x128xf32> to vector<8x128xf32>
    %517 = arith.mulf %514, %516 : vector<8x128xf32>
    %518 = arith.addf %513, %517 : vector<8x128xf32>
    %c6_i32 = arith.constant 6 : i32
    %519 = tpu.dynamic_rotate %472 by %c6_i32 dim 1 : vector<8x128xf32>, i32 -> vector<8x128xf32>
    %c54 = arith.constant 54 : index
    %c0_293 = arith.constant 0 : index
    %c0_294 = arith.constant 0 : index
    %520 = vector.load %arg5[%c54, %c0_293, %c0_294] : memref<138x8x128xf32, #tpu.memory_space<vmem>>, vector<1x8x128xf32>
    %521 = vector.shape_cast %520 : vector<1x8x128xf32> to vector<8x128xf32>
    %522 = arith.mulf %519, %521 : vector<8x128xf32>
    %523 = arith.addf %518, %522 : vector<8x128xf32>
    %c2_i32_295 = arith.constant 2 : i32
    %524 = tpu.dynamic_rotate %472 by %c2_i32_295 dim 1 : vector<8x128xf32>, i32 -> vector<8x128xf32>
    %c55 = arith.constant 55 : index
    %c0_296 = arith.constant 0 : index
    %c0_297 = arith.constant 0 : index
    %525 = vector.load %arg5[%c55, %c0_296, %c0_297] : memref<138x8x128xf32, #tpu.memory_space<vmem>>, vector<1x8x128xf32>
    %526 = vector.shape_cast %525 : vector<1x8x128xf32> to vector<8x128xf32>
    %527 = arith.mulf %524, %526 : vector<8x128xf32>
    %528 = arith.addf %523, %527 : vector<8x128xf32>
    %c1_i32_298 = arith.constant 1 : i32
    %529 = tpu.dynamic_rotate %472 by %c1_i32_298 dim 1 : vector<8x128xf32>, i32 -> vector<8x128xf32>
    %c56 = arith.constant 56 : index
    %c0_299 = arith.constant 0 : index
    %c0_300 = arith.constant 0 : index
    %530 = vector.load %arg5[%c56, %c0_299, %c0_300] : memref<138x8x128xf32, #tpu.memory_space<vmem>>, vector<1x8x128xf32>
    %531 = vector.shape_cast %530 : vector<1x8x128xf32> to vector<8x128xf32>
    %532 = arith.mulf %529, %531 : vector<8x128xf32>
    %533 = arith.addf %528, %532 : vector<8x128xf32>
    %c57 = arith.constant 57 : index
    %c0_301 = arith.constant 0 : index
    %c0_302 = arith.constant 0 : index
    %534 = vector.load %arg5[%c57, %c0_301, %c0_302] : memref<138x8x128xf32, #tpu.memory_space<vmem>>, vector<1x8x128xf32>
    %535 = vector.shape_cast %534 : vector<1x8x128xf32> to vector<8x128xf32>
    %536 = arith.mulf %472, %535 : vector<8x128xf32>
    %537 = arith.addf %533, %536 : vector<8x128xf32>
    %c127_i32_303 = arith.constant 127 : i32
    %538 = tpu.dynamic_rotate %472 by %c127_i32_303 dim 1 : vector<8x128xf32>, i32 -> vector<8x128xf32>
    %c58 = arith.constant 58 : index
    %c0_304 = arith.constant 0 : index
    %c0_305 = arith.constant 0 : index
    %539 = vector.load %arg5[%c58, %c0_304, %c0_305] : memref<138x8x128xf32, #tpu.memory_space<vmem>>, vector<1x8x128xf32>
    %540 = vector.shape_cast %539 : vector<1x8x128xf32> to vector<8x128xf32>
    %541 = arith.mulf %538, %540 : vector<8x128xf32>
    %542 = arith.addf %537, %541 : vector<8x128xf32>
    %c126_i32_306 = arith.constant 126 : i32
    %543 = tpu.dynamic_rotate %472 by %c126_i32_306 dim 1 : vector<8x128xf32>, i32 -> vector<8x128xf32>
    %c59 = arith.constant 59 : index
    %c0_307 = arith.constant 0 : index
    %c0_308 = arith.constant 0 : index
    %544 = vector.load %arg5[%c59, %c0_307, %c0_308] : memref<138x8x128xf32, #tpu.memory_space<vmem>>, vector<1x8x128xf32>
    %545 = vector.shape_cast %544 : vector<1x8x128xf32> to vector<8x128xf32>
    %546 = arith.mulf %543, %545 : vector<8x128xf32>
    %547 = arith.addf %542, %546 : vector<8x128xf32>
    %c122_i32 = arith.constant 122 : i32
    %548 = tpu.dynamic_rotate %472 by %c122_i32 dim 1 : vector<8x128xf32>, i32 -> vector<8x128xf32>
    %c60 = arith.constant 60 : index
    %c0_309 = arith.constant 0 : index
    %c0_310 = arith.constant 0 : index
    %549 = vector.load %arg5[%c60, %c0_309, %c0_310] : memref<138x8x128xf32, #tpu.memory_space<vmem>>, vector<1x8x128xf32>
    %550 = vector.shape_cast %549 : vector<1x8x128xf32> to vector<8x128xf32>
    %551 = arith.mulf %548, %550 : vector<8x128xf32>
    %552 = arith.addf %547, %551 : vector<8x128xf32>
    %c121_i32_311 = arith.constant 121 : i32
    %553 = tpu.dynamic_rotate %472 by %c121_i32_311 dim 1 : vector<8x128xf32>, i32 -> vector<8x128xf32>
    %c61 = arith.constant 61 : index
    %c0_312 = arith.constant 0 : index
    %c0_313 = arith.constant 0 : index
    %554 = vector.load %arg5[%c61, %c0_312, %c0_313] : memref<138x8x128xf32, #tpu.memory_space<vmem>>, vector<1x8x128xf32>
    %555 = vector.shape_cast %554 : vector<1x8x128xf32> to vector<8x128xf32>
    %556 = arith.mulf %553, %555 : vector<8x128xf32>
    %557 = arith.addf %552, %556 : vector<8x128xf32>
    %c120_i32_314 = arith.constant 120 : i32
    %558 = tpu.dynamic_rotate %472 by %c120_i32_314 dim 1 : vector<8x128xf32>, i32 -> vector<8x128xf32>
    %c62 = arith.constant 62 : index
    %c0_315 = arith.constant 0 : index
    %c0_316 = arith.constant 0 : index
    %559 = vector.load %arg5[%c62, %c0_315, %c0_316] : memref<138x8x128xf32, #tpu.memory_space<vmem>>, vector<1x8x128xf32>
    %560 = vector.shape_cast %559 : vector<1x8x128xf32> to vector<8x128xf32>
    %561 = arith.mulf %558, %560 : vector<8x128xf32>
    %562 = arith.addf %557, %561 : vector<8x128xf32>
    %c119_i32_317 = arith.constant 119 : i32
    %563 = tpu.dynamic_rotate %472 by %c119_i32_317 dim 1 : vector<8x128xf32>, i32 -> vector<8x128xf32>
    %c63 = arith.constant 63 : index
    %c0_318 = arith.constant 0 : index
    %c0_319 = arith.constant 0 : index
    %564 = vector.load %arg5[%c63, %c0_318, %c0_319] : memref<138x8x128xf32, #tpu.memory_space<vmem>>, vector<1x8x128xf32>
    %565 = vector.shape_cast %564 : vector<1x8x128xf32> to vector<8x128xf32>
    %566 = arith.mulf %563, %565 : vector<8x128xf32>
    %567 = arith.addf %562, %566 : vector<8x128xf32>
    %c118_i32 = arith.constant 118 : i32
    %568 = tpu.dynamic_rotate %472 by %c118_i32 dim 1 : vector<8x128xf32>, i32 -> vector<8x128xf32>
    %c64 = arith.constant 64 : index
    %c0_320 = arith.constant 0 : index
    %c0_321 = arith.constant 0 : index
    %569 = vector.load %arg5[%c64, %c0_320, %c0_321] : memref<138x8x128xf32, #tpu.memory_space<vmem>>, vector<1x8x128xf32>
    %570 = vector.shape_cast %569 : vector<1x8x128xf32> to vector<8x128xf32>
    %571 = arith.mulf %568, %570 : vector<8x128xf32>
    %572 = arith.addf %567, %571 : vector<8x128xf32>
    %c114_i32_322 = arith.constant 114 : i32
    %573 = tpu.dynamic_rotate %472 by %c114_i32_322 dim 1 : vector<8x128xf32>, i32 -> vector<8x128xf32>
    %c65 = arith.constant 65 : index
    %c0_323 = arith.constant 0 : index
    %c0_324 = arith.constant 0 : index
    %574 = vector.load %arg5[%c65, %c0_323, %c0_324] : memref<138x8x128xf32, #tpu.memory_space<vmem>>, vector<1x8x128xf32>
    %575 = vector.shape_cast %574 : vector<1x8x128xf32> to vector<8x128xf32>
    %576 = arith.mulf %573, %575 : vector<8x128xf32>
    %577 = arith.addf %572, %576 : vector<8x128xf32>
    %c113_i32 = arith.constant 113 : i32
    %578 = tpu.dynamic_rotate %472 by %c113_i32 dim 1 : vector<8x128xf32>, i32 -> vector<8x128xf32>
    %c66 = arith.constant 66 : index
    %c0_325 = arith.constant 0 : index
    %c0_326 = arith.constant 0 : index
    %579 = vector.load %arg5[%c66, %c0_325, %c0_326] : memref<138x8x128xf32, #tpu.memory_space<vmem>>, vector<1x8x128xf32>
    %580 = vector.shape_cast %579 : vector<1x8x128xf32> to vector<8x128xf32>
    %581 = arith.mulf %578, %580 : vector<8x128xf32>
    %582 = arith.addf %577, %581 : vector<8x128xf32>
    %c112_i32_327 = arith.constant 112 : i32
    %583 = tpu.dynamic_rotate %472 by %c112_i32_327 dim 1 : vector<8x128xf32>, i32 -> vector<8x128xf32>
    %c67 = arith.constant 67 : index
    %c0_328 = arith.constant 0 : index
    %c0_329 = arith.constant 0 : index
    %584 = vector.load %arg5[%c67, %c0_328, %c0_329] : memref<138x8x128xf32, #tpu.memory_space<vmem>>, vector<1x8x128xf32>
    %585 = vector.shape_cast %584 : vector<1x8x128xf32> to vector<8x128xf32>
    %586 = arith.mulf %583, %585 : vector<8x128xf32>
    %587 = arith.addf %582, %586 : vector<8x128xf32>
    %c111_i32 = arith.constant 111 : i32
    %588 = tpu.dynamic_rotate %472 by %c111_i32 dim 1 : vector<8x128xf32>, i32 -> vector<8x128xf32>
    %c68 = arith.constant 68 : index
    %c0_330 = arith.constant 0 : index
    %c0_331 = arith.constant 0 : index
    %589 = vector.load %arg5[%c68, %c0_330, %c0_331] : memref<138x8x128xf32, #tpu.memory_space<vmem>>, vector<1x8x128xf32>
    %590 = vector.shape_cast %589 : vector<1x8x128xf32> to vector<8x128xf32>
    %591 = arith.mulf %588, %590 : vector<8x128xf32>
    %592 = arith.addf %587, %591 : vector<8x128xf32>
    %c110_i32_332 = arith.constant 110 : i32
    %593 = tpu.dynamic_rotate %472 by %c110_i32_332 dim 1 : vector<8x128xf32>, i32 -> vector<8x128xf32>
    %c69 = arith.constant 69 : index
    %c0_333 = arith.constant 0 : index
    %c0_334 = arith.constant 0 : index
    %594 = vector.load %arg5[%c69, %c0_333, %c0_334] : memref<138x8x128xf32, #tpu.memory_space<vmem>>, vector<1x8x128xf32>
    %595 = vector.shape_cast %594 : vector<1x8x128xf32> to vector<8x128xf32>
    %596 = arith.mulf %593, %595 : vector<8x128xf32>
    %597 = arith.addf %592, %596 : vector<8x128xf32>
    %cst_335 = arith.constant dense<0.000000e+00> : vector<8x128xf32>
    %598 = tpu.matmul %470, %597, %cst_335 {dimension_numbers = #tpu.dot_dimension_numbers<[1], [0], [0], [1], [0, 0, 1, 1], [], []>} : vector<8x8xf32>, vector<8x128xf32>, vector<8x128xf32> -> vector<8x128xf32>
    %cst_336 = arith.constant dense<0.000000e+00> : vector<8xf32>
    %599 = vector.multi_reduction <add>, %598, %cst_336 [1] : vector<8x128xf32> to vector<8xf32>
    %600 = vector.shape_cast %599 : vector<8xf32> to vector<8x1xf32>
    %cst_337 = arith.constant 7.812500e-03 : f32
    %601 = vector.broadcast %cst_337 : f32 to vector<8x1xf32>
    %602 = arith.mulf %600, %601 : vector<8x1xf32>
    %603 = arith.mulf %598, %598 : vector<8x128xf32>
    %cst_338 = arith.constant dense<0.000000e+00> : vector<8xf32>
    %604 = vector.multi_reduction <add>, %603, %cst_338 [1] : vector<8x128xf32> to vector<8xf32>
    %605 = vector.shape_cast %604 : vector<8xf32> to vector<8x1xf32>
    %cst_339 = arith.constant 7.812500e-03 : f32
    %606 = vector.broadcast %cst_339 : f32 to vector<8x1xf32>
    %607 = arith.mulf %605, %606 : vector<8x1xf32>
    %608 = arith.mulf %602, %602 : vector<8x1xf32>
    %609 = arith.subf %607, %608 : vector<8x1xf32>
    %cst_340 = arith.constant 0.000000e+00 : f32
    %610 = vector.broadcast %cst_340 : f32 to vector<8x1xf32>
    %611 = arith.maximumf %609, %610 : vector<8x1xf32>
    %612 = vector.broadcast %602 : vector<8x1xf32> to vector<8x128xf32>
    %613 = arith.subf %598, %612 : vector<8x128xf32>
    %cst_341 = arith.constant 9.99999974E-6 : f32
    %614 = vector.broadcast %cst_341 : f32 to vector<8x1xf32>
    %615 = arith.addf %611, %614 : vector<8x1xf32>
    %616 = math.rsqrt %615 : vector<8x1xf32>
    %617 = vector.broadcast %616 : vector<8x1xf32> to vector<8x128xf32>
    %618 = arith.mulf %613, %617 : vector<8x128xf32>
    %619 = vector.broadcast %462 : vector<8x1xf32> to vector<8x128xf32>
    %620 = arith.mulf %618, %619 : vector<8x128xf32>
    %621 = vector.broadcast %464 : vector<8x1xf32> to vector<8x128xf32>
    %622 = arith.addf %620, %621 : vector<8x128xf32>
    %c4_342 = arith.constant 4 : index
    %c0_343 = arith.constant 0 : index
    %c0_344 = arith.constant 0 : index
    %623 = vector.load %arg4[%c4_342, %c0_343, %c0_344] : memref<8x8x8xf32, #tpu.memory_space<vmem>>, vector<1x8x8xf32>
    %624 = vector.shape_cast %623 : vector<1x8x8xf32> to vector<8x8xf32>
    %cst_345 = arith.constant 0.000000e+00 : f32
    %625 = vector.broadcast %cst_345 : f32 to vector<8x128xf32>
    %626 = arith.maximumf %622, %625 : vector<8x128xf32>
    %cst_346 = arith.constant 0.000000e+00 : f32
    %627 = vector.broadcast %cst_346 : f32 to vector<8x128xf32>
    %c18_i32_347 = arith.constant 18 : i32
    %628 = tpu.dynamic_rotate %626 by %c18_i32_347 dim 1 : vector<8x128xf32>, i32 -> vector<8x128xf32>
    %c70 = arith.constant 70 : index
    %c0_348 = arith.constant 0 : index
    %c0_349 = arith.constant 0 : index
    %629 = vector.load %arg5[%c70, %c0_348, %c0_349] : memref<138x8x128xf32, #tpu.memory_space<vmem>>, vector<1x8x128xf32>
    %630 = vector.shape_cast %629 : vector<1x8x128xf32> to vector<8x128xf32>
    %631 = arith.mulf %628, %630 : vector<8x128xf32>
    %632 = arith.addf %627, %631 : vector<8x128xf32>
    %c17_i32_350 = arith.constant 17 : i32
    %633 = tpu.dynamic_rotate %626 by %c17_i32_350 dim 1 : vector<8x128xf32>, i32 -> vector<8x128xf32>
    %c71 = arith.constant 71 : index
    %c0_351 = arith.constant 0 : index
    %c0_352 = arith.constant 0 : index
    %634 = vector.load %arg5[%c71, %c0_351, %c0_352] : memref<138x8x128xf32, #tpu.memory_space<vmem>>, vector<1x8x128xf32>
    %635 = vector.shape_cast %634 : vector<1x8x128xf32> to vector<8x128xf32>
    %636 = arith.mulf %633, %635 : vector<8x128xf32>
    %637 = arith.addf %632, %636 : vector<8x128xf32>
    %c16_i32_353 = arith.constant 16 : i32
    %638 = tpu.dynamic_rotate %626 by %c16_i32_353 dim 1 : vector<8x128xf32>, i32 -> vector<8x128xf32>
    %c72 = arith.constant 72 : index
    %c0_354 = arith.constant 0 : index
    %c0_355 = arith.constant 0 : index
    %639 = vector.load %arg5[%c72, %c0_354, %c0_355] : memref<138x8x128xf32, #tpu.memory_space<vmem>>, vector<1x8x128xf32>
    %640 = vector.shape_cast %639 : vector<1x8x128xf32> to vector<8x128xf32>
    %641 = arith.mulf %638, %640 : vector<8x128xf32>
    %642 = arith.addf %637, %641 : vector<8x128xf32>
    %c15_i32_356 = arith.constant 15 : i32
    %643 = tpu.dynamic_rotate %626 by %c15_i32_356 dim 1 : vector<8x128xf32>, i32 -> vector<8x128xf32>
    %c73 = arith.constant 73 : index
    %c0_357 = arith.constant 0 : index
    %c0_358 = arith.constant 0 : index
    %644 = vector.load %arg5[%c73, %c0_357, %c0_358] : memref<138x8x128xf32, #tpu.memory_space<vmem>>, vector<1x8x128xf32>
    %645 = vector.shape_cast %644 : vector<1x8x128xf32> to vector<8x128xf32>
    %646 = arith.mulf %643, %645 : vector<8x128xf32>
    %647 = arith.addf %642, %646 : vector<8x128xf32>
    %c14_i32_359 = arith.constant 14 : i32
    %648 = tpu.dynamic_rotate %626 by %c14_i32_359 dim 1 : vector<8x128xf32>, i32 -> vector<8x128xf32>
    %c74 = arith.constant 74 : index
    %c0_360 = arith.constant 0 : index
    %c0_361 = arith.constant 0 : index
    %649 = vector.load %arg5[%c74, %c0_360, %c0_361] : memref<138x8x128xf32, #tpu.memory_space<vmem>>, vector<1x8x128xf32>
    %650 = vector.shape_cast %649 : vector<1x8x128xf32> to vector<8x128xf32>
    %651 = arith.mulf %648, %650 : vector<8x128xf32>
    %652 = arith.addf %647, %651 : vector<8x128xf32>
    %c10_i32_362 = arith.constant 10 : i32
    %653 = tpu.dynamic_rotate %626 by %c10_i32_362 dim 1 : vector<8x128xf32>, i32 -> vector<8x128xf32>
    %c75 = arith.constant 75 : index
    %c0_363 = arith.constant 0 : index
    %c0_364 = arith.constant 0 : index
    %654 = vector.load %arg5[%c75, %c0_363, %c0_364] : memref<138x8x128xf32, #tpu.memory_space<vmem>>, vector<1x8x128xf32>
    %655 = vector.shape_cast %654 : vector<1x8x128xf32> to vector<8x128xf32>
    %656 = arith.mulf %653, %655 : vector<8x128xf32>
    %657 = arith.addf %652, %656 : vector<8x128xf32>
    %c9_i32_365 = arith.constant 9 : i32
    %658 = tpu.dynamic_rotate %626 by %c9_i32_365 dim 1 : vector<8x128xf32>, i32 -> vector<8x128xf32>
    %c76 = arith.constant 76 : index
    %c0_366 = arith.constant 0 : index
    %c0_367 = arith.constant 0 : index
    %659 = vector.load %arg5[%c76, %c0_366, %c0_367] : memref<138x8x128xf32, #tpu.memory_space<vmem>>, vector<1x8x128xf32>
    %660 = vector.shape_cast %659 : vector<1x8x128xf32> to vector<8x128xf32>
    %661 = arith.mulf %658, %660 : vector<8x128xf32>
    %662 = arith.addf %657, %661 : vector<8x128xf32>
    %c8_i32_368 = arith.constant 8 : i32
    %663 = tpu.dynamic_rotate %626 by %c8_i32_368 dim 1 : vector<8x128xf32>, i32 -> vector<8x128xf32>
    %c77 = arith.constant 77 : index
    %c0_369 = arith.constant 0 : index
    %c0_370 = arith.constant 0 : index
    %664 = vector.load %arg5[%c77, %c0_369, %c0_370] : memref<138x8x128xf32, #tpu.memory_space<vmem>>, vector<1x8x128xf32>
    %665 = vector.shape_cast %664 : vector<1x8x128xf32> to vector<8x128xf32>
    %666 = arith.mulf %663, %665 : vector<8x128xf32>
    %667 = arith.addf %662, %666 : vector<8x128xf32>
    %c7_i32_371 = arith.constant 7 : i32
    %668 = tpu.dynamic_rotate %626 by %c7_i32_371 dim 1 : vector<8x128xf32>, i32 -> vector<8x128xf32>
    %c78 = arith.constant 78 : index
    %c0_372 = arith.constant 0 : index
    %c0_373 = arith.constant 0 : index
    %669 = vector.load %arg5[%c78, %c0_372, %c0_373] : memref<138x8x128xf32, #tpu.memory_space<vmem>>, vector<1x8x128xf32>
    %670 = vector.shape_cast %669 : vector<1x8x128xf32> to vector<8x128xf32>
    %671 = arith.mulf %668, %670 : vector<8x128xf32>
    %672 = arith.addf %667, %671 : vector<8x128xf32>
    %c6_i32_374 = arith.constant 6 : i32
    %673 = tpu.dynamic_rotate %626 by %c6_i32_374 dim 1 : vector<8x128xf32>, i32 -> vector<8x128xf32>
    %c79 = arith.constant 79 : index
    %c0_375 = arith.constant 0 : index
    %c0_376 = arith.constant 0 : index
    %674 = vector.load %arg5[%c79, %c0_375, %c0_376] : memref<138x8x128xf32, #tpu.memory_space<vmem>>, vector<1x8x128xf32>
    %675 = vector.shape_cast %674 : vector<1x8x128xf32> to vector<8x128xf32>
    %676 = arith.mulf %673, %675 : vector<8x128xf32>
    %677 = arith.addf %672, %676 : vector<8x128xf32>
    %c2_i32_377 = arith.constant 2 : i32
    %678 = tpu.dynamic_rotate %626 by %c2_i32_377 dim 1 : vector<8x128xf32>, i32 -> vector<8x128xf32>
    %c80 = arith.constant 80 : index
    %c0_378 = arith.constant 0 : index
    %c0_379 = arith.constant 0 : index
    %679 = vector.load %arg5[%c80, %c0_378, %c0_379] : memref<138x8x128xf32, #tpu.memory_space<vmem>>, vector<1x8x128xf32>
    %680 = vector.shape_cast %679 : vector<1x8x128xf32> to vector<8x128xf32>
    %681 = arith.mulf %678, %680 : vector<8x128xf32>
    %682 = arith.addf %677, %681 : vector<8x128xf32>
    %c1_i32_380 = arith.constant 1 : i32
    %683 = tpu.dynamic_rotate %626 by %c1_i32_380 dim 1 : vector<8x128xf32>, i32 -> vector<8x128xf32>
    %c81 = arith.constant 81 : index
    %c0_381 = arith.constant 0 : index
    %c0_382 = arith.constant 0 : index
    %684 = vector.load %arg5[%c81, %c0_381, %c0_382] : memref<138x8x128xf32, #tpu.memory_space<vmem>>, vector<1x8x128xf32>
    %685 = vector.shape_cast %684 : vector<1x8x128xf32> to vector<8x128xf32>
    %686 = arith.mulf %683, %685 : vector<8x128xf32>
    %687 = arith.addf %682, %686 : vector<8x128xf32>
    %c82 = arith.constant 82 : index
    %c0_383 = arith.constant 0 : index
    %c0_384 = arith.constant 0 : index
    %688 = vector.load %arg5[%c82, %c0_383, %c0_384] : memref<138x8x128xf32, #tpu.memory_space<vmem>>, vector<1x8x128xf32>
    %689 = vector.shape_cast %688 : vector<1x8x128xf32> to vector<8x128xf32>
    %690 = arith.mulf %626, %689 : vector<8x128xf32>
    %691 = arith.addf %687, %690 : vector<8x128xf32>
    %c127_i32_385 = arith.constant 127 : i32
    %692 = tpu.dynamic_rotate %626 by %c127_i32_385 dim 1 : vector<8x128xf32>, i32 -> vector<8x128xf32>
    %c83 = arith.constant 83 : index
    %c0_386 = arith.constant 0 : index
    %c0_387 = arith.constant 0 : index
    %693 = vector.load %arg5[%c83, %c0_386, %c0_387] : memref<138x8x128xf32, #tpu.memory_space<vmem>>, vector<1x8x128xf32>
    %694 = vector.shape_cast %693 : vector<1x8x128xf32> to vector<8x128xf32>
    %695 = arith.mulf %692, %694 : vector<8x128xf32>
    %696 = arith.addf %691, %695 : vector<8x128xf32>
    %c126_i32_388 = arith.constant 126 : i32
    %697 = tpu.dynamic_rotate %626 by %c126_i32_388 dim 1 : vector<8x128xf32>, i32 -> vector<8x128xf32>
    %c84 = arith.constant 84 : index
    %c0_389 = arith.constant 0 : index
    %c0_390 = arith.constant 0 : index
    %698 = vector.load %arg5[%c84, %c0_389, %c0_390] : memref<138x8x128xf32, #tpu.memory_space<vmem>>, vector<1x8x128xf32>
    %699 = vector.shape_cast %698 : vector<1x8x128xf32> to vector<8x128xf32>
    %700 = arith.mulf %697, %699 : vector<8x128xf32>
    %701 = arith.addf %696, %700 : vector<8x128xf32>
    %c122_i32_391 = arith.constant 122 : i32
    %702 = tpu.dynamic_rotate %626 by %c122_i32_391 dim 1 : vector<8x128xf32>, i32 -> vector<8x128xf32>
    %c85 = arith.constant 85 : index
    %c0_392 = arith.constant 0 : index
    %c0_393 = arith.constant 0 : index
    %703 = vector.load %arg5[%c85, %c0_392, %c0_393] : memref<138x8x128xf32, #tpu.memory_space<vmem>>, vector<1x8x128xf32>
    %704 = vector.shape_cast %703 : vector<1x8x128xf32> to vector<8x128xf32>
    %705 = arith.mulf %702, %704 : vector<8x128xf32>
    %706 = arith.addf %701, %705 : vector<8x128xf32>
    %c121_i32_394 = arith.constant 121 : i32
    %707 = tpu.dynamic_rotate %626 by %c121_i32_394 dim 1 : vector<8x128xf32>, i32 -> vector<8x128xf32>
    %c86 = arith.constant 86 : index
    %c0_395 = arith.constant 0 : index
    %c0_396 = arith.constant 0 : index
    %708 = vector.load %arg5[%c86, %c0_395, %c0_396] : memref<138x8x128xf32, #tpu.memory_space<vmem>>, vector<1x8x128xf32>
    %709 = vector.shape_cast %708 : vector<1x8x128xf32> to vector<8x128xf32>
    %710 = arith.mulf %707, %709 : vector<8x128xf32>
    %711 = arith.addf %706, %710 : vector<8x128xf32>
    %c120_i32_397 = arith.constant 120 : i32
    %712 = tpu.dynamic_rotate %626 by %c120_i32_397 dim 1 : vector<8x128xf32>, i32 -> vector<8x128xf32>
    %c87 = arith.constant 87 : index
    %c0_398 = arith.constant 0 : index
    %c0_399 = arith.constant 0 : index
    %713 = vector.load %arg5[%c87, %c0_398, %c0_399] : memref<138x8x128xf32, #tpu.memory_space<vmem>>, vector<1x8x128xf32>
    %714 = vector.shape_cast %713 : vector<1x8x128xf32> to vector<8x128xf32>
    %715 = arith.mulf %712, %714 : vector<8x128xf32>
    %716 = arith.addf %711, %715 : vector<8x128xf32>
    %c119_i32_400 = arith.constant 119 : i32
    %717 = tpu.dynamic_rotate %626 by %c119_i32_400 dim 1 : vector<8x128xf32>, i32 -> vector<8x128xf32>
    %c88 = arith.constant 88 : index
    %c0_401 = arith.constant 0 : index
    %c0_402 = arith.constant 0 : index
    %718 = vector.load %arg5[%c88, %c0_401, %c0_402] : memref<138x8x128xf32, #tpu.memory_space<vmem>>, vector<1x8x128xf32>
    %719 = vector.shape_cast %718 : vector<1x8x128xf32> to vector<8x128xf32>
    %720 = arith.mulf %717, %719 : vector<8x128xf32>
    %721 = arith.addf %716, %720 : vector<8x128xf32>
    %c118_i32_403 = arith.constant 118 : i32
    %722 = tpu.dynamic_rotate %626 by %c118_i32_403 dim 1 : vector<8x128xf32>, i32 -> vector<8x128xf32>
    %c89 = arith.constant 89 : index
    %c0_404 = arith.constant 0 : index
    %c0_405 = arith.constant 0 : index
    %723 = vector.load %arg5[%c89, %c0_404, %c0_405] : memref<138x8x128xf32, #tpu.memory_space<vmem>>, vector<1x8x128xf32>
    %724 = vector.shape_cast %723 : vector<1x8x128xf32> to vector<8x128xf32>
    %725 = arith.mulf %722, %724 : vector<8x128xf32>
    %726 = arith.addf %721, %725 : vector<8x128xf32>
    %c114_i32_406 = arith.constant 114 : i32
    %727 = tpu.dynamic_rotate %626 by %c114_i32_406 dim 1 : vector<8x128xf32>, i32 -> vector<8x128xf32>
    %c90 = arith.constant 90 : index
    %c0_407 = arith.constant 0 : index
    %c0_408 = arith.constant 0 : index
    %728 = vector.load %arg5[%c90, %c0_407, %c0_408] : memref<138x8x128xf32, #tpu.memory_space<vmem>>, vector<1x8x128xf32>
    %729 = vector.shape_cast %728 : vector<1x8x128xf32> to vector<8x128xf32>
    %730 = arith.mulf %727, %729 : vector<8x128xf32>
    %731 = arith.addf %726, %730 : vector<8x128xf32>
    %c113_i32_409 = arith.constant 113 : i32
    %732 = tpu.dynamic_rotate %626 by %c113_i32_409 dim 1 : vector<8x128xf32>, i32 -> vector<8x128xf32>
    %c91 = arith.constant 91 : index
    %c0_410 = arith.constant 0 : index
    %c0_411 = arith.constant 0 : index
    %733 = vector.load %arg5[%c91, %c0_410, %c0_411] : memref<138x8x128xf32, #tpu.memory_space<vmem>>, vector<1x8x128xf32>
    %734 = vector.shape_cast %733 : vector<1x8x128xf32> to vector<8x128xf32>
    %735 = arith.mulf %732, %734 : vector<8x128xf32>
    %736 = arith.addf %731, %735 : vector<8x128xf32>
    %c112_i32_412 = arith.constant 112 : i32
    %737 = tpu.dynamic_rotate %626 by %c112_i32_412 dim 1 : vector<8x128xf32>, i32 -> vector<8x128xf32>
    %c92 = arith.constant 92 : index
    %c0_413 = arith.constant 0 : index
    %c0_414 = arith.constant 0 : index
    %738 = vector.load %arg5[%c92, %c0_413, %c0_414] : memref<138x8x128xf32, #tpu.memory_space<vmem>>, vector<1x8x128xf32>
    %739 = vector.shape_cast %738 : vector<1x8x128xf32> to vector<8x128xf32>
    %740 = arith.mulf %737, %739 : vector<8x128xf32>
    %741 = arith.addf %736, %740 : vector<8x128xf32>
    %c111_i32_415 = arith.constant 111 : i32
    %742 = tpu.dynamic_rotate %626 by %c111_i32_415 dim 1 : vector<8x128xf32>, i32 -> vector<8x128xf32>
    %c93 = arith.constant 93 : index
    %c0_416 = arith.constant 0 : index
    %c0_417 = arith.constant 0 : index
    %743 = vector.load %arg5[%c93, %c0_416, %c0_417] : memref<138x8x128xf32, #tpu.memory_space<vmem>>, vector<1x8x128xf32>
    %744 = vector.shape_cast %743 : vector<1x8x128xf32> to vector<8x128xf32>
    %745 = arith.mulf %742, %744 : vector<8x128xf32>
    %746 = arith.addf %741, %745 : vector<8x128xf32>
    %c110_i32_418 = arith.constant 110 : i32
    %747 = tpu.dynamic_rotate %626 by %c110_i32_418 dim 1 : vector<8x128xf32>, i32 -> vector<8x128xf32>
    %c94 = arith.constant 94 : index
    %c0_419 = arith.constant 0 : index
    %c0_420 = arith.constant 0 : index
    %748 = vector.load %arg5[%c94, %c0_419, %c0_420] : memref<138x8x128xf32, #tpu.memory_space<vmem>>, vector<1x8x128xf32>
    %749 = vector.shape_cast %748 : vector<1x8x128xf32> to vector<8x128xf32>
    %750 = arith.mulf %747, %749 : vector<8x128xf32>
    %751 = arith.addf %746, %750 : vector<8x128xf32>
    %cst_421 = arith.constant dense<0.000000e+00> : vector<8x128xf32>
    %752 = tpu.matmul %624, %751, %cst_421 {dimension_numbers = #tpu.dot_dimension_numbers<[1], [0], [0], [1], [0, 0, 1, 1], [], []>} : vector<8x8xf32>, vector<8x128xf32>, vector<8x128xf32> -> vector<8x128xf32>
    %cst_422 = arith.constant dense<0.000000e+00> : vector<8xf32>
    %753 = vector.multi_reduction <add>, %752, %cst_422 [1] : vector<8x128xf32> to vector<8xf32>
    %754 = vector.shape_cast %753 : vector<8xf32> to vector<8x1xf32>
    %cst_423 = arith.constant 7.812500e-03 : f32
    %755 = vector.broadcast %cst_423 : f32 to vector<8x1xf32>
    %756 = arith.mulf %754, %755 : vector<8x1xf32>
    %757 = arith.mulf %752, %752 : vector<8x128xf32>
    %cst_424 = arith.constant dense<0.000000e+00> : vector<8xf32>
    %758 = vector.multi_reduction <add>, %757, %cst_424 [1] : vector<8x128xf32> to vector<8xf32>
    %759 = vector.shape_cast %758 : vector<8xf32> to vector<8x1xf32>
    %cst_425 = arith.constant 7.812500e-03 : f32
    %760 = vector.broadcast %cst_425 : f32 to vector<8x1xf32>
    %761 = arith.mulf %759, %760 : vector<8x1xf32>
    %762 = arith.mulf %756, %756 : vector<8x1xf32>
    %763 = arith.subf %761, %762 : vector<8x1xf32>
    %cst_426 = arith.constant 0.000000e+00 : f32
    %764 = vector.broadcast %cst_426 : f32 to vector<8x1xf32>
    %765 = arith.maximumf %763, %764 : vector<8x1xf32>
    %766 = vector.broadcast %756 : vector<8x1xf32> to vector<8x128xf32>
    %767 = arith.subf %752, %766 : vector<8x128xf32>
    %cst_427 = arith.constant 9.99999974E-6 : f32
    %768 = vector.broadcast %cst_427 : f32 to vector<8x1xf32>
    %769 = arith.addf %765, %768 : vector<8x1xf32>
    %770 = math.rsqrt %769 : vector<8x1xf32>
    %771 = vector.broadcast %770 : vector<8x1xf32> to vector<8x128xf32>
    %772 = arith.mulf %767, %771 : vector<8x128xf32>
    %773 = vector.broadcast %466 : vector<8x1xf32> to vector<8x128xf32>
    %774 = arith.mulf %772, %773 : vector<8x128xf32>
    %775 = vector.broadcast %468 : vector<8x1xf32> to vector<8x128xf32>
    %776 = arith.addf %774, %775 : vector<8x128xf32>
    %777 = arith.addf %460, %776 : vector<8x128xf32>
    %c9_428 = arith.constant 9 : index
    %c0_429 = arith.constant 0 : index
    %c0_430 = arith.constant 0 : index
    %c0_431 = arith.constant 0 : index
    %778 = vector.load %arg6[%c9_428, %c0_429, %c0_430, %c0_431] : memref<12x2x8x1xf32, #tpu.memory_space<vmem>>, vector<1x1x8x1xf32>
    %779 = vector.shape_cast %778 : vector<1x1x8x1xf32> to vector<8x1xf32>
    %c9_432 = arith.constant 9 : index
    %c1_433 = arith.constant 1 : index
    %c0_434 = arith.constant 0 : index
    %c0_435 = arith.constant 0 : index
    %780 = vector.load %arg6[%c9_432, %c1_433, %c0_434, %c0_435] : memref<12x2x8x1xf32, #tpu.memory_space<vmem>>, vector<1x1x8x1xf32>
    %781 = vector.shape_cast %780 : vector<1x1x8x1xf32> to vector<8x1xf32>
    %c5_436 = arith.constant 5 : index
    %c0_437 = arith.constant 0 : index
    %c0_438 = arith.constant 0 : index
    %782 = vector.load %arg4[%c5_436, %c0_437, %c0_438] : memref<8x8x8xf32, #tpu.memory_space<vmem>>, vector<1x8x8xf32>
    %783 = vector.shape_cast %782 : vector<1x8x8xf32> to vector<8x8xf32>
    %cst_439 = arith.constant 0.000000e+00 : f32
    %784 = vector.broadcast %cst_439 : f32 to vector<8x128xf32>
    %785 = arith.maximumf %302, %784 : vector<8x128xf32>
    %cst_440 = arith.constant 0.000000e+00 : f32
    %786 = vector.broadcast %cst_440 : f32 to vector<8x128xf32>
    %c36_i32 = arith.constant 36 : i32
    %787 = tpu.dynamic_rotate %785 by %c36_i32 dim 1 : vector<8x128xf32>, i32 -> vector<8x128xf32>
    %c95 = arith.constant 95 : index
    %c0_441 = arith.constant 0 : index
    %c0_442 = arith.constant 0 : index
    %788 = vector.load %arg5[%c95, %c0_441, %c0_442] : memref<138x8x128xf32, #tpu.memory_space<vmem>>, vector<1x8x128xf32>
    %789 = vector.shape_cast %788 : vector<1x8x128xf32> to vector<8x128xf32>
    %790 = arith.mulf %787, %789 : vector<8x128xf32>
    %791 = arith.addf %786, %790 : vector<8x128xf32>
    %c34_i32 = arith.constant 34 : i32
    %792 = tpu.dynamic_rotate %785 by %c34_i32 dim 1 : vector<8x128xf32>, i32 -> vector<8x128xf32>
    %c96 = arith.constant 96 : index
    %c0_443 = arith.constant 0 : index
    %c0_444 = arith.constant 0 : index
    %793 = vector.load %arg5[%c96, %c0_443, %c0_444] : memref<138x8x128xf32, #tpu.memory_space<vmem>>, vector<1x8x128xf32>
    %794 = vector.shape_cast %793 : vector<1x8x128xf32> to vector<8x128xf32>
    %795 = arith.mulf %792, %794 : vector<8x128xf32>
    %796 = arith.addf %791, %795 : vector<8x128xf32>
    %c32_i32 = arith.constant 32 : i32
    %797 = tpu.dynamic_rotate %785 by %c32_i32 dim 1 : vector<8x128xf32>, i32 -> vector<8x128xf32>
    %c97 = arith.constant 97 : index
    %c0_445 = arith.constant 0 : index
    %c0_446 = arith.constant 0 : index
    %798 = vector.load %arg5[%c97, %c0_445, %c0_446] : memref<138x8x128xf32, #tpu.memory_space<vmem>>, vector<1x8x128xf32>
    %799 = vector.shape_cast %798 : vector<1x8x128xf32> to vector<8x128xf32>
    %800 = arith.mulf %797, %799 : vector<8x128xf32>
    %801 = arith.addf %796, %800 : vector<8x128xf32>
    %c30_i32 = arith.constant 30 : i32
    %802 = tpu.dynamic_rotate %785 by %c30_i32 dim 1 : vector<8x128xf32>, i32 -> vector<8x128xf32>
    %c98 = arith.constant 98 : index
    %c0_447 = arith.constant 0 : index
    %c0_448 = arith.constant 0 : index
    %803 = vector.load %arg5[%c98, %c0_447, %c0_448] : memref<138x8x128xf32, #tpu.memory_space<vmem>>, vector<1x8x128xf32>
    %804 = vector.shape_cast %803 : vector<1x8x128xf32> to vector<8x128xf32>
    %805 = arith.mulf %802, %804 : vector<8x128xf32>
    %806 = arith.addf %801, %805 : vector<8x128xf32>
    %c28_i32 = arith.constant 28 : i32
    %807 = tpu.dynamic_rotate %785 by %c28_i32 dim 1 : vector<8x128xf32>, i32 -> vector<8x128xf32>
    %c99 = arith.constant 99 : index
    %c0_449 = arith.constant 0 : index
    %c0_450 = arith.constant 0 : index
    %808 = vector.load %arg5[%c99, %c0_449, %c0_450] : memref<138x8x128xf32, #tpu.memory_space<vmem>>, vector<1x8x128xf32>
    %809 = vector.shape_cast %808 : vector<1x8x128xf32> to vector<8x128xf32>
    %810 = arith.mulf %807, %809 : vector<8x128xf32>
    %811 = arith.addf %806, %810 : vector<8x128xf32>
    %c20_i32 = arith.constant 20 : i32
    %812 = tpu.dynamic_rotate %785 by %c20_i32 dim 1 : vector<8x128xf32>, i32 -> vector<8x128xf32>
    %c100 = arith.constant 100 : index
    %c0_451 = arith.constant 0 : index
    %c0_452 = arith.constant 0 : index
    %813 = vector.load %arg5[%c100, %c0_451, %c0_452] : memref<138x8x128xf32, #tpu.memory_space<vmem>>, vector<1x8x128xf32>
    %814 = vector.shape_cast %813 : vector<1x8x128xf32> to vector<8x128xf32>
    %815 = arith.mulf %812, %814 : vector<8x128xf32>
    %816 = arith.addf %811, %815 : vector<8x128xf32>
    %c18_i32_453 = arith.constant 18 : i32
    %817 = tpu.dynamic_rotate %785 by %c18_i32_453 dim 1 : vector<8x128xf32>, i32 -> vector<8x128xf32>
    %c101 = arith.constant 101 : index
    %c0_454 = arith.constant 0 : index
    %c0_455 = arith.constant 0 : index
    %818 = vector.load %arg5[%c101, %c0_454, %c0_455] : memref<138x8x128xf32, #tpu.memory_space<vmem>>, vector<1x8x128xf32>
    %819 = vector.shape_cast %818 : vector<1x8x128xf32> to vector<8x128xf32>
    %820 = arith.mulf %817, %819 : vector<8x128xf32>
    %821 = arith.addf %816, %820 : vector<8x128xf32>
    %c16_i32_456 = arith.constant 16 : i32
    %822 = tpu.dynamic_rotate %785 by %c16_i32_456 dim 1 : vector<8x128xf32>, i32 -> vector<8x128xf32>
    %c102 = arith.constant 102 : index
    %c0_457 = arith.constant 0 : index
    %c0_458 = arith.constant 0 : index
    %823 = vector.load %arg5[%c102, %c0_457, %c0_458] : memref<138x8x128xf32, #tpu.memory_space<vmem>>, vector<1x8x128xf32>
    %824 = vector.shape_cast %823 : vector<1x8x128xf32> to vector<8x128xf32>
    %825 = arith.mulf %822, %824 : vector<8x128xf32>
    %826 = arith.addf %821, %825 : vector<8x128xf32>
    %c14_i32_459 = arith.constant 14 : i32
    %827 = tpu.dynamic_rotate %785 by %c14_i32_459 dim 1 : vector<8x128xf32>, i32 -> vector<8x128xf32>
    %c103 = arith.constant 103 : index
    %c0_460 = arith.constant 0 : index
    %c0_461 = arith.constant 0 : index
    %828 = vector.load %arg5[%c103, %c0_460, %c0_461] : memref<138x8x128xf32, #tpu.memory_space<vmem>>, vector<1x8x128xf32>
    %829 = vector.shape_cast %828 : vector<1x8x128xf32> to vector<8x128xf32>
    %830 = arith.mulf %827, %829 : vector<8x128xf32>
    %831 = arith.addf %826, %830 : vector<8x128xf32>
    %c12_i32 = arith.constant 12 : i32
    %832 = tpu.dynamic_rotate %785 by %c12_i32 dim 1 : vector<8x128xf32>, i32 -> vector<8x128xf32>
    %c104 = arith.constant 104 : index
    %c0_462 = arith.constant 0 : index
    %c0_463 = arith.constant 0 : index
    %833 = vector.load %arg5[%c104, %c0_462, %c0_463] : memref<138x8x128xf32, #tpu.memory_space<vmem>>, vector<1x8x128xf32>
    %834 = vector.shape_cast %833 : vector<1x8x128xf32> to vector<8x128xf32>
    %835 = arith.mulf %832, %834 : vector<8x128xf32>
    %836 = arith.addf %831, %835 : vector<8x128xf32>
    %c4_i32 = arith.constant 4 : i32
    %837 = tpu.dynamic_rotate %785 by %c4_i32 dim 1 : vector<8x128xf32>, i32 -> vector<8x128xf32>
    %c105 = arith.constant 105 : index
    %c0_464 = arith.constant 0 : index
    %c0_465 = arith.constant 0 : index
    %838 = vector.load %arg5[%c105, %c0_464, %c0_465] : memref<138x8x128xf32, #tpu.memory_space<vmem>>, vector<1x8x128xf32>
    %839 = vector.shape_cast %838 : vector<1x8x128xf32> to vector<8x128xf32>
    %840 = arith.mulf %837, %839 : vector<8x128xf32>
    %841 = arith.addf %836, %840 : vector<8x128xf32>
    %c2_i32_466 = arith.constant 2 : i32
    %842 = tpu.dynamic_rotate %785 by %c2_i32_466 dim 1 : vector<8x128xf32>, i32 -> vector<8x128xf32>
    %c106 = arith.constant 106 : index
    %c0_467 = arith.constant 0 : index
    %c0_468 = arith.constant 0 : index
    %843 = vector.load %arg5[%c106, %c0_467, %c0_468] : memref<138x8x128xf32, #tpu.memory_space<vmem>>, vector<1x8x128xf32>
    %844 = vector.shape_cast %843 : vector<1x8x128xf32> to vector<8x128xf32>
    %845 = arith.mulf %842, %844 : vector<8x128xf32>
    %846 = arith.addf %841, %845 : vector<8x128xf32>
    %c107 = arith.constant 107 : index
    %c0_469 = arith.constant 0 : index
    %c0_470 = arith.constant 0 : index
    %847 = vector.load %arg5[%c107, %c0_469, %c0_470] : memref<138x8x128xf32, #tpu.memory_space<vmem>>, vector<1x8x128xf32>
    %848 = vector.shape_cast %847 : vector<1x8x128xf32> to vector<8x128xf32>
    %849 = arith.mulf %785, %848 : vector<8x128xf32>
    %850 = arith.addf %846, %849 : vector<8x128xf32>
    %c126_i32_471 = arith.constant 126 : i32
    %851 = tpu.dynamic_rotate %785 by %c126_i32_471 dim 1 : vector<8x128xf32>, i32 -> vector<8x128xf32>
    %c108 = arith.constant 108 : index
    %c0_472 = arith.constant 0 : index
    %c0_473 = arith.constant 0 : index
    %852 = vector.load %arg5[%c108, %c0_472, %c0_473] : memref<138x8x128xf32, #tpu.memory_space<vmem>>, vector<1x8x128xf32>
    %853 = vector.shape_cast %852 : vector<1x8x128xf32> to vector<8x128xf32>
    %854 = arith.mulf %851, %853 : vector<8x128xf32>
    %855 = arith.addf %850, %854 : vector<8x128xf32>
    %c124_i32 = arith.constant 124 : i32
    %856 = tpu.dynamic_rotate %785 by %c124_i32 dim 1 : vector<8x128xf32>, i32 -> vector<8x128xf32>
    %c109 = arith.constant 109 : index
    %c0_474 = arith.constant 0 : index
    %c0_475 = arith.constant 0 : index
    %857 = vector.load %arg5[%c109, %c0_474, %c0_475] : memref<138x8x128xf32, #tpu.memory_space<vmem>>, vector<1x8x128xf32>
    %858 = vector.shape_cast %857 : vector<1x8x128xf32> to vector<8x128xf32>
    %859 = arith.mulf %856, %858 : vector<8x128xf32>
    %860 = arith.addf %855, %859 : vector<8x128xf32>
    %c116_i32 = arith.constant 116 : i32
    %861 = tpu.dynamic_rotate %785 by %c116_i32 dim 1 : vector<8x128xf32>, i32 -> vector<8x128xf32>
    %c110 = arith.constant 110 : index
    %c0_476 = arith.constant 0 : index
    %c0_477 = arith.constant 0 : index
    %862 = vector.load %arg5[%c110, %c0_476, %c0_477] : memref<138x8x128xf32, #tpu.memory_space<vmem>>, vector<1x8x128xf32>
    %863 = vector.shape_cast %862 : vector<1x8x128xf32> to vector<8x128xf32>
    %864 = arith.mulf %861, %863 : vector<8x128xf32>
    %865 = arith.addf %860, %864 : vector<8x128xf32>
    %c114_i32_478 = arith.constant 114 : i32
    %866 = tpu.dynamic_rotate %785 by %c114_i32_478 dim 1 : vector<8x128xf32>, i32 -> vector<8x128xf32>
    %c111 = arith.constant 111 : index
    %c0_479 = arith.constant 0 : index
    %c0_480 = arith.constant 0 : index
    %867 = vector.load %arg5[%c111, %c0_479, %c0_480] : memref<138x8x128xf32, #tpu.memory_space<vmem>>, vector<1x8x128xf32>
    %868 = vector.shape_cast %867 : vector<1x8x128xf32> to vector<8x128xf32>
    %869 = arith.mulf %866, %868 : vector<8x128xf32>
    %870 = arith.addf %865, %869 : vector<8x128xf32>
    %c112_i32_481 = arith.constant 112 : i32
    %871 = tpu.dynamic_rotate %785 by %c112_i32_481 dim 1 : vector<8x128xf32>, i32 -> vector<8x128xf32>
    %c112 = arith.constant 112 : index
    %c0_482 = arith.constant 0 : index
    %c0_483 = arith.constant 0 : index
    %872 = vector.load %arg5[%c112, %c0_482, %c0_483] : memref<138x8x128xf32, #tpu.memory_space<vmem>>, vector<1x8x128xf32>
    %873 = vector.shape_cast %872 : vector<1x8x128xf32> to vector<8x128xf32>
    %874 = arith.mulf %871, %873 : vector<8x128xf32>
    %875 = arith.addf %870, %874 : vector<8x128xf32>
    %c110_i32_484 = arith.constant 110 : i32
    %876 = tpu.dynamic_rotate %785 by %c110_i32_484 dim 1 : vector<8x128xf32>, i32 -> vector<8x128xf32>
    %c113 = arith.constant 113 : index
    %c0_485 = arith.constant 0 : index
    %c0_486 = arith.constant 0 : index
    %877 = vector.load %arg5[%c113, %c0_485, %c0_486] : memref<138x8x128xf32, #tpu.memory_space<vmem>>, vector<1x8x128xf32>
    %878 = vector.shape_cast %877 : vector<1x8x128xf32> to vector<8x128xf32>
    %879 = arith.mulf %876, %878 : vector<8x128xf32>
    %880 = arith.addf %875, %879 : vector<8x128xf32>
    %c108_i32 = arith.constant 108 : i32
    %881 = tpu.dynamic_rotate %785 by %c108_i32 dim 1 : vector<8x128xf32>, i32 -> vector<8x128xf32>
    %c114 = arith.constant 114 : index
    %c0_487 = arith.constant 0 : index
    %c0_488 = arith.constant 0 : index
    %882 = vector.load %arg5[%c114, %c0_487, %c0_488] : memref<138x8x128xf32, #tpu.memory_space<vmem>>, vector<1x8x128xf32>
    %883 = vector.shape_cast %882 : vector<1x8x128xf32> to vector<8x128xf32>
    %884 = arith.mulf %881, %883 : vector<8x128xf32>
    %885 = arith.addf %880, %884 : vector<8x128xf32>
    %c100_i32 = arith.constant 100 : i32
    %886 = tpu.dynamic_rotate %785 by %c100_i32 dim 1 : vector<8x128xf32>, i32 -> vector<8x128xf32>
    %c115 = arith.constant 115 : index
    %c0_489 = arith.constant 0 : index
    %c0_490 = arith.constant 0 : index
    %887 = vector.load %arg5[%c115, %c0_489, %c0_490] : memref<138x8x128xf32, #tpu.memory_space<vmem>>, vector<1x8x128xf32>
    %888 = vector.shape_cast %887 : vector<1x8x128xf32> to vector<8x128xf32>
    %889 = arith.mulf %886, %888 : vector<8x128xf32>
    %890 = arith.addf %885, %889 : vector<8x128xf32>
    %c98_i32 = arith.constant 98 : i32
    %891 = tpu.dynamic_rotate %785 by %c98_i32 dim 1 : vector<8x128xf32>, i32 -> vector<8x128xf32>
    %c116 = arith.constant 116 : index
    %c0_491 = arith.constant 0 : index
    %c0_492 = arith.constant 0 : index
    %892 = vector.load %arg5[%c116, %c0_491, %c0_492] : memref<138x8x128xf32, #tpu.memory_space<vmem>>, vector<1x8x128xf32>
    %893 = vector.shape_cast %892 : vector<1x8x128xf32> to vector<8x128xf32>
    %894 = arith.mulf %891, %893 : vector<8x128xf32>
    %895 = arith.addf %890, %894 : vector<8x128xf32>
    %c96_i32 = arith.constant 96 : i32
    %896 = tpu.dynamic_rotate %785 by %c96_i32 dim 1 : vector<8x128xf32>, i32 -> vector<8x128xf32>
    %c117 = arith.constant 117 : index
    %c0_493 = arith.constant 0 : index
    %c0_494 = arith.constant 0 : index
    %897 = vector.load %arg5[%c117, %c0_493, %c0_494] : memref<138x8x128xf32, #tpu.memory_space<vmem>>, vector<1x8x128xf32>
    %898 = vector.shape_cast %897 : vector<1x8x128xf32> to vector<8x128xf32>
    %899 = arith.mulf %896, %898 : vector<8x128xf32>
    %900 = arith.addf %895, %899 : vector<8x128xf32>
    %c94_i32 = arith.constant 94 : i32
    %901 = tpu.dynamic_rotate %785 by %c94_i32 dim 1 : vector<8x128xf32>, i32 -> vector<8x128xf32>
    %c118 = arith.constant 118 : index
    %c0_495 = arith.constant 0 : index
    %c0_496 = arith.constant 0 : index
    %902 = vector.load %arg5[%c118, %c0_495, %c0_496] : memref<138x8x128xf32, #tpu.memory_space<vmem>>, vector<1x8x128xf32>
    %903 = vector.shape_cast %902 : vector<1x8x128xf32> to vector<8x128xf32>
    %904 = arith.mulf %901, %903 : vector<8x128xf32>
    %905 = arith.addf %900, %904 : vector<8x128xf32>
    %c92_i32 = arith.constant 92 : i32
    %906 = tpu.dynamic_rotate %785 by %c92_i32 dim 1 : vector<8x128xf32>, i32 -> vector<8x128xf32>
    %c119 = arith.constant 119 : index
    %c0_497 = arith.constant 0 : index
    %c0_498 = arith.constant 0 : index
    %907 = vector.load %arg5[%c119, %c0_497, %c0_498] : memref<138x8x128xf32, #tpu.memory_space<vmem>>, vector<1x8x128xf32>
    %908 = vector.shape_cast %907 : vector<1x8x128xf32> to vector<8x128xf32>
    %909 = arith.mulf %906, %908 : vector<8x128xf32>
    %910 = arith.addf %905, %909 : vector<8x128xf32>
    %cst_499 = arith.constant dense<0.000000e+00> : vector<8x128xf32>
    %911 = tpu.matmul %783, %910, %cst_499 {dimension_numbers = #tpu.dot_dimension_numbers<[1], [0], [0], [1], [0, 0, 1, 1], [], []>} : vector<8x8xf32>, vector<8x128xf32>, vector<8x128xf32> -> vector<8x128xf32>
    %cst_500 = arith.constant dense<0.000000e+00> : vector<8xf32>
    %912 = vector.multi_reduction <add>, %911, %cst_500 [1] : vector<8x128xf32> to vector<8xf32>
    %913 = vector.shape_cast %912 : vector<8xf32> to vector<8x1xf32>
    %cst_501 = arith.constant 7.812500e-03 : f32
    %914 = vector.broadcast %cst_501 : f32 to vector<8x1xf32>
    %915 = arith.mulf %913, %914 : vector<8x1xf32>
    %916 = arith.mulf %911, %911 : vector<8x128xf32>
    %cst_502 = arith.constant dense<0.000000e+00> : vector<8xf32>
    %917 = vector.multi_reduction <add>, %916, %cst_502 [1] : vector<8x128xf32> to vector<8xf32>
    %918 = vector.shape_cast %917 : vector<8xf32> to vector<8x1xf32>
    %cst_503 = arith.constant 7.812500e-03 : f32
    %919 = vector.broadcast %cst_503 : f32 to vector<8x1xf32>
    %920 = arith.mulf %918, %919 : vector<8x1xf32>
    %921 = arith.mulf %915, %915 : vector<8x1xf32>
    %922 = arith.subf %920, %921 : vector<8x1xf32>
    %cst_504 = arith.constant 0.000000e+00 : f32
    %923 = vector.broadcast %cst_504 : f32 to vector<8x1xf32>
    %924 = arith.maximumf %922, %923 : vector<8x1xf32>
    %925 = vector.broadcast %915 : vector<8x1xf32> to vector<8x128xf32>
    %926 = arith.subf %911, %925 : vector<8x128xf32>
    %cst_505 = arith.constant 9.99999974E-6 : f32
    %927 = vector.broadcast %cst_505 : f32 to vector<8x1xf32>
    %928 = arith.addf %924, %927 : vector<8x1xf32>
    %929 = math.rsqrt %928 : vector<8x1xf32>
    %930 = vector.broadcast %929 : vector<8x1xf32> to vector<8x128xf32>
    %931 = arith.mulf %926, %930 : vector<8x128xf32>
    %932 = vector.broadcast %779 : vector<8x1xf32> to vector<8x128xf32>
    %933 = arith.mulf %931, %932 : vector<8x128xf32>
    %934 = vector.broadcast %781 : vector<8x1xf32> to vector<8x128xf32>
    %935 = arith.addf %933, %934 : vector<8x128xf32>
    %936 = arith.addf %777, %935 : vector<8x128xf32>
    %c10_506 = arith.constant 10 : index
    %c0_507 = arith.constant 0 : index
    %c0_508 = arith.constant 0 : index
    %c0_509 = arith.constant 0 : index
    %937 = vector.load %arg6[%c10_506, %c0_507, %c0_508, %c0_509] : memref<12x2x8x1xf32, #tpu.memory_space<vmem>>, vector<1x1x8x1xf32>
    %938 = vector.shape_cast %937 : vector<1x1x8x1xf32> to vector<8x1xf32>
    %c10_510 = arith.constant 10 : index
    %c1_511 = arith.constant 1 : index
    %c0_512 = arith.constant 0 : index
    %c0_513 = arith.constant 0 : index
    %939 = vector.load %arg6[%c10_510, %c1_511, %c0_512, %c0_513] : memref<12x2x8x1xf32, #tpu.memory_space<vmem>>, vector<1x1x8x1xf32>
    %940 = vector.shape_cast %939 : vector<1x1x8x1xf32> to vector<8x1xf32>
    %c11_514 = arith.constant 11 : index
    %c0_515 = arith.constant 0 : index
    %c0_516 = arith.constant 0 : index
    %c0_517 = arith.constant 0 : index
    %941 = vector.load %arg6[%c11_514, %c0_515, %c0_516, %c0_517] : memref<12x2x8x1xf32, #tpu.memory_space<vmem>>, vector<1x1x8x1xf32>
    %942 = vector.shape_cast %941 : vector<1x1x8x1xf32> to vector<8x1xf32>
    %c11_518 = arith.constant 11 : index
    %c1_519 = arith.constant 1 : index
    %c0_520 = arith.constant 0 : index
    %c0_521 = arith.constant 0 : index
    %943 = vector.load %arg6[%c11_518, %c1_519, %c0_520, %c0_521] : memref<12x2x8x1xf32, #tpu.memory_space<vmem>>, vector<1x1x8x1xf32>
    %944 = vector.shape_cast %943 : vector<1x1x8x1xf32> to vector<8x1xf32>
    %c6_522 = arith.constant 6 : index
    %c0_523 = arith.constant 0 : index
    %c0_524 = arith.constant 0 : index
    %945 = vector.load %arg4[%c6_522, %c0_523, %c0_524] : memref<8x8x8xf32, #tpu.memory_space<vmem>>, vector<1x8x8xf32>
    %946 = vector.shape_cast %945 : vector<1x8x8xf32> to vector<8x8xf32>
    %cst_525 = arith.constant 0.000000e+00 : f32
    %947 = vector.broadcast %cst_525 : f32 to vector<8x128xf32>
    %948 = arith.maximumf %456, %947 : vector<8x128xf32>
    %cst_526 = arith.constant 0.000000e+00 : f32
    %949 = vector.broadcast %cst_526 : f32 to vector<8x128xf32>
    %c9_i32_527 = arith.constant 9 : i32
    %950 = tpu.dynamic_rotate %948 by %c9_i32_527 dim 1 : vector<8x128xf32>, i32 -> vector<8x128xf32>
    %c120 = arith.constant 120 : index
    %c0_528 = arith.constant 0 : index
    %c0_529 = arith.constant 0 : index
    %951 = vector.load %arg5[%c120, %c0_528, %c0_529] : memref<138x8x128xf32, #tpu.memory_space<vmem>>, vector<1x8x128xf32>
    %952 = vector.shape_cast %951 : vector<1x8x128xf32> to vector<8x128xf32>
    %953 = arith.mulf %950, %952 : vector<8x128xf32>
    %954 = arith.addf %949, %953 : vector<8x128xf32>
    %c8_i32_530 = arith.constant 8 : i32
    %955 = tpu.dynamic_rotate %948 by %c8_i32_530 dim 1 : vector<8x128xf32>, i32 -> vector<8x128xf32>
    %c121 = arith.constant 121 : index
    %c0_531 = arith.constant 0 : index
    %c0_532 = arith.constant 0 : index
    %956 = vector.load %arg5[%c121, %c0_531, %c0_532] : memref<138x8x128xf32, #tpu.memory_space<vmem>>, vector<1x8x128xf32>
    %957 = vector.shape_cast %956 : vector<1x8x128xf32> to vector<8x128xf32>
    %958 = arith.mulf %955, %957 : vector<8x128xf32>
    %959 = arith.addf %954, %958 : vector<8x128xf32>
    %c7_i32_533 = arith.constant 7 : i32
    %960 = tpu.dynamic_rotate %948 by %c7_i32_533 dim 1 : vector<8x128xf32>, i32 -> vector<8x128xf32>
    %c122 = arith.constant 122 : index
    %c0_534 = arith.constant 0 : index
    %c0_535 = arith.constant 0 : index
    %961 = vector.load %arg5[%c122, %c0_534, %c0_535] : memref<138x8x128xf32, #tpu.memory_space<vmem>>, vector<1x8x128xf32>
    %962 = vector.shape_cast %961 : vector<1x8x128xf32> to vector<8x128xf32>
    %963 = arith.mulf %960, %962 : vector<8x128xf32>
    %964 = arith.addf %959, %963 : vector<8x128xf32>
    %c1_i32_536 = arith.constant 1 : i32
    %965 = tpu.dynamic_rotate %948 by %c1_i32_536 dim 1 : vector<8x128xf32>, i32 -> vector<8x128xf32>
    %c123 = arith.constant 123 : index
    %c0_537 = arith.constant 0 : index
    %c0_538 = arith.constant 0 : index
    %966 = vector.load %arg5[%c123, %c0_537, %c0_538] : memref<138x8x128xf32, #tpu.memory_space<vmem>>, vector<1x8x128xf32>
    %967 = vector.shape_cast %966 : vector<1x8x128xf32> to vector<8x128xf32>
    %968 = arith.mulf %965, %967 : vector<8x128xf32>
    %969 = arith.addf %964, %968 : vector<8x128xf32>
    %c124 = arith.constant 124 : index
    %c0_539 = arith.constant 0 : index
    %c0_540 = arith.constant 0 : index
    %970 = vector.load %arg5[%c124, %c0_539, %c0_540] : memref<138x8x128xf32, #tpu.memory_space<vmem>>, vector<1x8x128xf32>
    %971 = vector.shape_cast %970 : vector<1x8x128xf32> to vector<8x128xf32>
    %972 = arith.mulf %948, %971 : vector<8x128xf32>
    %973 = arith.addf %969, %972 : vector<8x128xf32>
    %c127_i32_541 = arith.constant 127 : i32
    %974 = tpu.dynamic_rotate %948 by %c127_i32_541 dim 1 : vector<8x128xf32>, i32 -> vector<8x128xf32>
    %c125 = arith.constant 125 : index
    %c0_542 = arith.constant 0 : index
    %c0_543 = arith.constant 0 : index
    %975 = vector.load %arg5[%c125, %c0_542, %c0_543] : memref<138x8x128xf32, #tpu.memory_space<vmem>>, vector<1x8x128xf32>
    %976 = vector.shape_cast %975 : vector<1x8x128xf32> to vector<8x128xf32>
    %977 = arith.mulf %974, %976 : vector<8x128xf32>
    %978 = arith.addf %973, %977 : vector<8x128xf32>
    %c121_i32_544 = arith.constant 121 : i32
    %979 = tpu.dynamic_rotate %948 by %c121_i32_544 dim 1 : vector<8x128xf32>, i32 -> vector<8x128xf32>
    %c126 = arith.constant 126 : index
    %c0_545 = arith.constant 0 : index
    %c0_546 = arith.constant 0 : index
    %980 = vector.load %arg5[%c126, %c0_545, %c0_546] : memref<138x8x128xf32, #tpu.memory_space<vmem>>, vector<1x8x128xf32>
    %981 = vector.shape_cast %980 : vector<1x8x128xf32> to vector<8x128xf32>
    %982 = arith.mulf %979, %981 : vector<8x128xf32>
    %983 = arith.addf %978, %982 : vector<8x128xf32>
    %c120_i32_547 = arith.constant 120 : i32
    %984 = tpu.dynamic_rotate %948 by %c120_i32_547 dim 1 : vector<8x128xf32>, i32 -> vector<8x128xf32>
    %c127 = arith.constant 127 : index
    %c0_548 = arith.constant 0 : index
    %c0_549 = arith.constant 0 : index
    %985 = vector.load %arg5[%c127, %c0_548, %c0_549] : memref<138x8x128xf32, #tpu.memory_space<vmem>>, vector<1x8x128xf32>
    %986 = vector.shape_cast %985 : vector<1x8x128xf32> to vector<8x128xf32>
    %987 = arith.mulf %984, %986 : vector<8x128xf32>
    %988 = arith.addf %983, %987 : vector<8x128xf32>
    %c119_i32_550 = arith.constant 119 : i32
    %989 = tpu.dynamic_rotate %948 by %c119_i32_550 dim 1 : vector<8x128xf32>, i32 -> vector<8x128xf32>
    %c128 = arith.constant 128 : index
    %c0_551 = arith.constant 0 : index
    %c0_552 = arith.constant 0 : index
    %990 = vector.load %arg5[%c128, %c0_551, %c0_552] : memref<138x8x128xf32, #tpu.memory_space<vmem>>, vector<1x8x128xf32>
    %991 = vector.shape_cast %990 : vector<1x8x128xf32> to vector<8x128xf32>
    %992 = arith.mulf %989, %991 : vector<8x128xf32>
    %993 = arith.addf %988, %992 : vector<8x128xf32>
    %cst_553 = arith.constant dense<0.000000e+00> : vector<8x128xf32>
    %994 = tpu.matmul %946, %993, %cst_553 {dimension_numbers = #tpu.dot_dimension_numbers<[1], [0], [0], [1], [0, 0, 1, 1], [], []>} : vector<8x8xf32>, vector<8x128xf32>, vector<8x128xf32> -> vector<8x128xf32>
    %cst_554 = arith.constant dense<0.000000e+00> : vector<8xf32>
    %995 = vector.multi_reduction <add>, %994, %cst_554 [1] : vector<8x128xf32> to vector<8xf32>
    %996 = vector.shape_cast %995 : vector<8xf32> to vector<8x1xf32>
    %cst_555 = arith.constant 7.812500e-03 : f32
    %997 = vector.broadcast %cst_555 : f32 to vector<8x1xf32>
    %998 = arith.mulf %996, %997 : vector<8x1xf32>
    %999 = arith.mulf %994, %994 : vector<8x128xf32>
    %cst_556 = arith.constant dense<0.000000e+00> : vector<8xf32>
    %1000 = vector.multi_reduction <add>, %999, %cst_556 [1] : vector<8x128xf32> to vector<8xf32>
    %1001 = vector.shape_cast %1000 : vector<8xf32> to vector<8x1xf32>
    %cst_557 = arith.constant 7.812500e-03 : f32
    %1002 = vector.broadcast %cst_557 : f32 to vector<8x1xf32>
    %1003 = arith.mulf %1001, %1002 : vector<8x1xf32>
    %1004 = arith.mulf %998, %998 : vector<8x1xf32>
    %1005 = arith.subf %1003, %1004 : vector<8x1xf32>
    %cst_558 = arith.constant 0.000000e+00 : f32
    %1006 = vector.broadcast %cst_558 : f32 to vector<8x1xf32>
    %1007 = arith.maximumf %1005, %1006 : vector<8x1xf32>
    %1008 = vector.broadcast %998 : vector<8x1xf32> to vector<8x128xf32>
    %1009 = arith.subf %994, %1008 : vector<8x128xf32>
    %cst_559 = arith.constant 9.99999974E-6 : f32
    %1010 = vector.broadcast %cst_559 : f32 to vector<8x1xf32>
    %1011 = arith.addf %1007, %1010 : vector<8x1xf32>
    %1012 = math.rsqrt %1011 : vector<8x1xf32>
    %1013 = vector.broadcast %1012 : vector<8x1xf32> to vector<8x128xf32>
    %1014 = arith.mulf %1009, %1013 : vector<8x128xf32>
    %1015 = vector.broadcast %938 : vector<8x1xf32> to vector<8x128xf32>
    %1016 = arith.mulf %1014, %1015 : vector<8x128xf32>
    %1017 = vector.broadcast %940 : vector<8x1xf32> to vector<8x128xf32>
    %1018 = arith.addf %1016, %1017 : vector<8x128xf32>
    %c7_560 = arith.constant 7 : index
    %c0_561 = arith.constant 0 : index
    %c0_562 = arith.constant 0 : index
    %1019 = vector.load %arg4[%c7_560, %c0_561, %c0_562] : memref<8x8x8xf32, #tpu.memory_space<vmem>>, vector<1x8x8xf32>
    %1020 = vector.shape_cast %1019 : vector<1x8x8xf32> to vector<8x8xf32>
    %cst_563 = arith.constant 0.000000e+00 : f32
    %1021 = vector.broadcast %cst_563 : f32 to vector<8x128xf32>
    %1022 = arith.maximumf %1018, %1021 : vector<8x128xf32>
    %cst_564 = arith.constant 0.000000e+00 : f32
    %1023 = vector.broadcast %cst_564 : f32 to vector<8x128xf32>
    %c9_i32_565 = arith.constant 9 : i32
    %1024 = tpu.dynamic_rotate %1022 by %c9_i32_565 dim 1 : vector<8x128xf32>, i32 -> vector<8x128xf32>
    %c129 = arith.constant 129 : index
    %c0_566 = arith.constant 0 : index
    %c0_567 = arith.constant 0 : index
    %1025 = vector.load %arg5[%c129, %c0_566, %c0_567] : memref<138x8x128xf32, #tpu.memory_space<vmem>>, vector<1x8x128xf32>
    %1026 = vector.shape_cast %1025 : vector<1x8x128xf32> to vector<8x128xf32>
    %1027 = arith.mulf %1024, %1026 : vector<8x128xf32>
    %1028 = arith.addf %1023, %1027 : vector<8x128xf32>
    %c8_i32_568 = arith.constant 8 : i32
    %1029 = tpu.dynamic_rotate %1022 by %c8_i32_568 dim 1 : vector<8x128xf32>, i32 -> vector<8x128xf32>
    %c130 = arith.constant 130 : index
    %c0_569 = arith.constant 0 : index
    %c0_570 = arith.constant 0 : index
    %1030 = vector.load %arg5[%c130, %c0_569, %c0_570] : memref<138x8x128xf32, #tpu.memory_space<vmem>>, vector<1x8x128xf32>
    %1031 = vector.shape_cast %1030 : vector<1x8x128xf32> to vector<8x128xf32>
    %1032 = arith.mulf %1029, %1031 : vector<8x128xf32>
    %1033 = arith.addf %1028, %1032 : vector<8x128xf32>
    %c7_i32_571 = arith.constant 7 : i32
    %1034 = tpu.dynamic_rotate %1022 by %c7_i32_571 dim 1 : vector<8x128xf32>, i32 -> vector<8x128xf32>
    %c131 = arith.constant 131 : index
    %c0_572 = arith.constant 0 : index
    %c0_573 = arith.constant 0 : index
    %1035 = vector.load %arg5[%c131, %c0_572, %c0_573] : memref<138x8x128xf32, #tpu.memory_space<vmem>>, vector<1x8x128xf32>
    %1036 = vector.shape_cast %1035 : vector<1x8x128xf32> to vector<8x128xf32>
    %1037 = arith.mulf %1034, %1036 : vector<8x128xf32>
    %1038 = arith.addf %1033, %1037 : vector<8x128xf32>
    %c1_i32_574 = arith.constant 1 : i32
    %1039 = tpu.dynamic_rotate %1022 by %c1_i32_574 dim 1 : vector<8x128xf32>, i32 -> vector<8x128xf32>
    %c132 = arith.constant 132 : index
    %c0_575 = arith.constant 0 : index
    %c0_576 = arith.constant 0 : index
    %1040 = vector.load %arg5[%c132, %c0_575, %c0_576] : memref<138x8x128xf32, #tpu.memory_space<vmem>>, vector<1x8x128xf32>
    %1041 = vector.shape_cast %1040 : vector<1x8x128xf32> to vector<8x128xf32>
    %1042 = arith.mulf %1039, %1041 : vector<8x128xf32>
    %1043 = arith.addf %1038, %1042 : vector<8x128xf32>
    %c133 = arith.constant 133 : index
    %c0_577 = arith.constant 0 : index
    %c0_578 = arith.constant 0 : index
    %1044 = vector.load %arg5[%c133, %c0_577, %c0_578] : memref<138x8x128xf32, #tpu.memory_space<vmem>>, vector<1x8x128xf32>
    %1045 = vector.shape_cast %1044 : vector<1x8x128xf32> to vector<8x128xf32>
    %1046 = arith.mulf %1022, %1045 : vector<8x128xf32>
    %1047 = arith.addf %1043, %1046 : vector<8x128xf32>
    %c127_i32_579 = arith.constant 127 : i32
    %1048 = tpu.dynamic_rotate %1022 by %c127_i32_579 dim 1 : vector<8x128xf32>, i32 -> vector<8x128xf32>
    %c134 = arith.constant 134 : index
    %c0_580 = arith.constant 0 : index
    %c0_581 = arith.constant 0 : index
    %1049 = vector.load %arg5[%c134, %c0_580, %c0_581] : memref<138x8x128xf32, #tpu.memory_space<vmem>>, vector<1x8x128xf32>
    %1050 = vector.shape_cast %1049 : vector<1x8x128xf32> to vector<8x128xf32>
    %1051 = arith.mulf %1048, %1050 : vector<8x128xf32>
    %1052 = arith.addf %1047, %1051 : vector<8x128xf32>
    %c121_i32_582 = arith.constant 121 : i32
    %1053 = tpu.dynamic_rotate %1022 by %c121_i32_582 dim 1 : vector<8x128xf32>, i32 -> vector<8x128xf32>
    %c135 = arith.constant 135 : index
    %c0_583 = arith.constant 0 : index
    %c0_584 = arith.constant 0 : index
    %1054 = vector.load %arg5[%c135, %c0_583, %c0_584] : memref<138x8x128xf32, #tpu.memory_space<vmem>>, vector<1x8x128xf32>
    %1055 = vector.shape_cast %1054 : vector<1x8x128xf32> to vector<8x128xf32>
    %1056 = arith.mulf %1053, %1055 : vector<8x128xf32>
    %1057 = arith.addf %1052, %1056 : vector<8x128xf32>
    %c120_i32_585 = arith.constant 120 : i32
    %1058 = tpu.dynamic_rotate %1022 by %c120_i32_585 dim 1 : vector<8x128xf32>, i32 -> vector<8x128xf32>
    %c136 = arith.constant 136 : index
    %c0_586 = arith.constant 0 : index
    %c0_587 = arith.constant 0 : index
    %1059 = vector.load %arg5[%c136, %c0_586, %c0_587] : memref<138x8x128xf32, #tpu.memory_space<vmem>>, vector<1x8x128xf32>
    %1060 = vector.shape_cast %1059 : vector<1x8x128xf32> to vector<8x128xf32>
    %1061 = arith.mulf %1058, %1060 : vector<8x128xf32>
    %1062 = arith.addf %1057, %1061 : vector<8x128xf32>
    %c119_i32_588 = arith.constant 119 : i32
    %1063 = tpu.dynamic_rotate %1022 by %c119_i32_588 dim 1 : vector<8x128xf32>, i32 -> vector<8x128xf32>
    %c137 = arith.constant 137 : index
    %c0_589 = arith.constant 0 : index
    %c0_590 = arith.constant 0 : index
    %1064 = vector.load %arg5[%c137, %c0_589, %c0_590] : memref<138x8x128xf32, #tpu.memory_space<vmem>>, vector<1x8x128xf32>
    %1065 = vector.shape_cast %1064 : vector<1x8x128xf32> to vector<8x128xf32>
    %1066 = arith.mulf %1063, %1065 : vector<8x128xf32>
    %1067 = arith.addf %1062, %1066 : vector<8x128xf32>
    %cst_591 = arith.constant dense<0.000000e+00> : vector<8x128xf32>
    %1068 = tpu.matmul %1020, %1067, %cst_591 {dimension_numbers = #tpu.dot_dimension_numbers<[1], [0], [0], [1], [0, 0, 1, 1], [], []>} : vector<8x8xf32>, vector<8x128xf32>, vector<8x128xf32> -> vector<8x128xf32>
    %cst_592 = arith.constant dense<0.000000e+00> : vector<8xf32>
    %1069 = vector.multi_reduction <add>, %1068, %cst_592 [1] : vector<8x128xf32> to vector<8xf32>
    %1070 = vector.shape_cast %1069 : vector<8xf32> to vector<8x1xf32>
    %cst_593 = arith.constant 7.812500e-03 : f32
    %1071 = vector.broadcast %cst_593 : f32 to vector<8x1xf32>
    %1072 = arith.mulf %1070, %1071 : vector<8x1xf32>
    %1073 = arith.mulf %1068, %1068 : vector<8x128xf32>
    %cst_594 = arith.constant dense<0.000000e+00> : vector<8xf32>
    %1074 = vector.multi_reduction <add>, %1073, %cst_594 [1] : vector<8x128xf32> to vector<8xf32>
    %1075 = vector.shape_cast %1074 : vector<8xf32> to vector<8x1xf32>
    %cst_595 = arith.constant 7.812500e-03 : f32
    %1076 = vector.broadcast %cst_595 : f32 to vector<8x1xf32>
    %1077 = arith.mulf %1075, %1076 : vector<8x1xf32>
    %1078 = arith.mulf %1072, %1072 : vector<8x1xf32>
    %1079 = arith.subf %1077, %1078 : vector<8x1xf32>
    %cst_596 = arith.constant 0.000000e+00 : f32
    %1080 = vector.broadcast %cst_596 : f32 to vector<8x1xf32>
    %1081 = arith.maximumf %1079, %1080 : vector<8x1xf32>
    %1082 = vector.broadcast %1072 : vector<8x1xf32> to vector<8x128xf32>
    %1083 = arith.subf %1068, %1082 : vector<8x128xf32>
    %cst_597 = arith.constant 9.99999974E-6 : f32
    %1084 = vector.broadcast %cst_597 : f32 to vector<8x1xf32>
    %1085 = arith.addf %1081, %1084 : vector<8x1xf32>
    %1086 = math.rsqrt %1085 : vector<8x1xf32>
    %1087 = vector.broadcast %1086 : vector<8x1xf32> to vector<8x128xf32>
    %1088 = arith.mulf %1083, %1087 : vector<8x128xf32>
    %1089 = vector.broadcast %942 : vector<8x1xf32> to vector<8x128xf32>
    %1090 = arith.mulf %1088, %1089 : vector<8x128xf32>
    %1091 = vector.broadcast %944 : vector<8x1xf32> to vector<8x128xf32>
    %1092 = arith.addf %1090, %1091 : vector<8x128xf32>
    %1093 = arith.addf %936, %1092 : vector<8x128xf32>
    %c0_598 = arith.constant 0 : index
    %c0_599 = arith.constant 0 : index
    %1094 = vector.load %arg8[%c0_598, %c0_599] : memref<16x128xf32, #tpu.memory_space<vmem>>, vector<8x128xf32>
    tpu.vector_store %arg8[%c0_598, %c0_599], %456 {strides = array<i32>} : memref<16x128xf32, #tpu.memory_space<vmem>>, vector<8x128xf32>,
    %c8_600 = arith.constant 8 : index
    %c0_601 = arith.constant 0 : index
    %1095 = vector.load %arg8[%c8_600, %c0_601] : memref<16x128xf32, #tpu.memory_space<vmem>>, vector<8x128xf32>
    tpu.vector_store %arg8[%c8_600, %c0_601], %1093 {strides = array<i32>} : memref<16x128xf32, #tpu.memory_space<vmem>>, vector<8x128xf32>,
    return
  }
}

</mosaic_0001>

<bundles_post_ra>
// kernel: tpu_custom_call.1
= control target key start
LH: loop header
LB: loop body
LE: loop exit
PB: predicated region body
PF: predicated region fallthrough
CT: control target
= control target key end

     0   :  { %13 = vsyncpa [#allocation3], 0  ;;  %s2810_s0 = inlined_call_operand.vmem [shape: f32[8,128], index: 0, kind: input, shape index: {}]   ;;  %s2811_s1 = inlined_call_operand.vmem [shape: f32[8,128], index: 1, kind: input, shape index: {}]   ;;  %s2812_s2 = inlined_call_operand.vmem [shape: f32[8,8], index: 2, kind: input, shape index: {}]   ;;  %s2813_s3 = inlined_call_operand.vmem [shape: f32[8,8], index: 3, kind: input, shape index: {}]   ;;  %s2814_s4 = inlined_call_operand.vmem [shape: f32[8,8,8], index: 4, kind: input, shape index: {}]   ;;  %s2815_s5 = inlined_call_operand.hbm [shape: f32[138,8,128], index: 5, kind: input, shape index: {}]   ;;  %s2816_s6 = inlined_call_operand.vmem [shape: f32[12,2,8,1], index: 6, kind: input, shape index: {}]   ;;  %s2817_s7 = inlined_call_operand.vmem [shape: f32[18], index: 7, kind: input, shape index: {}]   ;;  %s2818_s8 = inlined_call_operand.hbm [shape: f32[16,128], index: 8, kind: output, shape index: {}]  }
   0x1   :  { %14 = vsyncpa [#allocation5], 0 }
   0x2   :  { %15 = vsyncpa [#allocation4], 0  ;;  %s2246_s27 = smov [#allocation2]   ;;  %s46_s9 = sshll.u32 %s2817_s7, 4  ;;  %s47_s9 = int_to_ptr.vmem [resolvable:$true] %s46_s9 }
   0x3   :  { %s31_s28 = sshll.u32 %s2246_s27, 4  ;;  %s32_s28 = int_to_ptr.vmem [resolvable:$true] %s31_s28 }
   0x4   :  { %s2196_s10 = scalar_lea.vmem %s32_s28, 17664  ;;  %p2201_p1 = scmp.lt.s32.totalorder %s32_s28, %s32_s28 }
   0x5   :  { %p2197_p0 = scmp.ne.s32.totalorder %s32_s28, %s2196_s10  ;;  %p2202_p2 = scmp.lt.s32.totalorder %s2196_s10, %s2196_s10 }
   0x7   :  { %p2203_p3 = por %p2202_p2, %p2201_p1 }
   0x9   :  { %p2204_p4 = pnand %p2203_p3, %p2197_p0 }
   0xb   :  { %2207 = shalt.err (!%p2204_p4)
}
   0xc   :  { %s2819_s11 = smov 128   ;;  %s2248_s12 = smov 8  }
   0xd   :  { %37 = dma.hbm_to_vmem [thread:$0]  %s2815_s5, 17664, %s32_s28, [#allocation3], %s2819_s11, %s2819_s11, %s2248_s12  }
   0xe   :  { %s2208_s15 = scalar_lea.vmem %s47_s9, 16  ;;  %p2213_p6 = scmp.lt.s32.totalorder %s47_s9, %s47_s9 }
   0xf   :  { %p2209_p5 = scmp.ne.s32.totalorder %s47_s9, %s2208_s15  ;;  %p2214_p7 = scmp.lt.s32.totalorder %s2208_s15, %s2208_s15 }
  0x11   :  { %p2215_p8 = por %p2214_p7, %p2213_p6 }
  0x13   :  { %p2216_p9 = pnand %p2215_p8, %p2209_p5 }
  0x15   :  { %2219 = shalt.err (!%p2216_p9)
}
  0x16   :  { %s2249_s7 = smov [#allocation6]  }
  0x17   :  { %49 = dma.vmem_to_smem %s47_s9, 16, %s2249_s7, [#allocation5]  }
  0x18   :  { %2240 = dma.done.wait [#allocation3], 17664  }
  0x19   :  { %2241 = vsyncadd [#allocation3], 4294949632 }
  0x1a   :  { %2242 = dma.done.wait [#allocation5], 16  }
  0x1b   :  { %2243 = vsyncadd [#allocation5], 4294967280 }
  0x1c   :  { %56 = sfence }
  0x1d   :  { %v64_v0 = vld [vmem:[%s2810_s0] sm:$0xff]  ;;  %v2250_v1 = vmov 0.0   ;;  %vm2251_vm0 = vmmov 0   ;;  %vm67_vm1 = vcmask 64512   ;;  %v2252_v7 = vmov 0   ;;  %v2002_v9 = vld [vmem:[%s2816_s6 + $0x8] sm:$0xff] }
  0x1e   :  { %2065 = vmatprep.subr.mxu0 %v2250_v1  ;;  %v66_v2 = vmax.f32 %v64_v0, 0.0  ;;  %2067 = vmatprep.mubr.msk.f32.mxu0 %vm2251_vm0, %v2250_v1  ;;  %v65_v3 = vld [vmem:[%s2812_s2] sm:$0xff]  ;;  %s2255_s25 = smov 119   ;;  %s2256_s26 = smov 1   ;;  %v2004_v32 = vld [vmem:[%s2816_s6 + $0x18] sm:$0xff]  ;;  %v287_v33 = vld [vmem:[#allocation2 + $0x8] sm:$0xff] }
  0x1f   :  { %2070 = vmatprep.subr.mxu1 %v2250_v1  ;;  %2072 = vmatprep.mubr.msk.f32.mxu1 %vm2251_vm0, %v2250_v1  ;;  %v167_v4 = vld [vmem:[%s2811_s1] sm:$0xff]  ;;  %s2253_s1 = smov 9   ;;  %s2257_s27 = smov 127   ;;  %v293_v37 = vld [vmem:[#allocation2 + $0x10] sm:$0xff]  ;;  %v299_v42 = vld [vmem:[#allocation2 + $0x18] sm:$0xff] }
  0x20   :  { %2066 = vmatpush3.msra.mxu0 %v66_v2  ;;  %v57_v5 = vld [vmem:[%s2816_s6] sm:$0xff]  ;;  %v169_v6 = vmax.f32 %v167_v4, 0.0  ;;  %2162 = vset.pattern.permute.xlu1 %v2252_v7  ;;  %s2258_s28 = smov 121   ;;  %s2259_s29 = smov 120   ;;  %v309_v49 = vld [vmem:[#allocation2 + $0x28] sm:$0xff]  ;;  %v315_v52 = vld [vmem:[#allocation2 + $0x30] sm:$0xff] }
  0x21   :  { %2068 = vmatmul.mubr.msk.f32.vlgmr.msra.gmra.mxu0 %vm67_vm1, %v65_v3  ;;  %2075 = vmatprep.subr.mxu0 %v2250_v1  ;;  %v168_v8 = vld [vmem:[%s2813_s3] sm:$0xff]  ;;  %s2254_s3 = smov 7   ;;  %v321_v57 = vld [vmem:[#allocation2 + $0x38] sm:$0xff]  ;;  %s2260_s18 = smov 18  }
  0x22   :  { %2077 = vmatprep.mubr.msk.f32.mxu0 %vm2251_vm0, %v2250_v1  ;;  %2163 = vset.pattern.permute.xlu0 %v2252_v7  ;;  %v2007_v31 = vld [vmem:[%s2816_s6 + $0x20] sm:$0xff]  ;;  %s2261_s0 = smov 16   ;;  %s2262_s19 = smov 14  }
  0x23   :  { %157 = vperm.xlu1 %2162, %v57_v5   ;;  %2071 = vmatpush3.msra.mxu1 %v169_v6  ;;  %v281_v35 = vld [vmem:[#allocation2] sm:$0xff]  ;;  %s2263_s20 = smov 2   ;;  %s2264_s2 = smov 17  }
  0x24   :  { %2073 = vmatmul.mubr.msk.f32.vlgmr.msra.gmra.mxu1 %vm67_vm1, %v168_v8  ;;  %2080 = vmatprep.subr.mxu1 %v2250_v1  ;;  %v303_v47 = vld [vmem:[#allocation2 + $0x20] sm:$0xff]  ;;  %s2265_s21 = smov 126   ;;  %s2266_s22 = smov 10  }
  0x25   :  { %2082 = vmatprep.mubr.msk.f32.mxu1 %vm2251_vm0, %v2250_v1  ;;  %v327_v59 = vld [vmem:[#allocation2 + $0x40] sm:$0xff]  ;;  %s2825_s23 = smov 114   ;;  %s2822_s24 = smov 112  }
  0x26   :  { %v277_v4 = vld [vmem:[%s2814_s4] sm:$0xff]  ;;  %s2269_s30 = smov 6   ;;  %s2820_s9 = smov 110  }
  0x27   :  { %163 = vperm.xlu1 %2162, %v2002_v9   ;;  %v2008_v9 = vld [vmem:[%s2816_s6 + $0x28] sm:$0xff]  ;;  %s2271_s10 = smov 15   ;;  %s2824_s13 = smov 113  }
  0x28   :  { %s2273_s14 = smov 122   ;;  %s2274_s15 = smov 118  }
  0x29   :  { %s2275_s7 = smov 111   ;;  %s2281_s17 = smov 28  }
  0x2a   :  { %s2282_s5 = smov 12   ;;  %s2283_s11 = smov 4  }
  0x2b   :  { %s2284_s16 = smov 124  }
  0x9e   :  { %v158_v23 = vpop.permute.xlu1 %157 }
  0xa2   :  { %v164_v28 = vpop.permute.xlu1 %163 }
  0xe1   :  { %v137_v10 = vpop.f32.mrf.mxu0 }
  0xe2   :  { %141 = vadd.xlane.f32.xlu0 %v137_v10  ;;  %v144_v12 = vmul.f32 %v137_v10, %v137_v10 }
  0xe3   :  { %v2069_v11 = vpop.f32.mrf.mxu0 }
  0xe4   :  { %v2379_v13 = vpop.f32.mrf.mxu1 }
  0xe5   :  { %v246_v8 = vmul.f32 %v2379_v13, %v2379_v13 }
  0xe6   :  { %145 = vadd.xlane.f32.xlu0 %v144_v12  ;;  %v2074_v14 = vpop.f32.mrf.mxu1 }
 0x16b   :  { %v142_v15 = vpop.xlane.xlu0 %141 }
 0x16c   :  { %v143_v16 = vmul.f32 0.0078125, %v142_v15 }
 0x16e   :  { %v148_v18 = vmul.f32 %v143_v16, %v143_v16  ;;  %v151_v24 = vsub.f32 %v137_v10, %v143_v16  ;;  %v2003_v10 = vld [vmem:[%s2816_s6 + $0x10] sm:$0xff] }
 0x16f   :  { %v146_v17 = vpop.xlane.xlu0 %145 }
 0x170   :  { %v147_v19 = vmul.f32 0.0078125, %v146_v17 }
 0x172   :  { %v149_v20 = vsub.f32 %v147_v19, %v148_v18 }
 0x174   :  { %v150_v21 = vmax.f32 %v149_v20, 0.0 }
 0x176   :  { %v152_v22 = vadd.f32 1e-05, %v150_v21 }
 0x178   :  { %2164 = vrsqrt.f32 %v152_v22 }
 0x185   :  { %v2165_v25 = vpop.eup %2164 }
 0x186   :  { %v154_v26 = vmul.f32 %v2165_v25, %v151_v24 }
 0x188   :  { %v160_v27 = vmul.f32 %v158_v23, %v154_v26 }
 0x18a   :  { %v2381_v29 = vadd.f32 %v164_v28, %v160_v27 }
 0x18c   :  { %v278_v30 = vmax.f32 %v2381_v29, 0.0 }
 0x18e   :  { %284 = vrot.lane.b32.xlu1 %v278_v30, %s2248_s12  ;;  %279 = vrot.lane.b32.xlu0 %v278_v30, %s2253_s1  ;;  %v304_v51 = vmul.f32 %v303_v47, %v278_v30 }
 0x192   :  { %290 = vrot.lane.b32.xlu1 %v278_v30, %s2254_s3  ;;  %324 = vrot.lane.b32.xlu0 %v278_v30, %s2255_s25 }
 0x196   :  { %296 = vrot.lane.b32.xlu1 %v278_v30, %s2256_s26 }
 0x19a   :  { %306 = vrot.lane.b32.xlu1 %v278_v30, %s2257_s27 }
 0x19e   :  { %312 = vrot.lane.b32.xlu1 %v278_v30, %s2258_s28 }
 0x1a2   :  { %318 = vrot.lane.b32.xlu1 %v278_v30, %s2259_s29 }
 0x1c6   :  { %243 = vadd.xlane.f32.xlu1 %v2379_v13 }
 0x1d7   :  { %419 = vperm.xlu1 %2162, %v2007_v31  }
 0x1db   :  { %265 = vperm.xlu1 %2162, %v2004_v32  }
 0x200   :  { %v285_v34 = vpop.permute.xlu1 %284  ;;  %v280_v36 = vpop.permute.xlu0 %279 }
 0x201   :  { %v288_v38 = vmul.f32 %v287_v33, %v285_v34  ;;  %v282_v39 = vmul.f32 %v281_v35, %v280_v36 }
 0x203   :  { %v289_v43 = vadd.f32 %v288_v38, %v282_v39 }
 0x204   :  { %v291_v40 = vpop.permute.xlu1 %290  ;;  %v325_v60 = vpop.permute.xlu0 %324 }
 0x205   :  { %v294_v41 = vmul.f32 %v293_v37, %v291_v40  ;;  %v328_v0 = vmul.f32 %v327_v59, %v325_v60  ;;  %v447_v60 = vld [vmem:[#allocation2 + $0x58] sm:$0xff] }
 0x207   :  { %v295_v45 = vadd.f32 %v294_v41, %v289_v43 }
 0x208   :  { %v297_v44 = vpop.permute.xlu1 %296 }
 0x209   :  { %v300_v46 = vmul.f32 %v299_v42, %v297_v44 }
 0x20b   :  { %v301_v48 = vadd.f32 %v300_v46, %v295_v45 }
 0x20c   :  { %v307_v50 = vpop.permute.xlu1 %306 }
 0x20d   :  { %v305_v53 = vadd.f32 %v304_v51, %v301_v48  ;;  %v310_v54 = vmul.f32 %v309_v49, %v307_v50 }
 0x20f   :  { %v311_v58 = vadd.f32 %v310_v54, %v305_v53  ;;  %v594_v54 = vld [vmem:[#allocation2 + $0x90] sm:$0xff] }
 0x210   :  { %v313_v55 = vpop.permute.xlu1 %312 }
 0x211   :  { %v316_v56 = vmul.f32 %v315_v52, %v313_v55  ;;  %v600_v52 = vld [vmem:[#allocation2 + $0x98] sm:$0xff]  ;;  %v606_v55 = vld [vmem:[#allocation2 + $0xa0] sm:$0xff] }
 0x213   :  { %v317_v62 = vadd.f32 %v316_v56, %v311_v58  ;;  %v441_v58 = vld [vmem:[#allocation2 + $0x50] sm:$0xff] }
 0x214   :  { %v319_v61 = vpop.permute.xlu1 %318 }
 0x215   :  { %v322_v63 = vmul.f32 %v321_v57, %v319_v61  ;;  %v435_v57 = vld [vmem:[#allocation2 + $0x48] sm:$0xff] }
 0x216   :  { %v612_v61 = vld [vmem:[#allocation2 + $0xa8] sm:$0xff] }
 0x217   :  { %v323_v2 = vadd.f32 %v322_v63, %v317_v62 }
 0x219   :  { %v329_v3 = vadd.f32 %v328_v0, %v323_v2 }
 0x21b   :  { %2076 = vmatpush3.msra.mxu0 %v329_v3 }
 0x21c   :  { %2078 = vmatmul.mubr.msk.f32.vlgmr.msra.gmra.mxu0 %vm67_vm1, %v277_v4  ;;  %2085 = vmatprep.subr.mxu0 %v2250_v1  ;;  %v453_v4 = vld [vmem:[#allocation2 + $0x60] sm:$0xff] }
 0x21d   :  { %2087 = vmatprep.mubr.msk.f32.mxu0 %vm2251_vm0, %v2250_v1 }
 0x24f   :  { %v244_v11 = vpop.xlane.xlu1 %243 }
 0x250   :  { %v245_v18 = vmul.f32 0.0078125, %v244_v11 }
 0x252   :  { %v250_v22 = vmul.f32 %v245_v18, %v245_v18  ;;  %v253_v33 = vsub.f32 %v2379_v13, %v245_v18  ;;  %v622_v18 = vld [vmem:[#allocation2 + $0xb8] sm:$0xff] }
 0x253   :  { %v420_v12 = vpop.permute.xlu1 %419 }
 0x257   :  { %v266_v14 = vpop.permute.xlu1 %265 }
 0x2dc   :  { %v399_v5 = vpop.f32.mrf.mxu0 }
 0x2dd   :  { %403 = vadd.xlane.f32.xlu0 %v399_v5  ;;  %v406_v6 = vmul.f32 %v399_v5, %v399_v5 }
 0x2de   :  { %v2079_v7 = vpop.f32.mrf.mxu0 }
 0x2df   :  { %407 = vadd.xlane.f32.xlu1 %v406_v6 }
 0x2e1   :  { %247 = vadd.xlane.f32.xlu0 %v246_v8 }
 0x2f0   :  { %425 = vperm.xlu1 %2162, %v2008_v9  }
 0x2f7   :  { %259 = vperm.xlu0 %2163, %v2003_v10   ;;  %v457_v10 = vld [vmem:[#allocation2 + $0x68] sm:$0xff] }
 0x366   :  { %v404_v15 = vpop.xlane.xlu0 %403 }
 0x367   :  { %v405_v16 = vmul.f32 0.0078125, %v404_v15 }
 0x368   :  { %v408_v17 = vpop.xlane.xlu1 %407 }
 0x369   :  { %v410_v19 = vmul.f32 %v405_v16, %v405_v16  ;;  %v409_v20 = vmul.f32 0.0078125, %v408_v17  ;;  %v413_v31 = vsub.f32 %v399_v5, %v405_v16  ;;  %v463_v16 = vld [vmem:[#allocation2 + $0x70] sm:$0xff] }
 0x36a   :  { %v248_v21 = vpop.xlane.xlu0 %247  ;;  %v616_v17 = vld [vmem:[#allocation2 + $0xb0] sm:$0xff] }
 0x36b   :  { %v411_v23 = vsub.f32 %v409_v20, %v410_v19  ;;  %v249_v24 = vmul.f32 0.0078125, %v248_v21 }
 0x36c   :  { %v426_v39 = vpop.permute.xlu1 %425 }
 0x36d   :  { %v412_v25 = vmax.f32 %v411_v23, 0.0  ;;  %v251_v26 = vsub.f32 %v249_v24, %v250_v22  ;;  %v469_v22 = vld [vmem:[#allocation2 + $0x78] sm:$0xff]  ;;  %v628_v23 = vld [vmem:[#allocation2 + $0xc0] sm:$0xff] }
 0x36f   :  { %v414_v27 = vadd.f32 1e-05, %v412_v25  ;;  %v252_v28 = vmax.f32 %v251_v26, 0.0  ;;  %v475_v26 = vld [vmem:[#allocation2 + $0x80] sm:$0xff] }
 0x371   :  { %2166 = vrsqrt.f32 %v414_v27  ;;  %v254_v30 = vadd.f32 1e-05, %v252_v28 }
 0x372   :  { %v260_v36 = vpop.permute.xlu0 %259 }
 0x373   :  { %2168 = vrsqrt.f32 %v254_v30 }
 0x37e   :  { %v2167_v32 = vpop.eup %2166 }
 0x37f   :  { %v416_v34 = vmul.f32 %v2167_v32, %v413_v31  ;;  %v935_v31 = vld [vmem:[#allocation2 + $0x170] sm:$0xff] }
 0x380   :  { %v2169_v35 = vpop.eup %2168 }
 0x381   :  { %v422_v37 = vmul.f32 %v420_v12, %v416_v34  ;;  %v256_v38 = vmul.f32 %v2169_v35, %v253_v33  ;;  %v634_v33 = vld [vmem:[#allocation2 + $0xc8] sm:$0xff] }
 0x383   :  { %v428_v40 = vadd.f32 %v426_v39, %v422_v37  ;;  %v262_v41 = vmul.f32 %v260_v36, %v256_v38  ;;  %v929_v38 = vld [vmem:[#allocation2 + $0x168] sm:$0xff] }
 0x385   :  { %v2415_v42 = vmax.f32 %v428_v40, 0.0  ;;  %v2417_v43 = vadd.f32 %v266_v14, %v262_v41  ;;  %v481_v40 = vld [vmem:[#allocation2 + $0x88] sm:$0xff] }
 0x387   :  { %v2420_v44 = vmax.f32 %v2417_v43, 0.0  ;;  %444 = vrot.lane.b32.xlu0 %v2415_v42, %s2254_s3  ;;  %v458_v20 = vmul.f32 %v457_v10, %v2415_v42 }
 0x389   :  { %591 = vrot.lane.b32.xlu1 %v2420_v44, %s2260_s18  ;;  %v617_v28 = vmul.f32 %v616_v17, %v2420_v44  ;;  %v967_v17 = vld [vmem:[#allocation2 + $0x1a0] sm:$0xff] }
 0x38b   :  { %450 = vrot.lane.b32.xlu0 %v2415_v42, %s2256_s26 }
 0x38d   :  { %597 = vrot.lane.b32.xlu1 %v2420_v44, %s2261_s0 }
 0x38f   :  { %460 = vrot.lane.b32.xlu0 %v2415_v42, %s2257_s27 }
 0x391   :  { %603 = vrot.lane.b32.xlu1 %v2420_v44, %s2262_s19 }
 0x393   :  { %466 = vrot.lane.b32.xlu0 %v2415_v42, %s2258_s28 }
 0x395   :  { %609 = vrot.lane.b32.xlu1 %v2420_v44, %s2263_s20 }
 0x397   :  { %472 = vrot.lane.b32.xlu0 %v2415_v42, %s2259_s29 }
 0x399   :  { %432 = vrot.lane.b32.xlu1 %v2415_v42, %s2253_s1 }
 0x39b   :  { %478 = vrot.lane.b32.xlu0 %v2415_v42, %s2255_s25 }
 0x39d   :  { %438 = vrot.lane.b32.xlu1 %v2415_v42, %s2248_s12 }
 0x39f   :  { %932 = vrot.lane.b32.xlu0 %v2420_v44, %s2264_s2 }
 0x3a1   :  { %619 = vrot.lane.b32.xlu1 %v2420_v44, %s2265_s21 }
 0x3a3   :  { %952 = vrot.lane.b32.xlu0 %v2420_v44, %s2266_s22 }
 0x3a5   :  { %625 = vrot.lane.b32.xlu1 %v2420_v44, %s2825_s23 }
 0x3a7   :  { %964 = vrot.lane.b32.xlu0 %v2420_v44, %s2248_s12 }
 0x3a9   :  { %631 = vrot.lane.b32.xlu1 %v2420_v44, %s2822_s24 }
 0x3ab   :  { %976 = vrot.lane.b32.xlu0 %v2420_v44, %s2269_s30 }
 0x3ad   :  { %637 = vrot.lane.b32.xlu1 %v2420_v44, %s2820_s9 }
 0x3af   :  { %996 = vrot.lane.b32.xlu0 %v2420_v44, %s2257_s27 }
 0x3b1   :  { %942 = vrot.lane.b32.xlu1 %v2420_v44, %s2271_s10 }
 0x3b3   :  { %1012 = vrot.lane.b32.xlu0 %v2420_v44, %s2258_s28 }
 0x3b5   :  { %958 = vrot.lane.b32.xlu1 %v2420_v44, %s2253_s1 }
 0x3b7   :  { %1024 = vrot.lane.b32.xlu0 %v2420_v44, %s2255_s25 }
 0x3b9   :  { %970 = vrot.lane.b32.xlu1 %v2420_v44, %s2254_s3 }
 0x3bb   :  { %1040 = vrot.lane.b32.xlu0 %v2420_v44, %s2824_s13  ;;  %s2276_s13 = smov 34  }
 0x3bd   :  { %986 = vrot.lane.b32.xlu1 %v2420_v44, %s2256_s26 }
 0x3c1   :  { %1006 = vrot.lane.b32.xlu1 %v2420_v44, %s2273_s14 }
 0x3c5   :  { %1018 = vrot.lane.b32.xlu1 %v2420_v44, %s2259_s29 }
 0x3c9   :  { %1030 = vrot.lane.b32.xlu1 %v2420_v44, %s2274_s15 }
 0x3cd   :  { %1050 = vrot.lane.b32.xlu1 %v2420_v44, %s2275_s7 }
 0x3f9   :  { %v445_v13 = vpop.permute.xlu0 %444 }
 0x3fa   :  { %v448_v5 = vmul.f32 %v447_v60, %v445_v13 }
 0x3fb   :  { %v2486_v45 = vpop.permute.xlu1 %591 }
 0x3fc   :  { %v595_v63 = vmul.f32 %v594_v54, %v2486_v45 }
 0x3fd   :  { %v451_v46 = vpop.permute.xlu0 %450 }
 0x3fe   :  { %v454_v12 = vmul.f32 %v453_v4, %v451_v46  ;;  %v949_v4 = vld [vmem:[#allocation2 + $0x188] sm:$0xff] }
 0x3ff   :  { %v2488_v47 = vpop.permute.xlu1 %597 }
 0x400   :  { %v601_v59 = vmul.f32 %v600_v52, %v2488_v47  ;;  %v640_v52 = vld [vmem:[#allocation2 + $0xd0] sm:$0xff] }
 0x401   :  { %v461_v48 = vpop.permute.xlu0 %460 }
 0x402   :  { %v602_v6 = vadd.f32 %v601_v59, %v595_v63  ;;  %v464_v25 = vmul.f32 %v463_v16, %v461_v48 }
 0x403   :  { %v2490_v49 = vpop.permute.xlu1 %603 }
 0x404   :  { %v607_v0 = vmul.f32 %v606_v55, %v2490_v49 }
 0x405   :  { %v467_v50 = vpop.permute.xlu0 %466 }
 0x406   :  { %v608_v14 = vadd.f32 %v607_v0, %v602_v6  ;;  %v470_v34 = vmul.f32 %v469_v22, %v467_v50  ;;  %v945_v0 = vld [vmem:[#allocation2 + $0x180] sm:$0xff] }
 0x407   :  { %v2492_v51 = vpop.permute.xlu1 %609 }
 0x408   :  { %v613_v7 = vmul.f32 %v612_v61, %v2492_v51 }
 0x409   :  { %v473_v56 = vpop.permute.xlu0 %472 }
 0x40a   :  { %v614_v19 = vadd.f32 %v613_v7, %v608_v14  ;;  %v476_v39 = vmul.f32 %v475_v26, %v473_v56 }
 0x40b   :  { %v433_v53 = vpop.permute.xlu1 %432 }
 0x40c   :  { %v436_v2 = vmul.f32 %v435_v57, %v433_v53  ;;  %v618_v36 = vadd.f32 %v617_v28, %v614_v19  ;;  %v930_v53 = vmul.f32 %v929_v38, %v2486_v45  ;;  %v939_v57 = vld [vmem:[#allocation2 + $0x178] sm:$0xff] }
 0x40d   :  { %v479_v9 = vpop.permute.xlu0 %478  ;;  %v983_v28 = vld [vmem:[#allocation2 + $0x1b8] sm:$0xff] }
 0x40e   :  { %v482_v54 = vmul.f32 %v481_v40, %v479_v9  ;;  %v999_v40 = vld [vmem:[#allocation2 + $0x1d0] sm:$0xff] }
 0x40f   :  { %v439_v62 = vpop.permute.xlu1 %438 }
 0x410   :  { %v442_v3 = vmul.f32 %v441_v58, %v439_v62  ;;  %v2012_v62 = vld [vmem:[%s2814_s4 + $0x8] sm:$0xff] }
 0x411   :  { %v933_v32 = vpop.permute.xlu0 %932 }
 0x412   :  { %v443_v8 = vadd.f32 %v442_v3, %v436_v2  ;;  %v936_v42 = vmul.f32 %v935_v31, %v933_v32  ;;  %v940_v2 = vmul.f32 %v939_v57, %v2488_v47  ;;  %v2016_v3 = vld [vmem:[%s2814_s4 + $0x10] sm:$0xff]  ;;  %v950_v47 = vmul.f32 %v949_v4, %v2490_v49 }
 0x413   :  { %v2498_v11 = vpop.permute.xlu1 %619 }
 0x414   :  { %v449_v15 = vadd.f32 %v448_v5, %v443_v8  ;;  %v623_v30 = vmul.f32 %v622_v18, %v2498_v11  ;;  %v937_v59 = vadd.f32 %v936_v42, %v930_v53  ;;  %v955_v8 = vld [vmem:[#allocation2 + $0x190] sm:$0xff] }
 0x415   :  { %v953_v63 = vpop.permute.xlu0 %952 }
 0x416   :  { %v455_v21 = vadd.f32 %v454_v12, %v449_v15  ;;  %v624_v13 = vadd.f32 %v623_v30, %v618_v36  ;;  %v941_v6 = vadd.f32 %v940_v2, %v937_v59  ;;  %v961_v12 = vld [vmem:[#allocation2 + $0x198] sm:$0xff]  ;;  %v956_v15 = vmul.f32 %v955_v8, %v953_v63  ;;  %v1015_v59 = vld [vmem:[#allocation2 + $0x1e8] sm:$0xff] }
 0x417   :  { %v2501_v24 = vpop.permute.xlu1 %625 }
 0x418   :  { %v459_v27 = vadd.f32 %v458_v20, %v455_v21  ;;  %v629_v37 = vmul.f32 %v628_v23, %v2501_v24  ;;  %v973_v20 = vld [vmem:[#allocation2 + $0x1a8] sm:$0xff] }
 0x419   :  { %v965_v10 = vpop.permute.xlu0 %964 }
 0x41a   :  { %v465_v35 = vadd.f32 %v464_v25, %v459_v27  ;;  %v630_v55 = vadd.f32 %v629_v37, %v624_v13  ;;  %v968_v22 = vmul.f32 %v967_v17, %v965_v10  ;;  %v979_v25 = vld [vmem:[#allocation2 + $0x1b0] sm:$0xff]  ;;  %v993_v37 = vld [vmem:[#allocation2 + $0x1c8] sm:$0xff]  ;;  %v1053_v17 = vld [vmem:[#allocation2 + $0x220] sm:$0xff] }
 0x41b   :  { %v2506_v41 = vpop.permute.xlu1 %631  ;;  %v994_v13 = vmul.f32 %v993_v37, %v2420_v44 }
 0x41c   :  { %v635_v46 = vmul.f32 %v634_v33, %v2506_v41  ;;  %v471_v48 = vadd.f32 %v470_v34, %v465_v35  ;;  %v989_v33 = vld [vmem:[#allocation2 + $0x1c0] sm:$0xff]  ;;  %v984_v34 = vmul.f32 %v983_v28, %v2492_v51 }
 0x41d   :  { %v977_v26 = vpop.permute.xlu0 %976 }
 0x41e   :  { %v477_v50 = vadd.f32 %v476_v39, %v471_v48  ;;  %v636_v60 = vadd.f32 %v635_v46, %v630_v55  ;;  %v980_v31 = vmul.f32 %v979_v25, %v977_v26  ;;  %v1003_v48 = vld [vmem:[#allocation2 + $0x1d8] sm:$0xff]  ;;  %v1009_v55 = vld [vmem:[#allocation2 + $0x1e0] sm:$0xff] }
 0x41f   :  { %v2510_v58 = vpop.permute.xlu1 %637 }
 0x420   :  { %v641_v56 = vmul.f32 %v640_v52, %v2510_v58  ;;  %v483_v61 = vadd.f32 %v482_v54, %v477_v50  ;;  %v1004_v50 = vmul.f32 %v1003_v48, %v2498_v11  ;;  %v1043_v11 = vld [vmem:[#allocation2 + $0x210] sm:$0xff] }
 0x421   :  { %v997_v36 = vpop.permute.xlu0 %996 }
 0x422   :  { %v642_v45 = vadd.f32 %v641_v56, %v636_v60  ;;  %2081 = vmatpush3.msra.mxu1 %v483_v61  ;;  %v1000_v52 = vmul.f32 %v999_v40, %v997_v36  ;;  %v1021_v61 = vld [vmem:[#allocation2 + $0x1f0] sm:$0xff] }
 0x423   :  { %v943_v5 = vpop.permute.xlu1 %942  ;;  %2090 = vmatprep.subr.mxu1 %v2250_v1  ;;  %2083 = vmatmul.mubr.msk.f32.vlgmr.msra.gmra.mxu1 %vm67_vm1, %v2012_v62 }
 0x424   :  { %v946_v7 = vmul.f32 %v945_v0, %v943_v5  ;;  %2086 = vmatpush3.msra.mxu0 %v642_v45  ;;  %2092 = vmatprep.mubr.msk.f32.mxu1 %vm2251_vm0, %v2250_v1  ;;  %v1027_v0 = vld [vmem:[#allocation2 + $0x1f8] sm:$0xff] }
 0x425   :  { %2088 = vmatmul.mubr.msk.f32.vlgmr.msra.gmra.mxu0 %vm67_vm1, %v2016_v3  ;;  %2095 = vmatprep.subr.mxu0 %v2250_v1  ;;  %v1013_v54 = vpop.permute.xlu0 %1012  ;;  %v1033_v3 = vld [vmem:[#allocation2 + $0x200] sm:$0xff] }
 0x426   :  { %v947_v9 = vadd.f32 %v946_v7, %v941_v6  ;;  %2097 = vmatprep.mubr.msk.f32.mxu0 %vm2251_vm0, %v2250_v1  ;;  %v1016_v62 = vmul.f32 %v1015_v59, %v1013_v54  ;;  %v1037_v7 = vld [vmem:[#allocation2 + $0x208] sm:$0xff] }
 0x427   :  { %v959_v14 = vpop.permute.xlu1 %958  ;;  %v1038_v10 = vmul.f32 %v1037_v7, %v2501_v24  ;;  %v2029_v24 = vld [vmem:[%s2814_s4 + $0x18] sm:$0xff] }
 0x428   :  { %v951_v16 = vadd.f32 %v950_v47, %v947_v9  ;;  %v962_v19 = vmul.f32 %v961_v12, %v959_v14  ;;  %v1047_v14 = vld [vmem:[#allocation2 + $0x218] sm:$0xff] }
 0x429   :  { %v1025_v2 = vpop.permute.xlu0 %1024 }
 0x42a   :  { %v957_v18 = vadd.f32 %v956_v15, %v951_v16  ;;  %v1028_v5 = vmul.f32 %v1027_v0, %v1025_v2 }
 0x42b   :  { %v971_v21 = vpop.permute.xlu1 %970 }
 0x42c   :  { %v963_v23 = vadd.f32 %v962_v19, %v957_v18  ;;  %v974_v49 = vmul.f32 %v973_v20, %v971_v21  ;;  %v1048_v19 = vmul.f32 %v1047_v14, %v2506_v41  ;;  %v1057_v21 = vld [vmem:[#allocation2 + $0x228] sm:$0xff]  ;;  %v757_v14 = vld [vmem:[#allocation2 + $0xd8] sm:$0xff] }
 0x42d   :  { %v1041_v9 = vpop.permute.xlu0 %1040  ;;  %v1058_v25 = vmul.f32 %v1057_v21, %v2510_v58  ;;  %v774_v21 = vld [vmem:[#allocation2 + $0xf0] sm:$0xff] }
 0x42e   :  { %v969_v27 = vadd.f32 %v968_v22, %v963_v23  ;;  %v1044_v15 = vmul.f32 %v1043_v11, %v1041_v9 }
 0x42f   :  { %v987_v30 = vpop.permute.xlu1 %986 }
 0x430   :  { %v975_v32 = vadd.f32 %v974_v49, %v969_v27  ;;  %v990_v39 = vmul.f32 %v989_v33, %v987_v30  ;;  %v2014_v33 = vld [vmem:[%s2816_s6 + $0x40] sm:$0xff] }
 0x432   :  { %v981_v35 = vadd.f32 %v980_v31, %v975_v32  ;;  %v2009_v31 = vld [vmem:[%s2816_s6 + $0x30] sm:$0xff]  ;;  %v2010_v32 = vld [vmem:[%s2816_s6 + $0x38] sm:$0xff] }
 0x433   :  { %v1007_v42 = vpop.permute.xlu1 %1006 }
 0x434   :  { %v985_v38 = vadd.f32 %v984_v34, %v981_v35  ;;  %v1010_v56 = vmul.f32 %v1009_v55, %v1007_v42  ;;  %v2015_v34 = vld [vmem:[%s2816_s6 + $0x48] sm:$0xff] }
 0x436   :  { %v991_v46 = vadd.f32 %v990_v39, %v985_v38 }
 0x437   :  { %v1019_v51 = vpop.permute.xlu1 %1018 }
 0x438   :  { %v995_v53 = vadd.f32 %v994_v13, %v991_v46  ;;  %v1022_v44 = vmul.f32 %v1021_v61, %v1019_v51 }
 0x43a   :  { %v1001_v57 = vadd.f32 %v1000_v52, %v995_v53 }
 0x43b   :  { %v1031_v4 = vpop.permute.xlu1 %1030 }
 0x43c   :  { %v1005_v60 = vadd.f32 %v1004_v50, %v1001_v57  ;;  %v1034_v47 = vmul.f32 %v1033_v3, %v1031_v4 }
 0x43e   :  { %v1011_v63 = vadd.f32 %v1010_v56, %v1005_v60 }
 0x43f   :  { %v1051_v18 = vpop.permute.xlu1 %1050 }
 0x440   :  { %v1017_v45 = vadd.f32 %v1016_v62, %v1011_v63  ;;  %v1054_v23 = vmul.f32 %v1053_v17, %v1051_v18 }
 0x442   :  { %v1023_v6 = vadd.f32 %v1022_v44, %v1017_v45 }
 0x444   :  { %v1029_v8 = vadd.f32 %v1028_v5, %v1023_v6 }
 0x446   :  { %v1035_v12 = vadd.f32 %v1034_v47, %v1029_v8 }
 0x448   :  { %v1039_v16 = vadd.f32 %v1038_v10, %v1035_v12  ;;  %v762_v10 = vld [vmem:[#allocation2 + $0xe0] sm:$0xff] }
 0x44a   :  { %v1045_v20 = vadd.f32 %v1044_v15, %v1039_v16  ;;  %v768_v15 = vld [vmem:[#allocation2 + $0xe8] sm:$0xff] }
 0x44c   :  { %v1049_v22 = vadd.f32 %v1048_v19, %v1045_v20 }
 0x44e   :  { %v1055_v26 = vadd.f32 %v1054_v23, %v1049_v22 }
 0x450   :  { %v1059_v27 = vadd.f32 %v1058_v25, %v1055_v26  ;;  %v778_v26 = vld [vmem:[#allocation2 + $0xf8] sm:$0xff] }
 0x452   :  { %2091 = vmatpush3.msra.mxu1 %v1059_v27 }
 0x453   :  { %2093 = vmatmul.mubr.msk.f32.vlgmr.msra.gmra.mxu1 %vm67_vm1, %v2029_v24  ;;  %2100 = vmatprep.subr.mxu1 %v2250_v1  ;;  %v779_v24 = vadd.f32 %v778_v26, %v2417_v43  ;;  %v2020_v26 = vld [vmem:[%s2816_s6 + $0x50] sm:$0xff] }
 0x454   :  { %2102 = vmatprep.mubr.msk.f32.mxu1 %vm2251_vm0, %v2250_v1 }
 0x4e3   :  { %v553_v41 = vpop.f32.mrf.mxu1 }
 0x4e4   :  { %v560_v37 = vmul.f32 %v553_v41, %v553_v41 }
 0x4e5   :  { %v712_v49 = vpop.f32.mrf.mxu0  ;;  %v2084_v28 = vpop.f32.mrf.mxu1 }
 0x4e6   :  { %716 = vadd.xlane.f32.xlu1 %v712_v49  ;;  %v719_v30 = vmul.f32 %v712_v49, %v712_v49 }
 0x4e7   :  { %v2089_v58 = vpop.f32.mrf.mxu0 }
 0x4e8   :  { %720 = vadd.xlane.f32.xlu0 %v719_v30 }
 0x4f7   :  { %573 = vperm.xlu1 %2162, %v2009_v31   ;;  %v790_v31 = vld [vmem:[#allocation2 + $0x108] sm:$0xff] }
 0x4fb   :  { %579 = vperm.xlu1 %2162, %v2010_v32  }
 0x4fe   :  { %732 = vperm.xlu0 %2163, %v2014_v33  }
 0x4ff   :  { %738 = vperm.xlu1 %2162, %v2015_v34  }
 0x502   :  { %754 = vrot.lane.b32.xlu0 %v2417_v43, %s2253_s1 }
 0x503   :  { %759 = vrot.lane.b32.xlu1 %v2417_v43, %s2248_s12 }
 0x507   :  { %771 = vrot.lane.b32.xlu1 %v2417_v43, %s2256_s26 }
 0x50b   :  { %787 = vrot.lane.b32.xlu1 %v2417_v43, %s2258_s28 }
 0x50f   :  { %793 = vrot.lane.b32.xlu1 %v2417_v43, %s2259_s29 }
 0x513   :  { %799 = vrot.lane.b32.xlu1 %v2417_v43, %s2255_s25  ;;  %v2566_v35 = vpop.f32.mrf.mxu1 }
 0x514   :  { %v1136_v38 = vmul.f32 %v2566_v35, %v2566_v35 }
 0x515   :  { %v2094_v36 = vpop.f32.mrf.mxu1 }
 0x516   :  { %v796_v36 = vld [vmem:[#allocation2 + $0x110] sm:$0xff] }
 0x521   :  { %557 = vadd.xlane.f32.xlu0 %v553_v41 }
 0x525   :  { %561 = vadd.xlane.f32.xlu0 %v560_v37 }
 0x537   :  { %1137 = vadd.xlane.f32.xlu1 %v1136_v38 }
 0x53b   :  { %765 = vrot.lane.b32.xlu0 %v2417_v43, %s2254_s3 }
 0x53f   :  { %781 = vrot.lane.b32.xlu0 %v2417_v43, %s2257_s27 }
 0x55e   :  { %1133 = vadd.xlane.f32.xlu0 %v2566_v35 }
 0x56f   :  { %v717_v39 = vpop.xlane.xlu1 %716 }
 0x570   :  { %v718_v42 = vmul.f32 0.0078125, %v717_v39  ;;  %v802_v39 = vld [vmem:[#allocation2 + $0x118] sm:$0xff] }
 0x571   :  { %v721_v40 = vpop.xlane.xlu0 %720 }
 0x572   :  { %v723_v46 = vmul.f32 %v718_v42, %v718_v42  ;;  %v722_v48 = vmul.f32 0.0078125, %v721_v40  ;;  %v726_v2 = vsub.f32 %v712_v49, %v718_v42  ;;  %v784_v49 = vld [vmem:[#allocation2 + $0x100] sm:$0xff] }
 0x573   :  { %v574_v63 = vpop.permute.xlu1 %573 }
 0x574   :  { %v724_v52 = vsub.f32 %v722_v48, %v723_v46  ;;  %v2026_v48 = vld [vmem:[%s2816_s6 + $0x78] sm:$0xff] }
 0x576   :  { %v725_v54 = vmax.f32 %v724_v52, 0.0  ;;  %v2025_v52 = vld [vmem:[%s2816_s6 + $0x70] sm:$0xff] }
 0x577   :  { %v580_v44 = vpop.permute.xlu1 %579 }
 0x578   :  { %v727_v57 = vadd.f32 1e-05, %v725_v54 }
 0x579   :  { %v733_v13 = vpop.permute.xlu0 %732 }
 0x57a   :  { %2170 = vrsqrt.f32 %v727_v57 }
 0x57b   :  { %v739_v8 = vpop.permute.xlu1 %738 }
 0x57d   :  { %v755_v53 = vpop.permute.xlu0 %754 }
 0x57e   :  { %v758_v18 = vadd.f32 %v757_v14, %v755_v53 }
 0x57f   :  { %v760_v12 = vpop.permute.xlu1 %759 }
 0x580   :  { %v763_v17 = vadd.f32 %v762_v10, %v760_v12 }
 0x582   :  { %v764_v20 = vmax.f32 %v758_v18, %v763_v17 }
 0x583   :  { %v772_v22 = vpop.permute.xlu1 %771 }
 0x584   :  { %v775_v25 = vadd.f32 %v774_v21, %v772_v22 }
 0x587   :  { %v2171_v0 = vpop.eup %2170 }
 0x588   :  { %v729_v45 = vmul.f32 %v2171_v0, %v726_v2 }
 0x58a   :  { %v735_v5 = vmul.f32 %v733_v13, %v729_v45  ;;  %v861_v45 = vld [vmem:[#allocation2 + $0x140] sm:$0xff] }
 0x58c   :  { %v741_v47 = vadd.f32 %v739_v8, %v735_v5  ;;  %v873_v8 = vld [vmem:[#allocation2 + $0x150] sm:$0xff] }
 0x5aa   :  { %v558_v55 = vpop.xlane.xlu0 %557 }
 0x5ab   :  { %v559_v50 = vmul.f32 0.0078125, %v558_v55  ;;  %v839_v55 = vld [vmem:[#allocation2 + $0x120] sm:$0xff] }
 0x5ad   :  { %v564_v51 = vmul.f32 %v559_v50, %v559_v50  ;;  %v567_v3 = vsub.f32 %v553_v41, %v559_v50  ;;  %v788_v41 = vpop.permute.xlu1 %787  ;;  %v845_v50 = vld [vmem:[#allocation2 + $0x128] sm:$0xff] }
 0x5ae   :  { %v562_v59 = vpop.xlane.xlu0 %561  ;;  %v791_v34 = vadd.f32 %v790_v31, %v788_v41 }
 0x5af   :  { %v563_v60 = vmul.f32 0.0078125, %v562_v59 }
 0x5b1   :  { %v565_v56 = vsub.f32 %v563_v60, %v564_v51  ;;  %v794_v33 = vpop.permute.xlu1 %793 }
 0x5b2   :  { %v766_v16 = vpop.permute.xlu0 %765  ;;  %v797_v38 = vadd.f32 %v796_v36, %v794_v33 }
 0x5b3   :  { %v566_v61 = vmax.f32 %v565_v56, 0.0  ;;  %v769_v19 = vadd.f32 %v768_v15, %v766_v16  ;;  %v851_v56 = vld [vmem:[#allocation2 + $0x130] sm:$0xff]  ;;  %v879_v15 = vld [vmem:[#allocation2 + $0x158] sm:$0xff]  ;;  %v885_v16 = vld [vmem:[#allocation2 + $0x160] sm:$0xff] }
 0x5b5   :  { %v568_v62 = vadd.f32 1e-05, %v566_v61  ;;  %v770_v23 = vmax.f32 %v764_v20, %v769_v19  ;;  %v800_v40 = vpop.permute.xlu1 %799  ;;  %v857_v61 = vld [vmem:[#allocation2 + $0x138] sm:$0xff] }
 0x5b6   :  { %v782_v28 = vpop.permute.xlu0 %781  ;;  %v803_v13 = vadd.f32 %v802_v39, %v800_v40 }
 0x5b7   :  { %2172 = vrsqrt.f32 %v568_v62  ;;  %v776_v27 = vmax.f32 %v770_v23, %v775_v25  ;;  %v785_v58 = vadd.f32 %v784_v49, %v782_v28  ;;  %v2022_v28 = vld [vmem:[%s2816_s6 + $0x60] sm:$0xff] }
 0x5b9   :  { %v780_v30 = vmax.f32 %v776_v27, %v779_v24  ;;  %v2021_v24 = vld [vmem:[%s2816_s6 + $0x58] sm:$0xff] }
 0x5bb   :  { %v786_v32 = vmax.f32 %v780_v30, %v785_v58  ;;  %v2023_v58 = vld [vmem:[%s2816_s6 + $0x68] sm:$0xff] }
 0x5bd   :  { %v792_v37 = vmax.f32 %v786_v32, %v791_v34 }
 0x5bf   :  { %v798_v42 = vmax.f32 %v792_v37, %v797_v38 }
 0x5c0   :  { %v1138_v54 = vpop.xlane.xlu1 %1137 }
 0x5c1   :  { %v2594_v46 = vmax.f32 %v798_v42, %v803_v13  ;;  %v1139_v49 = vmul.f32 0.0078125, %v1138_v54 }
 0x5c3   :  { %v808_v43 = vmul.f32 %v2594_v46, %v2594_v46 }
 0x5c4   :  { %v2173_v4 = vpop.eup %2172 }
 0x5c5   :  { %v570_v6 = vmul.f32 %v2173_v4, %v567_v3  ;;  %v867_v4 = vld [vmem:[#allocation2 + $0x148] sm:$0xff] }
 0x5c7   :  { %v576_v7 = vmul.f32 %v574_v63, %v570_v6 }
 0x5c9   :  { %v582_v11 = vadd.f32 %v580_v44, %v576_v7 }
 0x5cb   :  { %v2575_v9 = vadd.f32 %v741_v47, %v582_v11 }
 0x5cd   :  { %842 = vrot.lane.b32.xlu0 %v2575_v9, %s2248_s12  ;;  %836 = vrot.lane.b32.xlu1 %v2575_v9, %s2253_s1  ;;  %v862_v7 = vmul.f32 %v861_v45, %v2575_v9 }
 0x5d1   :  { %848 = vrot.lane.b32.xlu0 %v2575_v9, %s2254_s3  ;;  %854 = vrot.lane.b32.xlu1 %v2575_v9, %s2256_s26 }
 0x5d5   :  { %864 = vrot.lane.b32.xlu0 %v2575_v9, %s2257_s27  ;;  %882 = vrot.lane.b32.xlu1 %v2575_v9, %s2255_s25 }
 0x5d9   :  { %870 = vrot.lane.b32.xlu0 %v2575_v9, %s2258_s28 }
 0x5dd   :  { %876 = vrot.lane.b32.xlu0 %v2575_v9, %s2259_s29 }
 0x5e7   :  { %v1134_v53 = vpop.xlane.xlu0 %1133 }
 0x5e8   :  { %v1135_v27 = vmul.f32 0.0078125, %v1134_v53 }
 0x5ea   :  { %v1140_v41 = vmul.f32 %v1135_v27, %v1135_v27  ;;  %v1143_v37 = vsub.f32 %v2566_v35, %v1135_v27 }
 0x5ec   :  { %v1141_v30 = vsub.f32 %v1139_v49, %v1140_v41 }
 0x5ee   :  { %v1142_v31 = vmax.f32 %v1141_v30, 0.0  ;;  %v1183_v30 = vld [vmem:[#allocation2 + $0x248] sm:$0xff] }
 0x5f0   :  { %v1144_v32 = vadd.f32 1e-05, %v1142_v31 }
 0x5f2   :  { %2174 = vrsqrt.f32 %v1144_v32 }
 0x5f9   :  { %809 = vadd.xlane.f32.xlu1 %v808_v43 }
 0x5fc   :  { %805 = vadd.xlane.f32.xlu0 %v2594_v46 }
 0x5ff   :  { %v2175_v33 = vpop.eup %2174 }
 0x600   :  { %v1146_v38 = vmul.f32 %v2175_v33, %v1143_v37  ;;  %v1189_v33 = vld [vmem:[#allocation2 + $0x250] sm:$0xff] }
 0x60a   :  { %1155 = vperm.xlu1 %2162, %v2026_v48  }
 0x612   :  { %1149 = vperm.xlu0 %2163, %v2025_v52  }
 0x63f   :  { %v837_v57 = vpop.permute.xlu1 %836  ;;  %v843_v59 = vpop.permute.xlu0 %842 }
 0x640   :  { %v840_v51 = vmul.f32 %v839_v55, %v837_v57  ;;  %v846_v60 = vmul.f32 %v845_v50, %v843_v59 }
 0x642   :  { %v847_v0 = vadd.f32 %v846_v60, %v840_v51 }
 0x643   :  { %v855_v62 = vpop.permute.xlu1 %854  ;;  %v849_v63 = vpop.permute.xlu0 %848 }
 0x644   :  { %v852_v2 = vmul.f32 %v851_v56, %v849_v63  ;;  %v858_v44 = vmul.f32 %v857_v61, %v855_v62 }
 0x646   :  { %v853_v3 = vadd.f32 %v852_v2, %v847_v0 }
 0x647   :  { %v865_v5 = vpop.permute.xlu0 %864  ;;  %v883_v17 = vpop.permute.xlu1 %882 }
 0x648   :  { %v859_v6 = vadd.f32 %v858_v44, %v853_v3  ;;  %v868_v11 = vmul.f32 %v867_v4, %v865_v5  ;;  %v886_v21 = vmul.f32 %v885_v16, %v883_v17 }
 0x64a   :  { %v863_v47 = vadd.f32 %v862_v7, %v859_v6 }
 0x64b   :  { %v871_v10 = vpop.permute.xlu0 %870 }
 0x64c   :  { %v869_v12 = vadd.f32 %v868_v11, %v863_v47  ;;  %v874_v14 = vmul.f32 %v873_v8, %v871_v10 }
 0x64e   :  { %v875_v19 = vadd.f32 %v874_v14, %v869_v12 }
 0x64f   :  { %v877_v18 = vpop.permute.xlu0 %876 }
 0x650   :  { %v880_v20 = vmul.f32 %v879_v15, %v877_v18 }
 0x652   :  { %v881_v22 = vadd.f32 %v880_v20, %v875_v19 }
 0x654   :  { %v2606_v23 = vadd.f32 %v886_v21, %v881_v22 }
 0x656   :  { %888 = vadd.xlane.f32.xlu1 %v2606_v23  ;;  %v891_v25 = vmul.f32 %v2606_v23, %v2606_v23 }
 0x658   :  { %892 = vadd.xlane.f32.xlu0 %v891_v25  ;;  %v1165_v25 = vld [vmem:[#allocation2 + $0x230] sm:$0xff] }
 0x667   :  { %821 = vperm.xlu1 %2162, %v2020_v26   ;;  %v1177_v26 = vld [vmem:[#allocation2 + $0x240] sm:$0xff] }
 0x66b   :  { %827 = vperm.xlu1 %2162, %v2021_v24  }
 0x66f   :  { %904 = vperm.xlu1 %2162, %v2022_v28  }
 0x673   :  { %910 = vperm.xlu1 %2162, %v2023_v58  }
 0x682   :  { %v810_v34 = vpop.xlane.xlu1 %809 }
 0x683   :  { %v811_v52 = vmul.f32 0.0078125, %v810_v34 }
 0x685   :  { %v806_v36 = vpop.xlane.xlu0 %805 }
 0x686   :  { %v1156_v42 = vpop.permute.xlu1 %1155  ;;  %v807_v35 = vmul.f32 0.0078125, %v806_v36  ;;  %v1195_v36 = vld [vmem:[#allocation2 + $0x258] sm:$0xff] }
 0x688   :  { %v812_v48 = vmul.f32 %v807_v35, %v807_v35  ;;  %v815_v56 = vsub.f32 %v2594_v46, %v807_v35 }
 0x68a   :  { %v813_v53 = vsub.f32 %v811_v52, %v812_v48  ;;  %v1213_v52 = vld [vmem:[#allocation2 + $0x270] sm:$0xff] }
 0x68c   :  { %v814_v54 = vmax.f32 %v813_v53, 0.0 }
 0x68d   :  { %v1150_v39 = vpop.permute.xlu0 %1149 }
 0x68e   :  { %v1152_v40 = vmul.f32 %v1150_v39, %v1146_v38  ;;  %v816_v55 = vadd.f32 1e-05, %v814_v54  ;;  %v1201_v39 = vld [vmem:[#allocation2 + $0x260] sm:$0xff] }
 0x690   :  { %v1158_v13 = vadd.f32 %v1156_v42, %v1152_v40  ;;  %2176 = vrsqrt.f32 %v816_v55  ;;  %v1219_v55 = vld [vmem:[#allocation2 + $0x278] sm:$0xff] }
 0x692   :  { %v2624_v43 = vmax.f32 %v1158_v13, 0.0  ;;  %v1207_v13 = vld [vmem:[#allocation2 + $0x268] sm:$0xff] }
 0x694   :  { %1180 = vrot.lane.b32.xlu0 %v2624_v43, %s2271_s10  ;;  %1162 = vrot.lane.b32.xlu1 %v2624_v43, %s2260_s18  ;;  %s2019_s10 = sld [smem:[#allocation6 + $0x5]] }
 0x698   :  { %1222 = vrot.lane.b32.xlu0 %v2624_v43, %s2263_s20  ;;  %1168 = vrot.lane.b32.xlu1 %v2624_v43, %s2264_s2  ;;  %s2827_s2 = smov 114  }
 0x69a   :  { %v748_v44 = vstv %s2019_s10  ;;  %s2279_s10 = smov 32  }
 0x69c   :  { %1238 = vrot.lane.b32.xlu0 %v2624_v43, %s2257_s27  ;;  %1174 = vrot.lane.b32.xlu1 %v2624_v43, %s2261_s0 }
 0x69d   :  { %v2177_v59 = vpop.eup %2176 }
 0x69e   :  { %v818_v45 = vmul.f32 %v2177_v59, %v815_v56 }
 0x6a0   :  { %1250 = vrot.lane.b32.xlu0 %v2624_v43, %s2273_s14  ;;  %1186 = vrot.lane.b32.xlu1 %v2624_v43, %s2262_s19  ;;  %s2829_s14 = smov 112  }
 0x6a4   :  { %1262 = vrot.lane.b32.xlu0 %v2624_v43, %s2259_s29  ;;  %1192 = vrot.lane.b32.xlu1 %v2624_v43, %s2266_s22  ;;  %s2828_s22 = smov 113  }
 0x6a8   :  { %1274 = vrot.lane.b32.xlu0 %v2624_v43, %s2274_s15  ;;  %1198 = vrot.lane.b32.xlu1 %v2624_v43, %s2253_s1  ;;  %s2830_s15 = smov 110  }
 0x6ac   :  { %1298 = vrot.lane.b32.xlu0 %v2624_v43, %s2275_s7  ;;  %1204 = vrot.lane.b32.xlu1 %v2624_v43, %s2248_s12  ;;  %s2280_s7 = smov 20  }
 0x6b0   :  { %1210 = vrot.lane.b32.xlu1 %v2624_v43, %s2254_s3 }
 0x6b4   :  { %1216 = vrot.lane.b32.xlu1 %v2624_v43, %s2269_s30  ;;  %s2018_s30 = sld [smem:[#allocation6 + $0x4]] }
 0x6b8   :  { %1228 = vrot.lane.b32.xlu1 %v2624_v43, %s2256_s26 }
 0x6ba   :  { %v744_v51 = vstv %s2018_s30  ;;  %s2278_s30 = smov 30  }
 0x6bb   :  { %v745_v0 = vmul.f32 %v744_v51, %v2381_v29 }
 0x6bc   :  { %1244 = vrot.lane.b32.xlu1 %v2624_v43, %s2265_s21 }
 0x6bd   :  { %v749_v7 = vadd.f32 %v748_v44, %v745_v0  ;;  %v1231_v0 = vld [vmem:[#allocation2 + $0x288] sm:$0xff] }
 0x6c0   :  { %1256 = vrot.lane.b32.xlu1 %v2624_v43, %s2258_s28 }
 0x6c4   :  { %1268 = vrot.lane.b32.xlu1 %v2624_v43, %s2255_s25 }
 0x6c8   :  { %1280 = vrot.lane.b32.xlu1 %v2624_v43, %s2827_s2 }
 0x6cc   :  { %1286 = vrot.lane.b32.xlu1 %v2624_v43, %s2828_s22  ;;  %s2277_s22 = smov 36  }
 0x6df   :  { %v889_v50 = vpop.xlane.xlu1 %888 }
 0x6e0   :  { %v890_v57 = vmul.f32 0.0078125, %v889_v50 }
 0x6e1   :  { %v893_v60 = vpop.xlane.xlu0 %892 }
 0x6e2   :  { %v895_v61 = vmul.f32 %v890_v57, %v890_v57  ;;  %v894_v62 = vmul.f32 0.0078125, %v893_v60  ;;  %v898_v10 = vsub.f32 %v2606_v23, %v890_v57  ;;  %v1171_v23 = vld [vmem:[#allocation2 + $0x238] sm:$0xff] }
 0x6e3   :  { %v822_v63 = vpop.permute.xlu1 %821 }
 0x6e4   :  { %v896_v2 = vsub.f32 %v894_v62, %v895_v61  ;;  %v824_v4 = vmul.f32 %v822_v63, %v818_v45  ;;  %v1225_v61 = vld [vmem:[#allocation2 + $0x280] sm:$0xff] }
 0x6e6   :  { %v897_v3 = vmax.f32 %v896_v2, 0.0 }
 0x6e7   :  { %v828_v5 = vpop.permute.xlu1 %827 }
 0x6e8   :  { %v899_v6 = vadd.f32 1e-05, %v897_v3  ;;  %v830_v8 = vadd.f32 %v828_v5, %v824_v4  ;;  %v1235_v4 = vld [vmem:[#allocation2 + $0x290] sm:$0xff] }
 0x6ea   :  { %2178 = vrsqrt.f32 %v899_v6  ;;  %v831_v47 = vadd.f32 %v830_v8, %v749_v7  ;;  %v1236_v6 = vmul.f32 %v1235_v4, %v2624_v43  ;;  %v1241_v7 = vld [vmem:[#allocation2 + $0x298] sm:$0xff] }
 0x6eb   :  { %v905_v11 = vpop.permute.xlu1 %904 }
 0x6ef   :  { %v911_v15 = vpop.permute.xlu1 %910 }
 0x6f7   :  { %v2179_v46 = vpop.eup %2178 }
 0x6f8   :  { %v901_v12 = vmul.f32 %v2179_v46, %v898_v10  ;;  %v1247_v46 = vld [vmem:[#allocation2 + $0x2a0] sm:$0xff] }
 0x6fa   :  { %v907_v14 = vmul.f32 %v905_v11, %v901_v12 }
 0x6fc   :  { %v913_v16 = vadd.f32 %v911_v15, %v907_v14  ;;  %v1253_v15 = vld [vmem:[#allocation2 + $0x2a8] sm:$0xff] }
 0x6fe   :  { %v914_v29 = vadd.f32 %v913_v16, %v831_v47 }
 0x700   :  { %v2673_v17 = vmax.f32 %v914_v29, 0.0  ;;  %1982 = vst [vmem:[#allocation7] sm:$0xff] %v914_v29 }
 0x702   :  { %1682 = vrot.lane.b32.xlu0 %v2673_v17, %s2248_s12  ;;  %1676 = vrot.lane.b32.xlu1 %v2673_v17, %s2253_s1 }
 0x706   :  { %1688 = vrot.lane.b32.xlu0 %v2673_v17, %s2254_s3  ;;  %1292 = vrot.lane.b32.xlu1 %v2624_v43, %s2829_s14  ;;  %v1163_v18 = vpop.permute.xlu1 %1162  ;;  %v1181_v58 = vpop.permute.xlu0 %1180 }
 0x707   :  { %v1166_v41 = vmul.f32 %v1165_v25, %v1163_v18  ;;  %v1184_v34 = vmul.f32 %v1183_v30, %v1181_v58  ;;  %v1277_v58 = vld [vmem:[#allocation2 + $0x2c8] sm:$0xff] }
 0x70a   :  { %1694 = vrot.lane.b32.xlu0 %v2673_v17, %s2256_s26  ;;  %1704 = vrot.lane.b32.xlu1 %v2673_v17, %s2257_s27  ;;  %v1169_v19 = vpop.permute.xlu1 %1168  ;;  %v1223_v62 = vpop.permute.xlu0 %1222 }
 0x70b   :  { %v1172_v24 = vmul.f32 %v1171_v23, %v1169_v19  ;;  %v1226_v45 = vmul.f32 %v1225_v61, %v1223_v62 }
 0x70d   :  { %v1173_v28 = vadd.f32 %v1172_v24, %v1166_v41  ;;  %v1271_v41 = vld [vmem:[#allocation2 + $0x2c0] sm:$0xff] }
 0x70e   :  { %1304 = vrot.lane.b32.xlu0 %v2624_v43, %s2830_s15  ;;  %1710 = vrot.lane.b32.xlu1 %v2673_v17, %s2258_s28  ;;  %v1175_v20 = vpop.permute.xlu1 %1174  ;;  %v1239_v8 = vpop.permute.xlu0 %1238 }
 0x70f   :  { %v1178_v49 = vmul.f32 %v1177_v26, %v1175_v20  ;;  %v1242_v10 = vmul.f32 %v1241_v7, %v1239_v8  ;;  %v1259_v20 = vld [vmem:[#allocation2 + $0x2b0] sm:$0xff]  ;;  %v1265_v26 = vld [vmem:[#allocation2 + $0x2b8] sm:$0xff] }
 0x711   :  { %v1179_v32 = vadd.f32 %v1178_v49, %v1173_v28 }
 0x712   :  { %1716 = vrot.lane.b32.xlu0 %v2673_v17, %s2259_s29  ;;  %1722 = vrot.lane.b32.xlu1 %v2673_v17, %s2255_s25  ;;  %v1187_v21 = vpop.permute.xlu1 %1186  ;;  %v1251_v16 = vpop.permute.xlu0 %1250 }
 0x713   :  { %v1185_v37 = vadd.f32 %v1184_v34, %v1179_v32  ;;  %v1190_v38 = vmul.f32 %v1189_v33, %v1187_v21  ;;  %v1254_v19 = vmul.f32 %v1253_v15, %v1251_v16 }
 0x715   :  { %v1191_v35 = vadd.f32 %v1190_v38, %v1185_v37  ;;  %v1289_v38 = vld [vmem:[#allocation2 + $0x2d8] sm:$0xff] }
 0x716   :  { %v1193_v22 = vpop.permute.xlu1 %1192 }
 0x717   :  { %v1196_v42 = vmul.f32 %v1195_v36, %v1193_v22  ;;  %v1263_v22 = vpop.permute.xlu0 %1262  ;;  %v1283_v36 = vld [vmem:[#allocation2 + $0x2d0] sm:$0xff] }
 0x719   :  { %v1197_v53 = vadd.f32 %v1196_v42, %v1191_v35  ;;  %v1685_v42 = vld [vmem:[#allocation2 + $0x3c8] sm:$0xff] }
 0x71a   :  { %v1199_v27 = vpop.permute.xlu1 %1198 }
 0x71b   :  { %v1202_v48 = vmul.f32 %v1201_v39, %v1199_v27  ;;  %v1266_v27 = vmul.f32 %v1265_v26, %v1263_v22  ;;  %v1275_v24 = vpop.permute.xlu0 %1274  ;;  %v1679_v39 = vld [vmem:[#allocation2 + $0x3c0] sm:$0xff] }
 0x71c   :  { %v1278_v34 = vmul.f32 %v1277_v58, %v1275_v24  ;;  %v1725_v22 = vld [vmem:[#allocation2 + $0x400] sm:$0xff] }
 0x71d   :  { %v1203_v57 = vadd.f32 %v1202_v48, %v1197_v53  ;;  %v1295_v48 = vld [vmem:[#allocation2 + $0x2e0] sm:$0xff] }
 0x71e   :  { %v1205_v31 = vpop.permute.xlu1 %1204 }
 0x71f   :  { %v1208_v54 = vmul.f32 %v1207_v13, %v1205_v31  ;;  %v1299_v32 = vpop.permute.xlu0 %1298 }
 0x721   :  { %v1209_v51 = vadd.f32 %v1208_v54, %v1203_v57 }
 0x722   :  { %v1211_v40 = vpop.permute.xlu1 %1210 }
 0x723   :  { %v1214_v59 = vmul.f32 %v1213_v52, %v1211_v40  ;;  %v1691_v52 = vld [vmem:[#allocation2 + $0x3d0] sm:$0xff] }
 0x725   :  { %v1215_v56 = vadd.f32 %v1214_v59, %v1209_v51 }
 0x726   :  { %v1217_v50 = vpop.permute.xlu1 %1216 }
 0x727   :  { %v1220_v60 = vmul.f32 %v1219_v55, %v1217_v50 }
 0x729   :  { %v1221_v63 = vadd.f32 %v1220_v60, %v1215_v56  ;;  %v1697_v56 = vld [vmem:[#allocation2 + $0x3d8] sm:$0xff] }
 0x72a   :  { %v1229_v2 = vpop.permute.xlu1 %1228 }
 0x72b   :  { %v1227_v44 = vadd.f32 %v1226_v45, %v1221_v63  ;;  %v1232_v3 = vmul.f32 %v1231_v0, %v1229_v2  ;;  %v1301_v63 = vld [vmem:[#allocation2 + $0x2e8] sm:$0xff]  ;;  %v1701_v2 = vld [vmem:[#allocation2 + $0x3e0] sm:$0xff] }
 0x72c   :  { %v1302_v7 = vmul.f32 %v1301_v63, %v1299_v32  ;;  %v1702_v8 = vmul.f32 %v1701_v2, %v2673_v17  ;;  %v2038_v32 = vld [vmem:[%s2816_s6 + $0xa8] sm:$0xff] }
 0x72d   :  { %v1233_v5 = vadd.f32 %v1232_v3, %v1227_v44 }
 0x72e   :  { %v1245_v11 = vpop.permute.xlu1 %1244 }
 0x72f   :  { %v1237_v47 = vadd.f32 %v1236_v6, %v1233_v5  ;;  %v1248_v14 = vmul.f32 %v1247_v46, %v1245_v11  ;;  %v1707_v5 = vld [vmem:[#allocation2 + $0x3e8] sm:$0xff]  ;;  %v1307_v6 = vld [vmem:[#allocation2 + $0x2f0] sm:$0xff] }
 0x730   :  { %v1713_v11 = vld [vmem:[#allocation2 + $0x3f0] sm:$0xff] }
 0x731   :  { %v1243_v12 = vadd.f32 %v1242_v10, %v1237_v47 }
 0x732   :  { %v1257_v29 = vpop.permute.xlu1 %1256 }
 0x733   :  { %v1249_v18 = vadd.f32 %v1248_v14, %v1243_v12  ;;  %v1260_v25 = vmul.f32 %v1259_v20, %v1257_v29  ;;  %v1719_v29 = vld [vmem:[#allocation2 + $0x3f8] sm:$0xff] }
 0x735   :  { %v1255_v21 = vadd.f32 %v1254_v19, %v1249_v18 }
 0x736   :  { %v1269_v23 = vpop.permute.xlu1 %1268 }
 0x737   :  { %v1261_v43 = vadd.f32 %v1260_v25, %v1255_v21  ;;  %v1272_v30 = vmul.f32 %v1271_v41, %v1269_v23  ;;  %v2031_v21 = vld [vmem:[%s2814_s4 + $0x20] sm:$0xff]  ;;  %v2041_v41 = vld [vmem:[%s2814_s4 + $0x30] sm:$0xff] }
 0x739   :  { %v1267_v28 = vadd.f32 %v1266_v27, %v1261_v43 }
 0x73a   :  { %v1281_v49 = vpop.permute.xlu1 %1280 }
 0x73b   :  { %v1273_v31 = vadd.f32 %v1272_v30, %v1267_v28  ;;  %v1284_v35 = vmul.f32 %v1283_v36, %v1281_v49 }
 0x73d   :  { %v1279_v37 = vadd.f32 %v1278_v34, %v1273_v31  ;;  %v2717_v34 = vmax.f32 %v2575_v9, 0.0 }
 0x73e   :  { %v1287_v33 = vpop.permute.xlu1 %1286 }
 0x73f   :  { %v1285_v53 = vadd.f32 %v1284_v35, %v1279_v37  ;;  %v1290_v54 = vmul.f32 %v1289_v38, %v1287_v33  ;;  %v2037_v33 = vld [vmem:[%s2816_s6 + $0xa0] sm:$0xff] }
 0x741   :  { %v1291_v61 = vadd.f32 %v1290_v54, %v1285_v53 }
 0x774   :  { %v1677_v40 = vpop.permute.xlu1 %1676  ;;  %v1683_v13 = vpop.permute.xlu0 %1682 }
 0x775   :  { %v1680_v55 = vmul.f32 %v1679_v39, %v1677_v40  ;;  %v1686_v50 = vmul.f32 %v1685_v42, %v1683_v13 }
 0x777   :  { %v1687_v62 = vadd.f32 %v1686_v50, %v1680_v55 }
 0x778   :  { %v1293_v57 = vpop.permute.xlu1 %1292  ;;  %v1689_v59 = vpop.permute.xlu0 %1688 }
 0x779   :  { %v1296_v51 = vmul.f32 %v1295_v48, %v1293_v57  ;;  %v1692_v60 = vmul.f32 %v1691_v52, %v1689_v59 }
 0x77b   :  { %v1297_v44 = vadd.f32 %v1296_v51, %v1291_v61  ;;  %v1693_v3 = vadd.f32 %v1692_v60, %v1687_v62  ;;  %v1420_v51 = vld [vmem:[#allocation2 + $0x2f8] sm:$0xff]  ;;  %v1426_v60 = vld [vmem:[#allocation2 + $0x300] sm:$0xff]  ;;  %v1432_v61 = vld [vmem:[#allocation2 + $0x308] sm:$0xff] }
 0x77c   :  { %v1705_v0 = vpop.permute.xlu1 %1704  ;;  %v1695_v45 = vpop.permute.xlu0 %1694 }
 0x77d   :  { %v1698_v4 = vmul.f32 %v1697_v56, %v1695_v45  ;;  %v1708_v12 = vmul.f32 %v1707_v5, %v1705_v0  ;;  %v1303_v15 = vadd.f32 %v1302_v7, %v1297_v44  ;;  %v1438_v44 = vld [vmem:[#allocation2 + $0x310] sm:$0xff]  ;;  %v1444_v5 = vld [vmem:[#allocation2 + $0x318] sm:$0xff] }
 0x77f   :  { %v1699_v47 = vadd.f32 %v1698_v4, %v1693_v3 }
 0x780   :  { %v1711_v10 = vpop.permute.xlu1 %1710  ;;  %v1305_v46 = vpop.permute.xlu0 %1304 }
 0x781   :  { %v1703_v14 = vadd.f32 %v1702_v8, %v1699_v47  ;;  %v1308_v16 = vmul.f32 %v1307_v6, %v1305_v46  ;;  %v1714_v19 = vmul.f32 %v1713_v11, %v1711_v10  ;;  %v1450_v10 = vld [vmem:[#allocation2 + $0x320] sm:$0xff] }
 0x783   :  { %v1709_v18 = vadd.f32 %v1708_v12, %v1703_v14  ;;  %v1309_v20 = vadd.f32 %v1308_v16, %v1303_v15  ;;  %v1456_v14 = vld [vmem:[#allocation2 + $0x328] sm:$0xff] }
 0x784   :  { %v1723_v23 = vpop.permute.xlu1 %1722  ;;  %v1717_v25 = vpop.permute.xlu0 %1716 }
 0x785   :  { %v1715_v17 = vadd.f32 %v1714_v19, %v1709_v18  ;;  %v1720_v26 = vmul.f32 %v1719_v29, %v1717_v25  ;;  %2096 = vmatpush3.msra.mxu0 %v1309_v20  ;;  %v1726_v43 = vmul.f32 %v1725_v22, %v1723_v23  ;;  %v1462_v19 = vld [vmem:[#allocation2 + $0x330] sm:$0xff]  ;;  %v1468_v22 = vld [vmem:[#allocation2 + $0x338] sm:$0xff] }
 0x786   :  { %2098 = vmatmul.mubr.msk.f32.vlgmr.msra.gmra.mxu0 %vm67_vm1, %v2031_v21  ;;  %2105 = vmatprep.subr.mxu0 %v2250_v1 }
 0x787   :  { %v1721_v27 = vadd.f32 %v1720_v26, %v1715_v17  ;;  %2107 = vmatprep.mubr.msk.f32.mxu0 %vm2251_vm0, %v2250_v1 }
 0x789   :  { %v1727_v24 = vadd.f32 %v1726_v43, %v1721_v27  ;;  %v2027_v43 = vld [vmem:[%s2816_s6 + $0x80] sm:$0xff] }
 0x78a   :  { %v1474_v27 = vld [vmem:[#allocation2 + $0x340] sm:$0xff] }
 0x78b   :  { %2106 = vmatpush3.msra.mxu0 %v1727_v24 }
 0x78c   :  { %2108 = vmatmul.mubr.msk.f32.vlgmr.msra.gmra.mxu0 %vm67_vm1, %v2041_v41 }
 0x846   :  { %v2708_v49 = vpop.f32.mrf.mxu0 }
 0x847   :  { %v1386_v11 = vmul.f32 %v2708_v49, %v2708_v49 }
 0x848   :  { %v2099_v28 = vpop.f32.mrf.mxu0 }
 0x849   :  { %v1480_v28 = vld [vmem:[#allocation2 + $0x348] sm:$0xff] }
 0x84c   :  { %v1797_v30 = vpop.f32.mrf.mxu0 }
 0x84d   :  { %v1804_v58 = vmul.f32 %v1797_v30, %v1797_v30  ;;  %1801 = vadd.xlane.f32.xlu0 %v1797_v30 }
 0x84e   :  { %v2109_v31 = vpop.f32.mrf.mxu0 }
 0x84f   :  { %1805 = vadd.xlane.f32.xlu1 %v1804_v58 }
 0x860   :  { %1823 = vperm.xlu1 %2162, %v2038_v32  }
 0x863   :  { %1817 = vperm.xlu0 %2163, %v2037_v33   ;;  %v1486_v33 = vld [vmem:[#allocation2 + $0x350] sm:$0xff] }
 0x864   :  { %1423 = vrot.lane.b32.xlu1 %v2717_v34, %s2276_s13 }
 0x867   :  { %1417 = vrot.lane.b32.xlu0 %v2717_v34, %s2277_s22 }
 0x868   :  { %1435 = vrot.lane.b32.xlu1 %v2717_v34, %s2278_s30 }
 0x86b   :  { %1429 = vrot.lane.b32.xlu0 %v2717_v34, %s2279_s10 }
 0x86c   :  { %1447 = vrot.lane.b32.xlu1 %v2717_v34, %s2280_s7  ;;  %s2292_s7 = smov [#allocation7]  }
 0x86f   :  { %1441 = vrot.lane.b32.xlu0 %v2717_v34, %s2281_s17  ;;  %s1989_s17 = sshll.u32 %s2292_s7, 4  ;;  %s1990_s17 = int_to_ptr.vmem [resolvable:$true] %s1989_s17 }
 0x870   :  { %1459 = vrot.lane.b32.xlu1 %v2717_v34, %s2261_s0  ;;  %s2286_s0 = smov 100   ;;  %p2225_p11 = scmp.lt.s32.totalorder %s1990_s17, %s1990_s17 }
 0x873   :  { %1453 = vrot.lane.b32.xlu0 %v2717_v34, %s2260_s18  ;;  %s2285_s18 = smov 116  }
 0x874   :  { %1471 = vrot.lane.b32.xlu1 %v2717_v34, %s2282_s5  ;;  %s2220_s5 = scalar_lea.vmem %s1990_s17, 256 }
 0x875   :  { %p2221_p10 = scmp.ne.s32.totalorder %s1990_s17, %s2220_s5  ;;  %p2226_p12 = scmp.lt.s32.totalorder %s2220_s5, %s2220_s5 }
 0x877   :  { %1465 = vrot.lane.b32.xlu0 %v2717_v34, %s2262_s19  ;;  %s2287_s19 = smov 108   ;;  %p2227_p13 = por %p2226_p12, %p2225_p11 }
 0x878   :  { %1483 = vrot.lane.b32.xlu1 %v2717_v34, %s2263_s20  ;;  %s2288_s20 = smov 98  }
 0x879   :  { %p2228_p0 = pnand %p2227_p13, %p2221_p10 }
 0x87b   :  { %1477 = vrot.lane.b32.xlu0 %v2717_v34, %s2283_s11 }
 0x87c   :  { %1499 = vrot.lane.b32.xlu1 %v2717_v34, %s2284_s16 }
 0x87f   :  { %1493 = vrot.lane.b32.xlu0 %v2717_v34, %s2265_s21  ;;  %s2289_s21 = smov 94  }
 0x880   :  { %1511 = vrot.lane.b32.xlu1 %v2717_v34, %s2827_s2  ;;  %s2290_s2 = smov 96  }
 0x883   :  { %1505 = vrot.lane.b32.xlu0 %v2717_v34, %s2285_s18 }
 0x884   :  { %1523 = vrot.lane.b32.xlu1 %v2717_v34, %s2830_s15 }
 0x887   :  { %1517 = vrot.lane.b32.xlu0 %v2717_v34, %s2829_s14  ;;  %s2291_s14 = smov 92  }
 0x888   :  { %1535 = vrot.lane.b32.xlu1 %v2717_v34, %s2286_s0 }
 0x88b   :  { %1529 = vrot.lane.b32.xlu0 %v2717_v34, %s2287_s19 }
 0x88c   :  { %1541 = vrot.lane.b32.xlu1 %v2717_v34, %s2288_s20 }
 0x88f   :  { %1553 = vrot.lane.b32.xlu0 %v2717_v34, %s2289_s21 }
 0x8d6   :  { %v1802_v9 = vpop.xlane.xlu0 %1801 }
 0x8d7   :  { %v1803_v36 = vmul.f32 0.0078125, %v1802_v9 }
 0x8d8   :  { %v1806_v37 = vpop.xlane.xlu1 %1805 }
 0x8d9   :  { %v1808_v38 = vmul.f32 %v1803_v36, %v1803_v36  ;;  %v1807_v39 = vmul.f32 0.0078125, %v1806_v37  ;;  %v1811_v35 = vsub.f32 %v1797_v30, %v1803_v36 }
 0x8db   :  { %v1809_v40 = vsub.f32 %v1807_v39, %v1808_v38  ;;  %v1490_v38 = vld [vmem:[#allocation2 + $0x358] sm:$0xff] }
 0x8dc   :  { %v1824_v55 = vpop.permute.xlu1 %1823 }
 0x8dd   :  { %v1810_v42 = vmax.f32 %v1809_v40, 0.0  ;;  %v1491_v40 = vmul.f32 %v1490_v38, %v2717_v34 }
 0x8de   :  { %v1818_v53 = vpop.permute.xlu0 %1817 }
 0x8df   :  { %v1812_v13 = vadd.f32 1e-05, %v1810_v42  ;;  %v1496_v42 = vld [vmem:[#allocation2 + $0x360] sm:$0xff] }
 0x8e0   :  { %v1424_v56 = vpop.permute.xlu1 %1423 }
 0x8e1   :  { %2180 = vrsqrt.f32 %v1812_v13  ;;  %v1427_v0 = vmul.f32 %v1426_v60, %v1424_v56 }
 0x8e2   :  { %v1418_v59 = vpop.permute.xlu0 %1417 }
 0x8e3   :  { %v1421_v63 = vmul.f32 %v1420_v51, %v1418_v59  ;;  %v1508_v59 = vld [vmem:[#allocation2 + $0x370] sm:$0xff] }
 0x8e4   :  { %v1436_v3 = vpop.permute.xlu1 %1435 }
 0x8e5   :  { %v1428_v45 = vadd.f32 %v1427_v0, %v1421_v63  ;;  %v1439_v7 = vmul.f32 %v1438_v44, %v1436_v3  ;;  %v1526_v3 = vld [vmem:[#allocation2 + $0x388] sm:$0xff] }
 0x8e6   :  { %v1430_v62 = vpop.permute.xlu0 %1429 }
 0x8e7   :  { %v1433_v2 = vmul.f32 %v1432_v61, %v1430_v62  ;;  %v1514_v61 = vld [vmem:[#allocation2 + $0x378] sm:$0xff] }
 0x8e8   :  { %v1448_v46 = vpop.permute.xlu1 %1447 }
 0x8e9   :  { %v1434_v4 = vadd.f32 %v1433_v2, %v1428_v45  ;;  %v1451_v16 = vmul.f32 %v1450_v10, %v1448_v46  ;;  %v1520_v45 = vld [vmem:[#allocation2 + $0x380] sm:$0xff] }
 0x8ea   :  { %v1442_v6 = vpop.permute.xlu0 %1441 }
 0x8eb   :  { %v1440_v8 = vadd.f32 %v1439_v7, %v1434_v4  ;;  %v1445_v47 = vmul.f32 %v1444_v5, %v1442_v6 }
 0x8ec   :  { %v1460_v20 = vpop.permute.xlu1 %1459 }
 0x8ed   :  { %v1446_v12 = vadd.f32 %v1445_v47, %v1440_v8  ;;  %v1463_v25 = vmul.f32 %v1462_v19, %v1460_v20  ;;  %v1532_v8 = vld [vmem:[#allocation2 + $0x390] sm:$0xff]  ;;  %v1544_v20 = vld [vmem:[#allocation2 + $0x3a0] sm:$0xff] }
 0x8ee   :  { %v2181_v48 = vpop.eup %2180  ;;  %v1454_v15 = vpop.permute.xlu0 %1453 }
 0x8ef   :  { %v1814_v52 = vmul.f32 %v2181_v48, %v1811_v35  ;;  %v1452_v29 = vadd.f32 %v1451_v16, %v1446_v12  ;;  %v1457_v18 = vmul.f32 %v1456_v14, %v1454_v15  ;;  %v1538_v12 = vld [vmem:[#allocation2 + $0x398] sm:$0xff]  ;;  %v1839_v15 = vld [vmem:[#allocation2 + $0x410] sm:$0xff] }
 0x8f0   :  { %v1472_v24 = vpop.permute.xlu1 %1471 }
 0x8f1   :  { %v1820_v54 = vmul.f32 %v1818_v53, %v1814_v52  ;;  %v1458_v21 = vadd.f32 %v1457_v18, %v1452_v29  ;;  %v1475_v58 = vmul.f32 %v1474_v27, %v1472_v24  ;;  %v1502_v53 = vld [vmem:[#allocation2 + $0x368] sm:$0xff] }
 0x8f2   :  { %v1466_v23 = vpop.permute.xlu0 %1465  ;;  %v1833_v29 = vld [vmem:[#allocation2 + $0x408] sm:$0xff] }
 0x8f3   :  { %v1826_v50 = vadd.f32 %v1824_v55, %v1820_v54  ;;  %v1464_v17 = vadd.f32 %v1463_v25, %v1458_v21  ;;  %v1469_v26 = vmul.f32 %v1468_v22, %v1466_v23  ;;  %v1845_v21 = vld [vmem:[#allocation2 + $0x418] sm:$0xff]  ;;  %v1550_v22 = vld [vmem:[#allocation2 + $0x3a8] sm:$0xff] }
 0x8f4   :  { %v1484_v9 = vpop.permute.xlu1 %1483 }
 0x8f5   :  { %v2749_v57 = vmax.f32 %v1826_v50, 0.0  ;;  %v1470_v41 = vadd.f32 %v1469_v26, %v1464_v17  ;;  %v1487_v37 = vmul.f32 %v1486_v33, %v1484_v9  ;;  %v1855_v33 = vld [vmem:[#allocation2 + $0x428] sm:$0xff] }
 0x8f6   :  { %v1478_v30 = vpop.permute.xlu0 %1477 }
 0x8f7   :  { %1836 = vrot.lane.b32.xlu0 %v2749_v57, %s2248_s12  ;;  %1830 = vrot.lane.b32.xlu1 %v2749_v57, %s2253_s1  ;;  %v1476_v31 = vadd.f32 %v1475_v58, %v1470_v41  ;;  %v1481_v32 = vmul.f32 %v1480_v28, %v1478_v30  ;;  %v1851_v28 = vld [vmem:[#allocation2 + $0x420] sm:$0xff] }
 0x8f8   :  { %v1500_v48 = vpop.permute.xlu1 %1499 }
 0x8f9   :  { %v1482_v36 = vadd.f32 %v1481_v32, %v1476_v31  ;;  %v1503_v55 = vmul.f32 %v1502_v53, %v1500_v48  ;;  %v1556_v31 = vld [vmem:[#allocation2 + $0x3b0] sm:$0xff] }
 0x8fa   :  { %v1494_v13 = vpop.permute.xlu0 %1493 }
 0x8fb   :  { %1842 = vrot.lane.b32.xlu0 %v2749_v57, %s2254_s3  ;;  %1547 = vrot.lane.b32.xlu1 %v2717_v34, %s2290_s2  ;;  %v1488_v39 = vadd.f32 %v1487_v37, %v1482_v36  ;;  %v1497_v52 = vmul.f32 %v1496_v42, %v1494_v13 }
 0x8fc   :  { %v1512_v50 = vpop.permute.xlu1 %1511 }
 0x8fd   :  { %v1492_v35 = vadd.f32 %v1491_v40, %v1488_v39  ;;  %v1515_v2 = vmul.f32 %v1514_v61, %v1512_v50  ;;  %v1861_v39 = vld [vmem:[#allocation2 + $0x430] sm:$0xff]  ;;  %v1562_v40 = vld [vmem:[#allocation2 + $0x3b8] sm:$0xff] }
 0x8fe   :  { %v1506_v51 = vpop.permute.xlu0 %1505 }
 0x8ff   :  { %1848 = vrot.lane.b32.xlu0 %v2749_v57, %s2256_s26  ;;  %1858 = vrot.lane.b32.xlu1 %v2749_v57, %s2257_s27  ;;  %v1498_v54 = vadd.f32 %v1497_v52, %v1492_v35  ;;  %v1509_v56 = vmul.f32 %v1508_v59, %v1506_v51  ;;  %v1856_v35 = vmul.f32 %v1855_v33, %v2749_v57  ;;  %v1867_v52 = vld [vmem:[#allocation2 + $0x438] sm:$0xff]  ;;  %v1873_v51 = vld [vmem:[#allocation2 + $0x440] sm:$0xff] }
 0x900   :  { %v1524_v63 = vpop.permute.xlu1 %1523 }
 0x901   :  { %v1504_v60 = vadd.f32 %v1503_v55, %v1498_v54  ;;  %v1527_v7 = vmul.f32 %v1526_v3, %v1524_v63 }
 0x902   :  { %v1518_v0 = vpop.permute.xlu0 %1517 }
 0x903   :  { %1559 = vrot.lane.b32.xlu0 %v2717_v34, %s2291_s14  ;;  %1864 = vrot.lane.b32.xlu1 %v2749_v57, %s2258_s28  ;;  %v1510_v62 = vadd.f32 %v1509_v56, %v1504_v60  ;;  %v1521_v44 = vmul.f32 %v1520_v45, %v1518_v0  ;;  %v1879_v0 = vld [vmem:[#allocation2 + $0x448] sm:$0xff] }
 0x904   :  { %v1536_v4 = vpop.permute.xlu1 %1535 }
 0x905   :  { %v1516_v34 = vadd.f32 %v1515_v2, %v1510_v62  ;;  %v1539_v19 = vmul.f32 %v1538_v12, %v1536_v4  ;;  %v2035_v62 = vld [vmem:[%s2814_s4 + $0x28] sm:$0xff]  ;;  %v2043_v4 = vld [vmem:[%s2814_s4 + $0x38] sm:$0xff] }
 0x906   :  { %v1530_v5 = vpop.permute.xlu0 %1529 }
 0x907   :  { %1870 = vrot.lane.b32.xlu0 %v2749_v57, %s2259_s29  ;;  %1876 = vrot.lane.b32.xlu1 %v2749_v57, %s2255_s25  ;;  %v1522_v6 = vadd.f32 %v1521_v44, %v1516_v34  ;;  %v1533_v46 = vmul.f32 %v1532_v8, %v1530_v5 }
 0x909   :  { %v1528_v47 = vadd.f32 %v1527_v7, %v1522_v6 }
 0x90a   :  { %v1554_v10 = vpop.permute.xlu0 %1553 }
 0x90b   :  { %v1534_v14 = vadd.f32 %v1533_v46, %v1528_v47  ;;  %v1557_v42 = vmul.f32 %v1556_v31, %v1554_v10  ;;  %v2033_v10 = vld [vmem:[%s2816_s6 + $0x90] sm:$0xff] }
 0x90c   :  { %v2039_v46 = vld [vmem:[%s2816_s6 + $0xb0] sm:$0xff] }
 0x90d   :  { %v1540_v23 = vadd.f32 %v1539_v19, %v1534_v14  ;;  %v2040_v14 = vld [vmem:[%s2816_s6 + $0xb8] sm:$0xff] }
 0x926   :  { %1383 = vadd.xlane.f32.xlu0 %v2708_v49 }
 0x92b   :  { %1387 = vadd.xlane.f32.xlu1 %v1386_v11  ;;  %v1542_v11 = vpop.permute.xlu1 %1541 }
 0x92c   :  { %v1545_v27 = vmul.f32 %v1544_v20, %v1542_v11  ;;  %v2034_v11 = vld [vmem:[%s2816_s6 + $0x98] sm:$0xff] }
 0x92e   :  { %v1546_v30 = vadd.f32 %v1545_v27, %v1540_v23 }
 0x93c   :  { %1399 = vperm.xlu0 %2163, %v2027_v43  }
 0x969   :  { %v1837_v16 = vpop.permute.xlu0 %1836  ;;  %v1831_v18 = vpop.permute.xlu1 %1830 }
 0x96a   :  { %v1840_v25 = vmul.f32 %v1839_v15, %v1837_v16  ;;  %v1834_v17 = vmul.f32 %v1833_v29, %v1831_v18 }
 0x96c   :  { %v1841_v58 = vadd.f32 %v1840_v25, %v1834_v17 }
 0x96d   :  { %v1843_v26 = vpop.permute.xlu0 %1842  ;;  %v1548_v43 = vpop.permute.xlu1 %1547 }
 0x96e   :  { %v1846_v24 = vmul.f32 %v1845_v21, %v1843_v26  ;;  %v1551_v41 = vmul.f32 %v1550_v22, %v1548_v43 }
 0x970   :  { %v1847_v36 = vadd.f32 %v1846_v24, %v1841_v58  ;;  %v1552_v37 = vadd.f32 %v1551_v41, %v1546_v30 }
 0x971   :  { %v1849_v32 = vpop.permute.xlu0 %1848  ;;  %v1859_v9 = vpop.permute.xlu1 %1858 }
 0x972   :  { %v1852_v38 = vmul.f32 %v1851_v28, %v1849_v32  ;;  %v1862_v55 = vmul.f32 %v1861_v39, %v1859_v9  ;;  %v1558_v50 = vadd.f32 %v1557_v42, %v1552_v37 }
 0x974   :  { %v1853_v13 = vadd.f32 %v1852_v38, %v1847_v36 }
 0x975   :  { %v1560_v48 = vpop.permute.xlu0 %1559  ;;  %v1865_v53 = vpop.permute.xlu1 %1864 }
 0x976   :  { %v1857_v54 = vadd.f32 %v1856_v35, %v1853_v13  ;;  %v1563_v59 = vmul.f32 %v1562_v40, %v1560_v48  ;;  %v1868_v61 = vmul.f32 %v1867_v52, %v1865_v53 }
 0x978   :  { %v1863_v60 = vadd.f32 %v1862_v55, %v1857_v54  ;;  %v1564_v56 = vadd.f32 %v1563_v59, %v1558_v50 }
 0x979   :  { %v1871_v63 = vpop.permute.xlu0 %1870  ;;  %v1877_v2 = vpop.permute.xlu1 %1876 }
 0x97a   :  { %v1869_v45 = vadd.f32 %v1868_v61, %v1863_v60  ;;  %v1874_v57 = vmul.f32 %v1873_v51, %v1871_v63  ;;  %2101 = vmatpush3.msra.mxu1 %v1564_v56  ;;  %v1880_v44 = vmul.f32 %v1879_v0, %v1877_v2 }
 0x97b   :  { %2103 = vmatmul.mubr.msk.f32.vlgmr.msra.gmra.mxu1 %vm67_vm1, %v2035_v62  ;;  %2110 = vmatprep.subr.mxu1 %v2250_v1 }
 0x97c   :  { %v1875_v34 = vadd.f32 %v1874_v57, %v1869_v45  ;;  %2112 = vmatprep.mubr.msk.f32.mxu1 %vm2251_vm0, %v2250_v1  ;;  %v2028_v1 = vld [vmem:[%s2816_s6 + $0x88] sm:$0xff]  ;;  %s2024_s6 = sld [smem:[#allocation6 + $0xb]] }
 0x97e   :  { %v1881_v3 = vadd.f32 %v1880_v44, %v1875_v34 }
 0x980   :  { %2111 = vmatpush3.msra.mxu1 %v1881_v3 }
 0x981   :  { %2113 = vmatmul.mubr.msk.f32.vlgmr.msra.gmra.mxu1 %vm67_vm1, %v2043_v4 }
 0x982   :  { %v916_v60 = vstv %s2024_s6 }
 0x9af   :  { %v1384_v15 = vpop.xlane.xlu0 %1383 }
 0x9b0   :  { %v1385_v20 = vmul.f32 0.0078125, %v1384_v15 }
 0x9b2   :  { %v1390_v17 = vmul.f32 %v1385_v20, %v1385_v20  ;;  %v1393_v13 = vsub.f32 %v2708_v49, %v1385_v20 }
 0x9b4   :  { %v1388_v29 = vpop.xlane.xlu1 %1387 }
 0x9b5   :  { %v1389_v22 = vmul.f32 0.0078125, %v1388_v29 }
 0x9b7   :  { %v1400_v16 = vpop.permute.xlu0 %1399  ;;  %v1391_v26 = vsub.f32 %v1389_v22, %v1390_v17 }
 0x9b9   :  { %v1392_v27 = vmax.f32 %v1391_v26, 0.0 }
 0x9bb   :  { %v1394_v28 = vadd.f32 1e-05, %v1392_v27 }
 0x9bd   :  { %2182 = vrsqrt.f32 %v1394_v28 }
 0x9ca   :  { %v2183_v40 = vpop.eup %2182 }
 0x9cb   :  { %v1396_v48 = vmul.f32 %v2183_v40, %v1393_v13 }
 0x9cd   :  { %v1402_v54 = vmul.f32 %v1400_v16, %v1396_v48 }
 0xa3b   :  { %v1634_v5 = vpop.f32.mrf.mxu1 }
 0xa3c   :  { %v1641_v6 = vmul.f32 %v1634_v5, %v1634_v5  ;;  %1638 = vadd.xlane.f32.xlu0 %v1634_v5 }
 0xa3d   :  { %v2104_v7 = vpop.f32.mrf.mxu1 }
 0xa3e   :  { %1642 = vadd.xlane.f32.xlu1 %v1641_v6 }
 0xa41   :  { %v1951_v8 = vpop.f32.mrf.mxu1 }
 0xa42   :  { %1955 = vadd.xlane.f32.xlu0 %v1951_v8  ;;  %v1958_v12 = vmul.f32 %v1951_v8, %v1951_v8 }
 0xa43   :  { %v2114_v47 = vpop.f32.mrf.mxu1 }
 0xa4f   :  { %1405 = vperm.xlu1 %2162, %v2028_v1  }
 0xa53   :  { %1660 = vperm.xlu1 %2162, %v2034_v11  }
 0xa58   :  { %1654 = vperm.xlu0 %2163, %v2033_v10  }
 0xa5c   :  { %1971 = vperm.xlu0 %2163, %v2039_v46  }
 0xa77   :  { %1959 = vadd.xlane.f32.xlu1 %v1958_v12 }
 0xa88   :  { %1977 = vperm.xlu1 %2162, %v2040_v14  }
 0xac5   :  { %v1639_v18 = vpop.xlane.xlu0 %1638 }
 0xac6   :  { %v1640_v19 = vmul.f32 0.0078125, %v1639_v18 }
 0xac7   :  { %v1643_v21 = vpop.xlane.xlu1 %1642 }
 0xac8   :  { %v1645_v23 = vmul.f32 %v1640_v19, %v1640_v19  ;;  %v1644_v25 = vmul.f32 0.0078125, %v1643_v21  ;;  %v1648_v35 = vsub.f32 %v1634_v5, %v1640_v19 }
 0xaca   :  { %v1646_v43 = vsub.f32 %v1644_v25, %v1645_v23 }
 0xacb   :  { %v1406_v24 = vpop.permute.xlu1 %1405  ;;  %v1956_v30 = vpop.xlane.xlu0 %1955 }
 0xacc   :  { %v1647_v41 = vmax.f32 %v1646_v43, 0.0  ;;  %v1957_v32 = vmul.f32 0.0078125, %v1956_v30  ;;  %v1408_v59 = vadd.f32 %v1406_v24, %v1402_v54 }
 0xace   :  { %v1649_v58 = vadd.f32 1e-05, %v1647_v41  ;;  %v1962_v33 = vmul.f32 %v1957_v32, %v1957_v32  ;;  %v1965_v50 = vsub.f32 %v1951_v8, %v1957_v32  ;;  %v1409_v63 = vadd.f32 %v1408_v59, %v916_v60 }
 0xacf   :  { %v1661_v31 = vpop.permute.xlu1 %1660 }
 0xad0   :  { %2184 = vrsqrt.f32 %v1649_v58 }
 0xad3   :  { %v1655_v53 = vpop.permute.xlu0 %1654 }
 0xad7   :  { %v1972_v62 = vpop.permute.xlu0 %1971 }
 0xadd   :  { %v2185_v42 = vpop.eup %2184 }
 0xade   :  { %v1651_v52 = vmul.f32 %v2185_v42, %v1648_v35 }
 0xae0   :  { %v1657_v55 = vmul.f32 %v1655_v53, %v1651_v52 }
 0xae2   :  { %v1663_v56 = vadd.f32 %v1661_v31, %v1657_v55 }
 0xae4   :  { %v1664_v45 = vadd.f32 %v1663_v56, %v1409_v63 }
 0xb00   :  { %v1960_v9 = vpop.xlane.xlu1 %1959 }
 0xb01   :  { %v1961_v36 = vmul.f32 0.0078125, %v1960_v9 }
 0xb03   :  { %v1963_v37 = vsub.f32 %v1961_v36, %v1962_v33 }
 0xb04   :  { %v1978_v2 = vpop.permute.xlu1 %1977 }
 0xb05   :  { %v1964_v38 = vmax.f32 %v1963_v37, 0.0 }
 0xb07   :  { %v1966_v39 = vadd.f32 1e-05, %v1964_v38 }
 0xb09   :  { %2186 = vrsqrt.f32 %v1966_v39 }
 0xb16   :  { %v2187_v51 = vpop.eup %2186 }
 0xb17   :  { %v1968_v61 = vmul.f32 %v2187_v51, %v1965_v50 }
 0xb19   :  { %v1974_v0 = vmul.f32 %v1972_v62, %v1968_v61 }
 0xb1b   :  { %v1980_v49 = vadd.f32 %v1978_v2, %v1974_v0 }
 0xb1d   :  { %v1981_v57 = vadd.f32 %v1980_v49, %v1664_v45 }
 0xb1f   :  { %1983 = vst [vmem:[#allocation7 + $0x8] sm:$0xff] %v1981_v57 }
 0xb20   :  { %2231 = shalt.err (!%p2228_p0)
}
 0xb21   :  { %s2831_s11 = smov 128  }
 0xb22   :  { %1995 = dma.vmem_to_hbm [thread:$0]  %s1990_s17, 256, %s2818_s8, [#allocation4], %s2831_s11, %s2831_s11, %s2248_s12  }
 0xb23   :  { %2244 = dma.done.wait [#allocation4], 256  }
 0xb24   :  { %2245 = vsyncadd [#allocation4], 4294967040 }
 0xb25   :  { %1999 = vsyncpa [#allocation3], 1 }
 0xb26   :  { %2000 = vsyncpa [#allocation4], 1 }
 0xb27   :  { %2001 = vsyncpa [#allocation5], 1 }

</bundles_post_ra>
